<compile_context>
chip_gen: v7x
topology: tpu7x:2x2x1
jax: 0.10.0
libtpu: 0.0.40
codegen_flags: <defaults>
</compile_context>

<pallas_src>
import numpy as np
import jax
import jax.numpy as jnp
from jax.experimental import pallas as pl
from jax.experimental.pallas import tpu as pltpu


# ----------------------------- reference packing helpers (NumPy) -------------

def make_divisible(c, divisor):
    return (c + divisor - 1) // divisor


def calculate_zeros_width(in_features, group_size=128, pack_num=8):
    return make_divisible(in_features // group_size, pack_num)


def pack_intweight_np(unpacked_qweight, interleave=4, kstride=64):
    """NumPy port of pack_intweight: (N, K) int4 values -> (N//4, K) int16 buffer."""
    N, K = unpacked_qweight.shape
    pk = unpacked_qweight.astype(np.int32).reshape(N, K // 32, 32)
    pk = pk.reshape(N, K // 32, 4, 4, 2).transpose(0, 1, 3, 2, 4)
    pk = pk.reshape(N, K // 32, 32)
    pk = pk.reshape(N, K // 32, 4, 8)
    pk = pk.reshape(N, K // 32, 4, 4, 2).transpose(0, 1, 2, 4, 3)
    pk = pk.reshape(N, K)
    pk = pk.reshape(N // interleave, interleave, K // kstride, kstride)
    pk = pk.transpose(0, 2, 1, 3)
    pk = pk.reshape(N // interleave, K // kstride, kstride, interleave)
    pk = pk[..., 0] | (pk[..., 1] << 4) | (pk[..., 2] << 8) | (pk[..., 3] << 12)
    pk = pk.reshape(N // interleave, K)
    return pk.astype(np.int16)


def unpack_awq_qweight_np(qweight_i16, out_features, in_features):
    """Exact inverse of pack_intweight_np: (N//4, K) int16 -> (N, K) int32 in [0, 16)."""
    N, K = out_features, in_features
    qw = np.asarray(qweight_i16).astype(np.uint16).astype(np.uint32)
    qw = qw.reshape(N // 4, K // 64, 4, 16)
    nibs = np.stack([(qw >> (4 * s)) & 0xF for s in range(4)], axis=-1)
    scrambled = nibs.reshape(N // 4, K // 64, 4, 64).transpose(0, 2, 1, 3).reshape(N, K)
    s32 = scrambled.reshape(N, K // 32, 4, 2, 4)
    intw = s32.transpose(0, 1, 4, 2, 3).reshape(N, K)
    return intw.astype(np.int32)


def repack_simple_np(intweight):
    """(N, K) int4 values -> (K, N//8) int32; nibble j holds output-column block j."""
    N, K = intweight.shape
    nblk = N // 8
    iw = intweight.T.reshape(K, 8, nblk).astype(np.uint32)
    q = np.zeros((K, nblk), np.uint32)
    for j in range(8):
        q |= iw[:, j, :] << np.uint32(4 * j)
    return q.view(np.int32)


def prepare_awq_qweight(qweight, out_features, in_features):
    """ONE-TIME (module init) host-side re-layout of the CUDA-interleaved qweight.

    Pure index permutation; must NOT be run per forward call.  Returns a
    (K, N//8) int32 device array.
    """
    intweight = unpack_awq_qweight_np(np.asarray(qweight), out_features, in_features)
    return jnp.asarray(repack_simple_np(intweight))


# ----------------------------------- Pallas kernel ---------------------------

def _awq_kernel(x_ref, q_ref, s_ref, z_ref, b_ref, o_ref, acc_ref, w_ref):
    # grid = (M tiles, K tiles); K is the reduction axis.
    kt = pl.program_id(1)

    gpt = s_ref.shape[0]          # quantization groups per K tile
    tk = q_ref.shape[0]           # K depth of this tile (= gpt * group_size)
    gs = tk // gpt                # group_size
    nblk = q_ref.shape[1]         # N // 8

    @pl.when(kt == 0)
    def _():
        # Fold bias into the accumulator init (saves a (tm, N) add at the end).
        acc_ref[...] = jnp.broadcast_to(b_ref[...], acc_ref.shape)

    q = q_ref[...]                # (tk, nblk) int32, 8 nibbles per element
    s_all = s_ref[...]            # (gpt, 1, N) f32 scales
    z_all = z_ref[...]            # (gpt, 1, N) f32 scaled zeros (= -scale*zero)

    # Dequantize this K tile into a lane-dense (tk, N) bf16 tile via static
    # lane-slice writes, then do ONE full-width bf16 MXU matmul.
    for g in range(gpt):          # static unroll over groups in this K tile
        qg = q[g * gs:(g + 1) * gs, :]                         # (gs, nblk)
        for j in range(8):        # static unroll over nibble planes
            wq = ((qg >> (4 * j)) & 0xF).astype(jnp.float32)   # (gs, nblk)
            s = s_all[g, :, j * nblk:(j + 1) * nblk]           # (1, nblk)
            z = z_all[g, :, j * nblk:(j + 1) * nblk]           # (1, nblk)
            w_ref[g * gs:(g + 1) * gs, j * nblk:(j + 1) * nblk] = (
                wq * s + z).astype(jnp.bfloat16)

    acc_ref[...] += jnp.dot(x_ref[...], w_ref[...],
                            preferred_element_type=jnp.float32)

    @pl.when(kt == pl.num_programs(1) - 1)
    def _():
        o_ref[...] = acc_ref[...].astype(o_ref.dtype)


# ----------------------------------- wrapper ---------------------------------

def _cdiv(a, b):
    return (a + b - 1) // b


def _round_up(a, b):
    return _cdiv(a, b) * b


def awq_linear_forward(x, qsimple, scales, scaled_zeros, bias,
                       in_features, out_features, group_size):
    """Forward of AWQLinear: out = x @ dequant(qweight)^T + bias.

    `qsimple` is the one-time repacked weight from `prepare_awq_qweight`.
    Covers both the gemv and gemm branches of the reference (same math).
    """
    K, N = in_features, out_features
    orig_shape = x.shape
    M = int(np.prod(orig_shape[:-1]))

    # bf16 activations for the MXU (accuracy handled by f32 accumulation).
    xf = jnp.asarray(x).astype(jnp.bfloat16).reshape(M, K)

    # Tile M: <= 256 rows per tile (keeps (tm, N) accumulator small regardless
    # of batch), padded to a multiple of 8 for clean sublane tiling.
    n_mtiles = _cdiv(M, 256)
    tm = _round_up(_cdiv(M, n_mtiles), 8)
    M_pad = tm * n_mtiles
    if M_pad != M:
        xf = jnp.pad(xf, ((0, M_pad - M), (0, 0)))

    # K tile = 1 or 2 quantization groups (256-deep contraction when possible).
    G = K // group_size
    gpt = 2 if (G % 2 == 0) else 1
    tk = gpt * group_size
    nblk = N // 8
    assert K % tk == 0 and N % 8 == 0

    # Scales / scaled zeros: drop the pack-width padding rows, reshape to
    # (G, 1, N) so they can be streamed per K tile with a tiny BlockSpec.
    s_f = jnp.asarray(scales, jnp.float32)[:G].reshape(G, 1, N)
    z_f = jnp.asarray(scaled_zeros, jnp.float32)[:G].reshape(G, 1, N)
    b_f = (jnp.zeros((1, N), jnp.float32) if bias is None
           else jnp.asarray(bias, jnp.float32).reshape(1, N))

    grid = (M_pad // tm, K // tk)

    out = pl.pallas_call(
        _awq_kernel,
        out_shape=jax.ShapeDtypeStruct((M_pad, N), jnp.bfloat16),
        grid_spec=pltpu.PrefetchScalarGridSpec(
            num_scalar_prefetch=0,
            grid=grid,
            in_specs=[
                pl.BlockSpec((tm, tk), lambda m, k: (m, k)),       # x (bf16)
                pl.BlockSpec((tk, nblk), lambda m, k: (k, 0)),     # packed int4 weights
                pl.BlockSpec((gpt, 1, N), lambda m, k: (k, 0, 0)),  # scales (streamed)
                pl.BlockSpec((gpt, 1, N), lambda m, k: (k, 0, 0)),  # scaled zeros (streamed)
                pl.BlockSpec((1, N), lambda m, k: (0, 0)),         # bias (resident, tiny)
            ],
            out_specs=pl.BlockSpec((tm, N), lambda m, k: (m, 0)),
            scratch_shapes=[
                pltpu.VMEM((tm, N), jnp.float32),    # f32 accumulator
                pltpu.VMEM((tk, N), jnp.bfloat16),   # dequantized weight tile
            ],
        ),
        compiler_params=pltpu.CompilerParams(
            dimension_semantics=("parallel", "arbitrary"),
            vmem_limit_bytes=48 * 1024 * 1024),
    )(xf, qsimple, s_f, z_f, b_f)

    # bf16 kernel output -> module's float16 boundary dtype; drop M padding.
    return out[:M].astype(jnp.float16).reshape(*orig_shape[:-1], N)


# ----------------------------------------- demo ------------------------------

if __name__ == "__main__":
    num_bits, group_size = 4, 128
    in_features, out_features = 256, 256

    key = jax.random.PRNGKey(0)
    k1, k2, k3, k4, k5, k6 = jax.random.split(key, 6)

    G = in_features // group_size
    G_pad = calculate_zeros_width(in_features, group_size) * (32 // num_bits)

    # deterministic synthetic quantized parameters
    intweight = np.asarray(jax.random.randint(k1, (out_features, in_features), 0, 16,
                                              dtype=jnp.int32))
    scales_g = np.asarray(jax.random.uniform(k2, (G, out_features),
                                             minval=0.01, maxval=0.05)).astype(np.float16)
    zeros_g = np.asarray(jax.random.randint(k3, (G, out_features), 0, 16, dtype=jnp.int32))

    # module buffers, same shapes/dtypes as AWQLinear.__init__ registers
    qweight = pack_intweight_np(intweight, interleave=4, kstride=64)   # (N//4, K) int16
    scales = np.zeros((G_pad, out_features), np.float16)
    scales[:G] = scales_g
    scaled_zeros = np.zeros((G_pad, out_features), np.float16)
    scaled_zeros[:G] = (-(scales_g.astype(np.float32) * zeros_g)).astype(np.float16)
    bias = np.asarray(jax.random.normal(k4, (out_features,))).astype(np.float16)

    # packing round-trip sanity
    assert np.array_equal(unpack_awq_qweight_np(qweight, out_features, in_features),
                          intweight)

    # one-time weight re-layout (module construction, not per forward call)
    qsimple = prepare_awq_qweight(qweight, out_features, in_features)

    # pure-NumPy reference: out = x @ dequant(W)^T + bias
    gidx = np.arange(in_features) // group_size
    W = (intweight.astype(np.float32) * scales[:G].astype(np.float32)[gidx].T
         + scaled_zeros[:G].astype(np.float32)[gidx].T)                # (N, K)

    def reference(x):
        x_np = np.asarray(x, np.float32).reshape(-1, in_features)
        return (x_np @ W.T + bias.astype(np.float32)).reshape(*x.shape[:-1], out_features)

    # two input shapes: one clean, one whose flattened M (=21) needs padding
    for kk, shape in ((k5, (2, 8, in_features)), (k6, (3, 7, in_features))):
        x = jax.random.normal(kk, shape).astype(jnp.float16)
        out = awq_linear_forward(x, qsimple, scales, scaled_zeros, bias,
                                 in_features, out_features, group_size)
        out = jax.block_until_ready(out)
        assert out.shape == (*shape[:-1], out_features) and out.dtype == jnp.float16
        np.testing.assert_allclose(np.asarray(out, np.float32), reference(x),
                                   rtol=3e-2, atol=6e-2)

    print("KERNEL_OK")
</pallas_src>

<mosaic_0001>
module attributes {stable_mosaic.version = 11 : i64} {
  func.func @_awq_kernel(%arg0: i32, %arg1: i32, %arg2: memref<16x256xbf16, #tpu.memory_space<vmem>>, %arg3: memref<256x32xi32, #tpu.memory_space<vmem>>, %arg4: memref<2x1x256xf32, #tpu.memory_space<vmem>>, %arg5: memref<2x1x256xf32, #tpu.memory_space<vmem>>, %arg6: memref<1x256xf32, #tpu.memory_space<vmem>>, %arg7: memref<16x256xbf16, #tpu.memory_space<vmem>>, %arg8: memref<16x256xf32, #tpu.memory_space<vmem>>, %arg9: memref<256x256xbf16, #tpu.memory_space<vmem>>) attributes {dimension_semantics = [#tpu.dimension_semantics<parallel>, #tpu.dimension_semantics<arbitrary>], iteration_bounds = array<i64: 1, 1>, scalar_prefetch = 0 : i64, scratch_operands = 2 : i64, tpu.core_type = #tpu.core_type<tc>, window_params = [{transform_indices = @transform_0, window_bounds = array<i64: 16, 256>}, {transform_indices = @transform_1, window_bounds = array<i64: 256, 32>}, {transform_indices = @transform_2, window_bounds = array<i64: 2, 1, 256>}, {transform_indices = @transform_3, window_bounds = array<i64: 2, 1, 256>}, {pipeline_mode = #tpu.pipeline_mode<synchronous>, transform_indices = @transform_4, window_bounds = array<i64: 1, 256>}, {transform_indices = @transform_5, window_bounds = array<i64: 16, 256>}]} {
    %c0_i32 = arith.constant 0 : i32
    %0 = arith.cmpi eq, %arg1, %c0_i32 : i32
    %1 = arith.extui %0 : i1 to i32
    %c0_i32_0 = arith.constant 0 : i32
    %2 = arith.cmpi ne, %1, %c0_i32_0 : i32
    scf.if %2 {
      %c0_67 = arith.constant 0 : index
      %c0_68 = arith.constant 0 : index
      %257 = vector.load %arg6[%c0_67, %c0_68] : memref<1x256xf32, #tpu.memory_space<vmem>>, vector<1x256xf32>
      %258 = vector.shape_cast %257 : vector<1x256xf32> to vector<1x256xf32>
      %259 = vector.broadcast %258 : vector<1x256xf32> to vector<16x256xf32>
      %c0_69 = arith.constant 0 : index
      %c0_70 = arith.constant 0 : index
      %260 = vector.load %arg8[%c0_69, %c0_70] : memref<16x256xf32, #tpu.memory_space<vmem>>, vector<16x256xf32>
      tpu.vector_store %arg8[%c0_69, %c0_70], %259 {strides = array<i32>} : memref<16x256xf32, #tpu.memory_space<vmem>>, vector<16x256xf32>,
    } else {
    }
    %c0 = arith.constant 0 : index
    %c0_1 = arith.constant 0 : index
    %3 = vector.load %arg3[%c0, %c0_1] : memref<256x32xi32, #tpu.memory_space<vmem>>, vector<256x32xi32>
    %c0_2 = arith.constant 0 : index
    %c0_3 = arith.constant 0 : index
    %c0_4 = arith.constant 0 : index
    %4 = vector.load %arg4[%c0_2, %c0_3, %c0_4] : memref<2x1x256xf32, #tpu.memory_space<vmem>>, vector<2x1x256xf32>
    %c0_5 = arith.constant 0 : index
    %c0_6 = arith.constant 0 : index
    %c0_7 = arith.constant 0 : index
    %5 = vector.load %arg5[%c0_5, %c0_6, %c0_7] : memref<2x1x256xf32, #tpu.memory_space<vmem>>, vector<2x1x256xf32>
    %6 = vector.extract_strided_slice %3 {offsets = [0, 0], sizes = [128, 32], strides = [1, 1]} : vector<256x32xi32> to vector<128x32xi32>
    %c0_i32_8 = arith.constant 0 : i32
    %7 = vector.broadcast %c0_i32_8 : i32 to vector<128x32xi32>
    %8 = arith.shrsi %6, %7 : vector<128x32xi32>
    %c15_i32 = arith.constant 15 : i32
    %9 = vector.broadcast %c15_i32 : i32 to vector<128x32xi32>
    %10 = arith.andi %8, %9 : vector<128x32xi32>
    %11 = arith.sitofp %10 : vector<128x32xi32> to vector<128x32xf32>
    %12 = vector.extract_strided_slice %4 {offsets = [0, 0, 0], sizes = [1, 1, 32], strides = [1, 1, 1]} : vector<2x1x256xf32> to vector<1x1x32xf32>
    %13 = vector.shape_cast %12 : vector<1x1x32xf32> to vector<1x32xf32>
    %14 = vector.extract_strided_slice %5 {offsets = [0, 0, 0], sizes = [1, 1, 32], strides = [1, 1, 1]} : vector<2x1x256xf32> to vector<1x1x32xf32>
    %15 = vector.shape_cast %14 : vector<1x1x32xf32> to vector<1x32xf32>
    %16 = vector.broadcast %13 : vector<1x32xf32> to vector<128x32xf32>
    %17 = arith.mulf %11, %16 : vector<128x32xf32>
    %18 = vector.broadcast %15 : vector<1x32xf32> to vector<128x32xf32>
    %19 = arith.addf %17, %18 : vector<128x32xf32>
    %20 = arith.truncf %19 : vector<128x32xf32> to vector<128x32xbf16>
    %c0_9 = arith.constant 0 : index
    %c0_10 = arith.constant 0 : index
    %21 = vector.load %arg9[%c0_9, %c0_10] : memref<256x256xbf16, #tpu.memory_space<vmem>>, vector<128x32xbf16>
    tpu.vector_store %arg9[%c0_9, %c0_10], %20 {strides = array<i32>} : memref<256x256xbf16, #tpu.memory_space<vmem>>, vector<128x32xbf16>,
    %c4_i32 = arith.constant 4 : i32
    %22 = vector.broadcast %c4_i32 : i32 to vector<128x32xi32>
    %23 = arith.shrsi %6, %22 : vector<128x32xi32>
    %c15_i32_11 = arith.constant 15 : i32
    %24 = vector.broadcast %c15_i32_11 : i32 to vector<128x32xi32>
    %25 = arith.andi %23, %24 : vector<128x32xi32>
    %26 = arith.sitofp %25 : vector<128x32xi32> to vector<128x32xf32>
    %27 = vector.extract_strided_slice %4 {offsets = [0, 0, 32], sizes = [1, 1, 32], strides = [1, 1, 1]} : vector<2x1x256xf32> to vector<1x1x32xf32>
    %28 = vector.shape_cast %27 : vector<1x1x32xf32> to vector<1x32xf32>
    %29 = vector.extract_strided_slice %5 {offsets = [0, 0, 32], sizes = [1, 1, 32], strides = [1, 1, 1]} : vector<2x1x256xf32> to vector<1x1x32xf32>
    %30 = vector.shape_cast %29 : vector<1x1x32xf32> to vector<1x32xf32>
    %31 = vector.broadcast %28 : vector<1x32xf32> to vector<128x32xf32>
    %32 = arith.mulf %26, %31 : vector<128x32xf32>
    %33 = vector.broadcast %30 : vector<1x32xf32> to vector<128x32xf32>
    %34 = arith.addf %32, %33 : vector<128x32xf32>
    %35 = arith.truncf %34 : vector<128x32xf32> to vector<128x32xbf16>
    %c0_12 = arith.constant 0 : index
    %c32 = arith.constant 32 : index
    %36 = vector.load %arg9[%c0_12, %c32] : memref<256x256xbf16, #tpu.memory_space<vmem>>, vector<128x32xbf16>
    tpu.vector_store %arg9[%c0_12, %c32], %35 {strides = array<i32>} : memref<256x256xbf16, #tpu.memory_space<vmem>>, vector<128x32xbf16>,
    %c8_i32 = arith.constant 8 : i32
    %37 = vector.broadcast %c8_i32 : i32 to vector<128x32xi32>
    %38 = arith.shrsi %6, %37 : vector<128x32xi32>
    %c15_i32_13 = arith.constant 15 : i32
    %39 = vector.broadcast %c15_i32_13 : i32 to vector<128x32xi32>
    %40 = arith.andi %38, %39 : vector<128x32xi32>
    %41 = arith.sitofp %40 : vector<128x32xi32> to vector<128x32xf32>
    %42 = vector.extract_strided_slice %4 {offsets = [0, 0, 64], sizes = [1, 1, 32], strides = [1, 1, 1]} : vector<2x1x256xf32> to vector<1x1x32xf32>
    %43 = vector.shape_cast %42 : vector<1x1x32xf32> to vector<1x32xf32>
    %44 = vector.extract_strided_slice %5 {offsets = [0, 0, 64], sizes = [1, 1, 32], strides = [1, 1, 1]} : vector<2x1x256xf32> to vector<1x1x32xf32>
    %45 = vector.shape_cast %44 : vector<1x1x32xf32> to vector<1x32xf32>
    %46 = vector.broadcast %43 : vector<1x32xf32> to vector<128x32xf32>
    %47 = arith.mulf %41, %46 : vector<128x32xf32>
    %48 = vector.broadcast %45 : vector<1x32xf32> to vector<128x32xf32>
    %49 = arith.addf %47, %48 : vector<128x32xf32>
    %50 = arith.truncf %49 : vector<128x32xf32> to vector<128x32xbf16>
    %c0_14 = arith.constant 0 : index
    %c64 = arith.constant 64 : index
    %51 = vector.load %arg9[%c0_14, %c64] : memref<256x256xbf16, #tpu.memory_space<vmem>>, vector<128x32xbf16>
    tpu.vector_store %arg9[%c0_14, %c64], %50 {strides = array<i32>} : memref<256x256xbf16, #tpu.memory_space<vmem>>, vector<128x32xbf16>,
    %c12_i32 = arith.constant 12 : i32
    %52 = vector.broadcast %c12_i32 : i32 to vector<128x32xi32>
    %53 = arith.shrsi %6, %52 : vector<128x32xi32>
    %c15_i32_15 = arith.constant 15 : i32
    %54 = vector.broadcast %c15_i32_15 : i32 to vector<128x32xi32>
    %55 = arith.andi %53, %54 : vector<128x32xi32>
    %56 = arith.sitofp %55 : vector<128x32xi32> to vector<128x32xf32>
    %57 = vector.extract_strided_slice %4 {offsets = [0, 0, 96], sizes = [1, 1, 32], strides = [1, 1, 1]} : vector<2x1x256xf32> to vector<1x1x32xf32>
    %58 = vector.shape_cast %57 : vector<1x1x32xf32> to vector<1x32xf32>
    %59 = vector.extract_strided_slice %5 {offsets = [0, 0, 96], sizes = [1, 1, 32], strides = [1, 1, 1]} : vector<2x1x256xf32> to vector<1x1x32xf32>
    %60 = vector.shape_cast %59 : vector<1x1x32xf32> to vector<1x32xf32>
    %61 = vector.broadcast %58 : vector<1x32xf32> to vector<128x32xf32>
    %62 = arith.mulf %56, %61 : vector<128x32xf32>
    %63 = vector.broadcast %60 : vector<1x32xf32> to vector<128x32xf32>
    %64 = arith.addf %62, %63 : vector<128x32xf32>
    %65 = arith.truncf %64 : vector<128x32xf32> to vector<128x32xbf16>
    %c0_16 = arith.constant 0 : index
    %c96 = arith.constant 96 : index
    %66 = vector.load %arg9[%c0_16, %c96] : memref<256x256xbf16, #tpu.memory_space<vmem>>, vector<128x32xbf16>
    tpu.vector_store %arg9[%c0_16, %c96], %65 {strides = array<i32>} : memref<256x256xbf16, #tpu.memory_space<vmem>>, vector<128x32xbf16>,
    %c16_i32 = arith.constant 16 : i32
    %67 = vector.broadcast %c16_i32 : i32 to vector<128x32xi32>
    %68 = arith.shrsi %6, %67 : vector<128x32xi32>
    %c15_i32_17 = arith.constant 15 : i32
    %69 = vector.broadcast %c15_i32_17 : i32 to vector<128x32xi32>
    %70 = arith.andi %68, %69 : vector<128x32xi32>
    %71 = arith.sitofp %70 : vector<128x32xi32> to vector<128x32xf32>
    %72 = vector.extract_strided_slice %4 {offsets = [0, 0, 128], sizes = [1, 1, 32], strides = [1, 1, 1]} : vector<2x1x256xf32> to vector<1x1x32xf32>
    %73 = vector.shape_cast %72 : vector<1x1x32xf32> to vector<1x32xf32>
    %74 = vector.extract_strided_slice %5 {offsets = [0, 0, 128], sizes = [1, 1, 32], strides = [1, 1, 1]} : vector<2x1x256xf32> to vector<1x1x32xf32>
    %75 = vector.shape_cast %74 : vector<1x1x32xf32> to vector<1x32xf32>
    %76 = vector.broadcast %73 : vector<1x32xf32> to vector<128x32xf32>
    %77 = arith.mulf %71, %76 : vector<128x32xf32>
    %78 = vector.broadcast %75 : vector<1x32xf32> to vector<128x32xf32>
    %79 = arith.addf %77, %78 : vector<128x32xf32>
    %80 = arith.truncf %79 : vector<128x32xf32> to vector<128x32xbf16>
    %c0_18 = arith.constant 0 : index
    %c128 = arith.constant 128 : index
    %81 = vector.load %arg9[%c0_18, %c128] : memref<256x256xbf16, #tpu.memory_space<vmem>>, vector<128x32xbf16>
    tpu.vector_store %arg9[%c0_18, %c128], %80 {strides = array<i32>} : memref<256x256xbf16, #tpu.memory_space<vmem>>, vector<128x32xbf16>,
    %c20_i32 = arith.constant 20 : i32
    %82 = vector.broadcast %c20_i32 : i32 to vector<128x32xi32>
    %83 = arith.shrsi %6, %82 : vector<128x32xi32>
    %c15_i32_19 = arith.constant 15 : i32
    %84 = vector.broadcast %c15_i32_19 : i32 to vector<128x32xi32>
    %85 = arith.andi %83, %84 : vector<128x32xi32>
    %86 = arith.sitofp %85 : vector<128x32xi32> to vector<128x32xf32>
    %87 = vector.extract_strided_slice %4 {offsets = [0, 0, 160], sizes = [1, 1, 32], strides = [1, 1, 1]} : vector<2x1x256xf32> to vector<1x1x32xf32>
    %88 = vector.shape_cast %87 : vector<1x1x32xf32> to vector<1x32xf32>
    %89 = vector.extract_strided_slice %5 {offsets = [0, 0, 160], sizes = [1, 1, 32], strides = [1, 1, 1]} : vector<2x1x256xf32> to vector<1x1x32xf32>
    %90 = vector.shape_cast %89 : vector<1x1x32xf32> to vector<1x32xf32>
    %91 = vector.broadcast %88 : vector<1x32xf32> to vector<128x32xf32>
    %92 = arith.mulf %86, %91 : vector<128x32xf32>
    %93 = vector.broadcast %90 : vector<1x32xf32> to vector<128x32xf32>
    %94 = arith.addf %92, %93 : vector<128x32xf32>
    %95 = arith.truncf %94 : vector<128x32xf32> to vector<128x32xbf16>
    %c0_20 = arith.constant 0 : index
    %c160 = arith.constant 160 : index
    %96 = vector.load %arg9[%c0_20, %c160] : memref<256x256xbf16, #tpu.memory_space<vmem>>, vector<128x32xbf16>
    tpu.vector_store %arg9[%c0_20, %c160], %95 {strides = array<i32>} : memref<256x256xbf16, #tpu.memory_space<vmem>>, vector<128x32xbf16>,
    %c24_i32 = arith.constant 24 : i32
    %97 = vector.broadcast %c24_i32 : i32 to vector<128x32xi32>
    %98 = arith.shrsi %6, %97 : vector<128x32xi32>
    %c15_i32_21 = arith.constant 15 : i32
    %99 = vector.broadcast %c15_i32_21 : i32 to vector<128x32xi32>
    %100 = arith.andi %98, %99 : vector<128x32xi32>
    %101 = arith.sitofp %100 : vector<128x32xi32> to vector<128x32xf32>
    %102 = vector.extract_strided_slice %4 {offsets = [0, 0, 192], sizes = [1, 1, 32], strides = [1, 1, 1]} : vector<2x1x256xf32> to vector<1x1x32xf32>
    %103 = vector.shape_cast %102 : vector<1x1x32xf32> to vector<1x32xf32>
    %104 = vector.extract_strided_slice %5 {offsets = [0, 0, 192], sizes = [1, 1, 32], strides = [1, 1, 1]} : vector<2x1x256xf32> to vector<1x1x32xf32>
    %105 = vector.shape_cast %104 : vector<1x1x32xf32> to vector<1x32xf32>
    %106 = vector.broadcast %103 : vector<1x32xf32> to vector<128x32xf32>
    %107 = arith.mulf %101, %106 : vector<128x32xf32>
    %108 = vector.broadcast %105 : vector<1x32xf32> to vector<128x32xf32>
    %109 = arith.addf %107, %108 : vector<128x32xf32>
    %110 = arith.truncf %109 : vector<128x32xf32> to vector<128x32xbf16>
    %c0_22 = arith.constant 0 : index
    %c192 = arith.constant 192 : index
    %111 = vector.load %arg9[%c0_22, %c192] : memref<256x256xbf16, #tpu.memory_space<vmem>>, vector<128x32xbf16>
    tpu.vector_store %arg9[%c0_22, %c192], %110 {strides = array<i32>} : memref<256x256xbf16, #tpu.memory_space<vmem>>, vector<128x32xbf16>,
    %c28_i32 = arith.constant 28 : i32
    %112 = vector.broadcast %c28_i32 : i32 to vector<128x32xi32>
    %113 = arith.shrsi %6, %112 : vector<128x32xi32>
    %c15_i32_23 = arith.constant 15 : i32
    %114 = vector.broadcast %c15_i32_23 : i32 to vector<128x32xi32>
    %115 = arith.andi %113, %114 : vector<128x32xi32>
    %116 = arith.sitofp %115 : vector<128x32xi32> to vector<128x32xf32>
    %117 = vector.extract_strided_slice %4 {offsets = [0, 0, 224], sizes = [1, 1, 32], strides = [1, 1, 1]} : vector<2x1x256xf32> to vector<1x1x32xf32>
    %118 = vector.shape_cast %117 : vector<1x1x32xf32> to vector<1x32xf32>
    %119 = vector.extract_strided_slice %5 {offsets = [0, 0, 224], sizes = [1, 1, 32], strides = [1, 1, 1]} : vector<2x1x256xf32> to vector<1x1x32xf32>
    %120 = vector.shape_cast %119 : vector<1x1x32xf32> to vector<1x32xf32>
    %121 = vector.broadcast %118 : vector<1x32xf32> to vector<128x32xf32>
    %122 = arith.mulf %116, %121 : vector<128x32xf32>
    %123 = vector.broadcast %120 : vector<1x32xf32> to vector<128x32xf32>
    %124 = arith.addf %122, %123 : vector<128x32xf32>
    %125 = arith.truncf %124 : vector<128x32xf32> to vector<128x32xbf16>
    %c0_24 = arith.constant 0 : index
    %c224 = arith.constant 224 : index
    %126 = vector.load %arg9[%c0_24, %c224] : memref<256x256xbf16, #tpu.memory_space<vmem>>, vector<128x32xbf16>
    tpu.vector_store %arg9[%c0_24, %c224], %125 {strides = array<i32>} : memref<256x256xbf16, #tpu.memory_space<vmem>>, vector<128x32xbf16>,
    %127 = vector.extract_strided_slice %3 {offsets = [128, 0], sizes = [128, 32], strides = [1, 1]} : vector<256x32xi32> to vector<128x32xi32>
    %c0_i32_25 = arith.constant 0 : i32
    %128 = vector.broadcast %c0_i32_25 : i32 to vector<128x32xi32>
    %129 = arith.shrsi %127, %128 : vector<128x32xi32>
    %c15_i32_26 = arith.constant 15 : i32
    %130 = vector.broadcast %c15_i32_26 : i32 to vector<128x32xi32>
    %131 = arith.andi %129, %130 : vector<128x32xi32>
    %132 = arith.sitofp %131 : vector<128x32xi32> to vector<128x32xf32>
    %133 = vector.extract_strided_slice %4 {offsets = [1, 0, 0], sizes = [1, 1, 32], strides = [1, 1, 1]} : vector<2x1x256xf32> to vector<1x1x32xf32>
    %134 = vector.shape_cast %133 : vector<1x1x32xf32> to vector<1x32xf32>
    %135 = vector.extract_strided_slice %5 {offsets = [1, 0, 0], sizes = [1, 1, 32], strides = [1, 1, 1]} : vector<2x1x256xf32> to vector<1x1x32xf32>
    %136 = vector.shape_cast %135 : vector<1x1x32xf32> to vector<1x32xf32>
    %137 = vector.broadcast %134 : vector<1x32xf32> to vector<128x32xf32>
    %138 = arith.mulf %132, %137 : vector<128x32xf32>
    %139 = vector.broadcast %136 : vector<1x32xf32> to vector<128x32xf32>
    %140 = arith.addf %138, %139 : vector<128x32xf32>
    %141 = arith.truncf %140 : vector<128x32xf32> to vector<128x32xbf16>
    %c128_27 = arith.constant 128 : index
    %c0_28 = arith.constant 0 : index
    %142 = vector.load %arg9[%c128_27, %c0_28] : memref<256x256xbf16, #tpu.memory_space<vmem>>, vector<128x32xbf16>
    tpu.vector_store %arg9[%c128_27, %c0_28], %141 {strides = array<i32>} : memref<256x256xbf16, #tpu.memory_space<vmem>>, vector<128x32xbf16>,
    %c4_i32_29 = arith.constant 4 : i32
    %143 = vector.broadcast %c4_i32_29 : i32 to vector<128x32xi32>
    %144 = arith.shrsi %127, %143 : vector<128x32xi32>
    %c15_i32_30 = arith.constant 15 : i32
    %145 = vector.broadcast %c15_i32_30 : i32 to vector<128x32xi32>
    %146 = arith.andi %144, %145 : vector<128x32xi32>
    %147 = arith.sitofp %146 : vector<128x32xi32> to vector<128x32xf32>
    %148 = vector.extract_strided_slice %4 {offsets = [1, 0, 32], sizes = [1, 1, 32], strides = [1, 1, 1]} : vector<2x1x256xf32> to vector<1x1x32xf32>
    %149 = vector.shape_cast %148 : vector<1x1x32xf32> to vector<1x32xf32>
    %150 = vector.extract_strided_slice %5 {offsets = [1, 0, 32], sizes = [1, 1, 32], strides = [1, 1, 1]} : vector<2x1x256xf32> to vector<1x1x32xf32>
    %151 = vector.shape_cast %150 : vector<1x1x32xf32> to vector<1x32xf32>
    %152 = vector.broadcast %149 : vector<1x32xf32> to vector<128x32xf32>
    %153 = arith.mulf %147, %152 : vector<128x32xf32>
    %154 = vector.broadcast %151 : vector<1x32xf32> to vector<128x32xf32>
    %155 = arith.addf %153, %154 : vector<128x32xf32>
    %156 = arith.truncf %155 : vector<128x32xf32> to vector<128x32xbf16>
    %c128_31 = arith.constant 128 : index
    %c32_32 = arith.constant 32 : index
    %157 = vector.load %arg9[%c128_31, %c32_32] : memref<256x256xbf16, #tpu.memory_space<vmem>>, vector<128x32xbf16>
    tpu.vector_store %arg9[%c128_31, %c32_32], %156 {strides = array<i32>} : memref<256x256xbf16, #tpu.memory_space<vmem>>, vector<128x32xbf16>,
    %c8_i32_33 = arith.constant 8 : i32
    %158 = vector.broadcast %c8_i32_33 : i32 to vector<128x32xi32>
    %159 = arith.shrsi %127, %158 : vector<128x32xi32>
    %c15_i32_34 = arith.constant 15 : i32
    %160 = vector.broadcast %c15_i32_34 : i32 to vector<128x32xi32>
    %161 = arith.andi %159, %160 : vector<128x32xi32>
    %162 = arith.sitofp %161 : vector<128x32xi32> to vector<128x32xf32>
    %163 = vector.extract_strided_slice %4 {offsets = [1, 0, 64], sizes = [1, 1, 32], strides = [1, 1, 1]} : vector<2x1x256xf32> to vector<1x1x32xf32>
    %164 = vector.shape_cast %163 : vector<1x1x32xf32> to vector<1x32xf32>
    %165 = vector.extract_strided_slice %5 {offsets = [1, 0, 64], sizes = [1, 1, 32], strides = [1, 1, 1]} : vector<2x1x256xf32> to vector<1x1x32xf32>
    %166 = vector.shape_cast %165 : vector<1x1x32xf32> to vector<1x32xf32>
    %167 = vector.broadcast %164 : vector<1x32xf32> to vector<128x32xf32>
    %168 = arith.mulf %162, %167 : vector<128x32xf32>
    %169 = vector.broadcast %166 : vector<1x32xf32> to vector<128x32xf32>
    %170 = arith.addf %168, %169 : vector<128x32xf32>
    %171 = arith.truncf %170 : vector<128x32xf32> to vector<128x32xbf16>
    %c128_35 = arith.constant 128 : index
    %c64_36 = arith.constant 64 : index
    %172 = vector.load %arg9[%c128_35, %c64_36] : memref<256x256xbf16, #tpu.memory_space<vmem>>, vector<128x32xbf16>
    tpu.vector_store %arg9[%c128_35, %c64_36], %171 {strides = array<i32>} : memref<256x256xbf16, #tpu.memory_space<vmem>>, vector<128x32xbf16>,
    %c12_i32_37 = arith.constant 12 : i32
    %173 = vector.broadcast %c12_i32_37 : i32 to vector<128x32xi32>
    %174 = arith.shrsi %127, %173 : vector<128x32xi32>
    %c15_i32_38 = arith.constant 15 : i32
    %175 = vector.broadcast %c15_i32_38 : i32 to vector<128x32xi32>
    %176 = arith.andi %174, %175 : vector<128x32xi32>
    %177 = arith.sitofp %176 : vector<128x32xi32> to vector<128x32xf32>
    %178 = vector.extract_strided_slice %4 {offsets = [1, 0, 96], sizes = [1, 1, 32], strides = [1, 1, 1]} : vector<2x1x256xf32> to vector<1x1x32xf32>
    %179 = vector.shape_cast %178 : vector<1x1x32xf32> to vector<1x32xf32>
    %180 = vector.extract_strided_slice %5 {offsets = [1, 0, 96], sizes = [1, 1, 32], strides = [1, 1, 1]} : vector<2x1x256xf32> to vector<1x1x32xf32>
    %181 = vector.shape_cast %180 : vector<1x1x32xf32> to vector<1x32xf32>
    %182 = vector.broadcast %179 : vector<1x32xf32> to vector<128x32xf32>
    %183 = arith.mulf %177, %182 : vector<128x32xf32>
    %184 = vector.broadcast %181 : vector<1x32xf32> to vector<128x32xf32>
    %185 = arith.addf %183, %184 : vector<128x32xf32>
    %186 = arith.truncf %185 : vector<128x32xf32> to vector<128x32xbf16>
    %c128_39 = arith.constant 128 : index
    %c96_40 = arith.constant 96 : index
    %187 = vector.load %arg9[%c128_39, %c96_40] : memref<256x256xbf16, #tpu.memory_space<vmem>>, vector<128x32xbf16>
    tpu.vector_store %arg9[%c128_39, %c96_40], %186 {strides = array<i32>} : memref<256x256xbf16, #tpu.memory_space<vmem>>, vector<128x32xbf16>,
    %c16_i32_41 = arith.constant 16 : i32
    %188 = vector.broadcast %c16_i32_41 : i32 to vector<128x32xi32>
    %189 = arith.shrsi %127, %188 : vector<128x32xi32>
    %c15_i32_42 = arith.constant 15 : i32
    %190 = vector.broadcast %c15_i32_42 : i32 to vector<128x32xi32>
    %191 = arith.andi %189, %190 : vector<128x32xi32>
    %192 = arith.sitofp %191 : vector<128x32xi32> to vector<128x32xf32>
    %193 = vector.extract_strided_slice %4 {offsets = [1, 0, 128], sizes = [1, 1, 32], strides = [1, 1, 1]} : vector<2x1x256xf32> to vector<1x1x32xf32>
    %194 = vector.shape_cast %193 : vector<1x1x32xf32> to vector<1x32xf32>
    %195 = vector.extract_strided_slice %5 {offsets = [1, 0, 128], sizes = [1, 1, 32], strides = [1, 1, 1]} : vector<2x1x256xf32> to vector<1x1x32xf32>
    %196 = vector.shape_cast %195 : vector<1x1x32xf32> to vector<1x32xf32>
    %197 = vector.broadcast %194 : vector<1x32xf32> to vector<128x32xf32>
    %198 = arith.mulf %192, %197 : vector<128x32xf32>
    %199 = vector.broadcast %196 : vector<1x32xf32> to vector<128x32xf32>
    %200 = arith.addf %198, %199 : vector<128x32xf32>
    %201 = arith.truncf %200 : vector<128x32xf32> to vector<128x32xbf16>
    %c128_43 = arith.constant 128 : index
    %c128_44 = arith.constant 128 : index
    %202 = vector.load %arg9[%c128_43, %c128_44] : memref<256x256xbf16, #tpu.memory_space<vmem>>, vector<128x32xbf16>
    tpu.vector_store %arg9[%c128_43, %c128_44], %201 {strides = array<i32>} : memref<256x256xbf16, #tpu.memory_space<vmem>>, vector<128x32xbf16>,
    %c20_i32_45 = arith.constant 20 : i32
    %203 = vector.broadcast %c20_i32_45 : i32 to vector<128x32xi32>
    %204 = arith.shrsi %127, %203 : vector<128x32xi32>
    %c15_i32_46 = arith.constant 15 : i32
    %205 = vector.broadcast %c15_i32_46 : i32 to vector<128x32xi32>
    %206 = arith.andi %204, %205 : vector<128x32xi32>
    %207 = arith.sitofp %206 : vector<128x32xi32> to vector<128x32xf32>
    %208 = vector.extract_strided_slice %4 {offsets = [1, 0, 160], sizes = [1, 1, 32], strides = [1, 1, 1]} : vector<2x1x256xf32> to vector<1x1x32xf32>
    %209 = vector.shape_cast %208 : vector<1x1x32xf32> to vector<1x32xf32>
    %210 = vector.extract_strided_slice %5 {offsets = [1, 0, 160], sizes = [1, 1, 32], strides = [1, 1, 1]} : vector<2x1x256xf32> to vector<1x1x32xf32>
    %211 = vector.shape_cast %210 : vector<1x1x32xf32> to vector<1x32xf32>
    %212 = vector.broadcast %209 : vector<1x32xf32> to vector<128x32xf32>
    %213 = arith.mulf %207, %212 : vector<128x32xf32>
    %214 = vector.broadcast %211 : vector<1x32xf32> to vector<128x32xf32>
    %215 = arith.addf %213, %214 : vector<128x32xf32>
    %216 = arith.truncf %215 : vector<128x32xf32> to vector<128x32xbf16>
    %c128_47 = arith.constant 128 : index
    %c160_48 = arith.constant 160 : index
    %217 = vector.load %arg9[%c128_47, %c160_48] : memref<256x256xbf16, #tpu.memory_space<vmem>>, vector<128x32xbf16>
    tpu.vector_store %arg9[%c128_47, %c160_48], %216 {strides = array<i32>} : memref<256x256xbf16, #tpu.memory_space<vmem>>, vector<128x32xbf16>,
    %c24_i32_49 = arith.constant 24 : i32
    %218 = vector.broadcast %c24_i32_49 : i32 to vector<128x32xi32>
    %219 = arith.shrsi %127, %218 : vector<128x32xi32>
    %c15_i32_50 = arith.constant 15 : i32
    %220 = vector.broadcast %c15_i32_50 : i32 to vector<128x32xi32>
    %221 = arith.andi %219, %220 : vector<128x32xi32>
    %222 = arith.sitofp %221 : vector<128x32xi32> to vector<128x32xf32>
    %223 = vector.extract_strided_slice %4 {offsets = [1, 0, 192], sizes = [1, 1, 32], strides = [1, 1, 1]} : vector<2x1x256xf32> to vector<1x1x32xf32>
    %224 = vector.shape_cast %223 : vector<1x1x32xf32> to vector<1x32xf32>
    %225 = vector.extract_strided_slice %5 {offsets = [1, 0, 192], sizes = [1, 1, 32], strides = [1, 1, 1]} : vector<2x1x256xf32> to vector<1x1x32xf32>
    %226 = vector.shape_cast %225 : vector<1x1x32xf32> to vector<1x32xf32>
    %227 = vector.broadcast %224 : vector<1x32xf32> to vector<128x32xf32>
    %228 = arith.mulf %222, %227 : vector<128x32xf32>
    %229 = vector.broadcast %226 : vector<1x32xf32> to vector<128x32xf32>
    %230 = arith.addf %228, %229 : vector<128x32xf32>
    %231 = arith.truncf %230 : vector<128x32xf32> to vector<128x32xbf16>
    %c128_51 = arith.constant 128 : index
    %c192_52 = arith.constant 192 : index
    %232 = vector.load %arg9[%c128_51, %c192_52] : memref<256x256xbf16, #tpu.memory_space<vmem>>, vector<128x32xbf16>
    tpu.vector_store %arg9[%c128_51, %c192_52], %231 {strides = array<i32>} : memref<256x256xbf16, #tpu.memory_space<vmem>>, vector<128x32xbf16>,
    %c28_i32_53 = arith.constant 28 : i32
    %233 = vector.broadcast %c28_i32_53 : i32 to vector<128x32xi32>
    %234 = arith.shrsi %127, %233 : vector<128x32xi32>
    %c15_i32_54 = arith.constant 15 : i32
    %235 = vector.broadcast %c15_i32_54 : i32 to vector<128x32xi32>
    %236 = arith.andi %234, %235 : vector<128x32xi32>
    %237 = arith.sitofp %236 : vector<128x32xi32> to vector<128x32xf32>
    %238 = vector.extract_strided_slice %4 {offsets = [1, 0, 224], sizes = [1, 1, 32], strides = [1, 1, 1]} : vector<2x1x256xf32> to vector<1x1x32xf32>
    %239 = vector.shape_cast %238 : vector<1x1x32xf32> to vector<1x32xf32>
    %240 = vector.extract_strided_slice %5 {offsets = [1, 0, 224], sizes = [1, 1, 32], strides = [1, 1, 1]} : vector<2x1x256xf32> to vector<1x1x32xf32>
    %241 = vector.shape_cast %240 : vector<1x1x32xf32> to vector<1x32xf32>
    %242 = vector.broadcast %239 : vector<1x32xf32> to vector<128x32xf32>
    %243 = arith.mulf %237, %242 : vector<128x32xf32>
    %244 = vector.broadcast %241 : vector<1x32xf32> to vector<128x32xf32>
    %245 = arith.addf %243, %244 : vector<128x32xf32>
    %246 = arith.truncf %245 : vector<128x32xf32> to vector<128x32xbf16>
    %c128_55 = arith.constant 128 : index
    %c224_56 = arith.constant 224 : index
    %247 = vector.load %arg9[%c128_55, %c224_56] : memref<256x256xbf16, #tpu.memory_space<vmem>>, vector<128x32xbf16>
    tpu.vector_store %arg9[%c128_55, %c224_56], %246 {strides = array<i32>} : memref<256x256xbf16, #tpu.memory_space<vmem>>, vector<128x32xbf16>,
    %c0_57 = arith.constant 0 : index
    %c0_58 = arith.constant 0 : index
    %248 = vector.load %arg8[%c0_57, %c0_58] : memref<16x256xf32, #tpu.memory_space<vmem>>, vector<16x256xf32>
    %c0_59 = arith.constant 0 : index
    %c0_60 = arith.constant 0 : index
    %249 = vector.load %arg2[%c0_59, %c0_60] : memref<16x256xbf16, #tpu.memory_space<vmem>>, vector<16x256xbf16>
    %c0_61 = arith.constant 0 : index
    %c0_62 = arith.constant 0 : index
    %250 = vector.load %arg9[%c0_61, %c0_62] : memref<256x256xbf16, #tpu.memory_space<vmem>>, vector<256x256xbf16>
    %cst = arith.constant dense<0.000000e+00> : vector<16x256xf32>
    %251 = tpu.matmul %249, %250, %cst {dimension_numbers = #tpu.dot_dimension_numbers<[1], [0], [0], [1], [0, 0, 1, 1], [], []>} : vector<16x256xbf16>, vector<256x256xbf16>, vector<16x256xf32> -> vector<16x256xf32>
    %252 = arith.addf %248, %251 : vector<16x256xf32>
    %c0_63 = arith.constant 0 : index
    %c0_64 = arith.constant 0 : index
    %253 = vector.load %arg8[%c0_63, %c0_64] : memref<16x256xf32, #tpu.memory_space<vmem>>, vector<16x256xf32>
    tpu.vector_store %arg8[%c0_63, %c0_64], %252 {strides = array<i32>} : memref<16x256xf32, #tpu.memory_space<vmem>>, vector<16x256xf32>,
    %c0_i32_65 = arith.constant 0 : i32
    %254 = arith.cmpi eq, %arg1, %c0_i32_65 : i32
    %255 = arith.extui %254 : i1 to i32
    %c0_i32_66 = arith.constant 0 : i32
    %256 = arith.cmpi ne, %255, %c0_i32_66 : i32
    scf.if %256 {
      %c0_67 = arith.constant 0 : index
      %c0_68 = arith.constant 0 : index
      %257 = vector.load %arg8[%c0_67, %c0_68] : memref<16x256xf32, #tpu.memory_space<vmem>>, vector<16x256xf32>
      %258 = arith.truncf %257 : vector<16x256xf32> to vector<16x256xbf16>
      %c0_69 = arith.constant 0 : index
      %c0_70 = arith.constant 0 : index
      %259 = vector.load %arg7[%c0_69, %c0_70] : memref<16x256xbf16, #tpu.memory_space<vmem>>, vector<16x256xbf16>
      tpu.vector_store %arg7[%c0_69, %c0_70], %258 {strides = array<i32>} : memref<16x256xbf16, #tpu.memory_space<vmem>>, vector<16x256xbf16>,
    } else {
    }
    return
  }
  func.func @transform_0(%arg0: i32, %arg1: i32) -> (i32, i32) {
    %c0_i32 = arith.constant 0 : i32
    return %arg0, %arg1 : i32, i32
  }
  func.func @transform_1(%arg0: i32, %arg1: i32) -> (i32, i32) {
    %c0_i32 = arith.constant 0 : i32
    %c0_i32_0 = arith.constant 0 : i32
    return %arg1, %c0_i32 : i32, i32
  }
  func.func @transform_2(%arg0: i32, %arg1: i32) -> (i32, i32, i32) {
    %c0_i32 = arith.constant 0 : i32
    %c0_i32_0 = arith.constant 0 : i32
    %c0_i32_1 = arith.constant 0 : i32
    return %arg1, %c0_i32, %c0_i32_0 : i32, i32, i32
  }
  func.func @transform_3(%arg0: i32, %arg1: i32) -> (i32, i32, i32) {
    %c0_i32 = arith.constant 0 : i32
    %c0_i32_0 = arith.constant 0 : i32
    %c0_i32_1 = arith.constant 0 : i32
    return %arg1, %c0_i32, %c0_i32_0 : i32, i32, i32
  }
  func.func @transform_4(%arg0: i32, %arg1: i32) -> (i32, i32) {
    %c0_i32 = arith.constant 0 : i32
    %c0_i32_0 = arith.constant 0 : i32
    %c0_i32_1 = arith.constant 0 : i32
    return %c0_i32, %c0_i32_0 : i32, i32
  }
  func.func @transform_5(%arg0: i32, %arg1: i32) -> (i32, i32) {
    %c0_i32 = arith.constant 0 : i32
    %c0_i32_0 = arith.constant 0 : i32
    return %arg0, %c0_i32 : i32, i32
  }
}

</mosaic_0001>

<bundles_post_ra>
// kernel: tpu_custom_call.1
= control target key start
LH: loop header
LB: loop body
LE: loop exit
PB: predicated region body
PF: predicated region fallthrough
CT: control target
= control target key end

     0   :  { %v27_v1 = vlaneseq  ;;  %s2386_s22 = smov 96   ;;  %s2387_s23 = smov 64   ;;  %s5055_s0 = inlined_call_operand.vmem [shape: bf16[16,256], index: 0, kind: input, shape index: {}]   ;;  %s5056_s1 = inlined_call_operand.vmem [shape: s32[256,32], index: 1, kind: input, shape index: {}]   ;;  %s5057_s2 = inlined_call_operand.vmem [shape: f32[2,1,256], index: 2, kind: input, shape index: {}]   ;;  %s5058_s3 = inlined_call_operand.vmem [shape: f32[2,1,256], index: 3, kind: input, shape index: {}]   ;;  %s5059_s4 = inlined_call_operand.vmem [shape: f32[1,256], index: 4, kind: input, shape index: {}]   ;;  %s5060_s5 = inlined_call_operand.hbm [shape: bf16[16,256], index: 5, kind: output, shape index: {}]  }
   0x1   :  { %v73_v0 = vld [vmem:[%s5057_s2] sm:$0x3]  ;;  %s2388_s24 = smov 32  }
   0x2   :  { %v75_v2 = vld [vmem:[%s5058_s3] sm:$0x3]  ;;  %731 = vrot.lane.b32.xlu0 %v73_v0, %s2386_s22  ;;  %v2430_v3 = vshrl.u32 %v27_v1, 7 }
   0x3   :  { %734 = vrot.lane.b32.xlu1 %v75_v2, %s2386_s22 }
   0x4   :  { %5170 = vst [vmem:[#allocation7_spill] sm:$0xff] %v2430_v3  ;;  %v2433_v4 = vsub.s32 0, %v2430_v3 }
   0x6   :  { %5171 = vst [vmem:[#allocation8_spill] sm:$0xff] %v2433_v4  ;;  %875 = vrot.lane.b32.xlu0 %v73_v0, %s2387_s23 }
   0x7   :  { %1019 = vrot.lane.b32.xlu1 %v73_v0, %s2388_s24 }
   0x8   :  { %10 = vsyncpa [#allocation5], 0  ;;  %v2438_v5 = vrot.slane %v73_v0, %v2433_v4  ;;  %v2443_v6 = vrot.slane %v75_v2, %v2433_v4  ;;  %v74_v7 = vld [vmem:[%s5057_s2 + $0x2] sm:$0x3]  ;;  %v2475_v10 = vld [vmem:[%s5056_s1 + $0x8] sm:$0xff]  ;;  %v623_v16 = vrot.slane %v73_v0, 1 }
   0x9   :  { %v76_v8 = vld [vmem:[%s5058_s3 + $0x2] sm:$0x3]  ;;  %v2479_v12 = vrot.slane %v74_v7, %v2433_v4  ;;  %v684_v13 = vshra.s32 %v2475_v10, 20  ;;  %v828_v15 = vshra.s32 %v2475_v10, 24  ;;  %v624_v17 = vrot.slane %v75_v2, 1  ;;  %v2489_v20 = vld [vmem:[%s5056_s1 + $0x10] sm:$0xff] }
   0xa   :  { %5172 = vst [vmem:[#allocation9_spill] sm:$0xff] %v2438_v5  ;;  %878 = vrot.lane.b32.xlu0 %v75_v2, %s2387_s23  ;;  %5173 = vst [vmem:[#allocation10_spill] sm:$0xff] %v2443_v6  ;;  %v2470_v9 = vld [vmem:[%s5056_s1] sm:$0xff]  ;;  %v1657_v18 = vrot.slane %v74_v7, 1  ;;  %v1658_v19 = vrot.slane %v76_v8, 1  ;;  %v2494_v21 = vld [vmem:[%s5056_s1 + $0x18] sm:$0xff]  ;;  %v2501_v25 = vrot.slane %v76_v8, %v2433_v4  ;;  %v2518_v33 = vrot.slane %v623_v16, %v2433_v4 }
   0xb   :  { %1022 = vrot.lane.b32.xlu1 %v75_v2, %s2388_s24  ;;  %v683_v11 = vshra.s32 %v2470_v9, 20  ;;  %5174 = vst [vmem:[#allocation11_spill] sm:$0xff] %v2479_v12  ;;  %v827_v14 = vshra.s32 %v2470_v9, 24  ;;  %v170_v23 = vshra.s32 %v2470_v9, 4  ;;  %v171_v24 = vshra.s32 %v2475_v10, 4  ;;  %v2558_v53 = vld [vmem:[%s5056_s1 + $0x20] sm:$0xff] }
   0xc   :  { %5175 = vst [vmem:[#allocation12_spill] sm:$0xff] %v2501_v25  ;;  %v2507_v26 = vand.u32 15, %v684_v13  ;;  %v2285_v27 = vshrl.u32 %v2470_v9, 28  ;;  %v2286_v28 = vshrl.u32 %v2475_v10, 28  ;;  %v2513_v30 = vand.u32 15, %v828_v15  ;;  %5176 = vst [vmem:[#allocation13_spill] sm:$0xff] %v2518_v33 }
   0xd   :  { %v2496_v22 = vand.u32 15, %v683_v11  ;;  %v2511_v29 = vand.u32 15, %v827_v14  ;;  %v685_v31 = vshra.s32 %v2489_v20, 20  ;;  %v686_v32 = vshra.s32 %v2494_v21, 20  ;;  %v2563_v54 = vld [vmem:[%s5056_s1 + $0x28] sm:$0xff]  ;;  %v2674_v42 = vld [vmem:[%s5056_s1 + $0x40] sm:$0xff] }
   0xe   :  { %218 = vrot.lane.b32.xlu0 %v2438_v5, %s2386_s22  ;;  %v2521_v34 = vrot.slane %v624_v17, %v2433_v4  ;;  %v2524_v35 = vrot.slane %v1657_v18, %v2433_v4  ;;  %v2527_v36 = vrot.slane %v1658_v19, %v2433_v4  ;;  %v2529_v37 = vand.u32 15, %v170_v23 }
   0xf   :  { %353 = vrot.lane.b32.xlu1 %v2438_v5, %s2387_s23  ;;  %v2531_v38 = vand.u32 15, %v171_v24  ;;  %v305_v39 = vshra.s32 %v2470_v9, 8  ;;  %v306_v40 = vshra.s32 %v2475_v10, 8  ;;  %v829_v43 = vshra.s32 %v2489_v20, 24 }
  0x10   :  { %5177 = vst [vmem:[#allocation14_spill] sm:$0xff] %v2521_v34  ;;  %5178 = vst [vmem:[#allocation15_spill] sm:$0xff] %v2524_v35  ;;  %v830_v44 = vshra.s32 %v2494_v21, 24  ;;  %v2545_v47 = vand.u32 15, %v685_v31  ;;  %v2547_v48 = vand.u32 15, %v686_v32  ;;  %v2549_v49 = vcvt.s32.f32 %v2285_v27 }
  0x11   :  { %5179 = vst [vmem:[#allocation16_spill] sm:$0xff] %v2527_v36  ;;  %v2551_v50 = vcvt.s32.f32 %v2286_v28  ;;  %v440_v51 = vshra.s32 %v2470_v9, 12  ;;  %v441_v52 = vshra.s32 %v2475_v10, 12  ;;  %v2567_v57 = vand.u32 15, %v305_v39 }
  0x12   :  { %237 = vrot.lane.b32.xlu0 %v2443_v6, %s2386_s22  ;;  %v2569_v58 = vand.u32 15, %v306_v40  ;;  %v2575_v59 = vand.u32 15, %v829_v43  ;;  %v2577_v60 = vand.u32 15, %v830_v44  ;;  %v172_v61 = vshra.s32 %v2489_v20, 4 }
  0x13   :  { %488 = vrot.lane.b32.xlu1 %v2438_v5, %s2388_s24  ;;  %v173_v62 = vshra.s32 %v2494_v21, 4  ;;  %v687_v1 = vshra.s32 %v2558_v53, 20  ;;  %v688_v2 = vshra.s32 %v2563_v54, 20  ;;  %v2287_v11 = vshrl.u32 %v2489_v20, 28 }
  0x14   :  { %v2288_v13 = vshrl.u32 %v2494_v21, 28  ;;  %v307_v16 = vshra.s32 %v2489_v20, 8  ;;  %v308_v17 = vshra.s32 %v2494_v21, 8  ;;  %v2596_v19 = vand.u32 15, %v172_v61 }
  0x15   :  { %v2598_v23 = vand.u32 15, %v173_v62  ;;  %v831_v24 = vshra.s32 %v2558_v53, 24  ;;  %v2602_v28 = vand.u32 15, %v687_v1  ;;  %v2604_v31 = vand.u32 15, %v688_v2  ;;  %v2622_v1 = vld [vmem:[%s5056_s1 + $0x30] sm:$0xff]  ;;  %v2627_v2 = vld [vmem:[%s5056_s1 + $0x38] sm:$0xff] }
  0x16   :  { %372 = vrot.lane.b32.xlu0 %v2443_v6, %s2387_s23  ;;  %v832_v32 = vshra.s32 %v2563_v54, 24  ;;  %v2609_v43 = vcvt.s32.f32 %v2287_v11  ;;  %v2611_v44 = vcvt.s32.f32 %v2288_v13  ;;  %v442_v61 = vshra.s32 %v2489_v20, 12 }
  0x17   :  { %507 = vrot.lane.b32.xlu1 %v2443_v6, %s2388_s24  ;;  %v443_v62 = vshra.s32 %v2494_v21, 12  ;;  %v174_v20 = vshra.s32 %v2558_v53, 4  ;;  %v175_v39 = vshra.s32 %v2563_v54, 4  ;;  %v2289_v15 = vshrl.u32 %v2558_v53, 28 }
  0x18   :  { %v2636_v40 = vand.u32 15, %v832_v32  ;;  %v2290_v14 = vshrl.u32 %v2563_v54, 28  ;;  %v689_v11 = vshra.s32 %v2622_v1, 20  ;;  %v690_v13 = vshra.s32 %v2627_v2, 20 }
  0x19   :  { %v2645_v55 = vand.u32 15, %v442_v61  ;;  %v2647_v27 = vand.u32 15, %v443_v62  ;;  %v2650_v18 = vand.u32 15, %v174_v20  ;;  %v309_v46 = vshra.s32 %v2558_v53, 8 }
  0x1a   :  { %1765 = vrot.lane.b32.xlu0 %v74_v7, %s2386_s22  ;;  %v310_v45 = vshra.s32 %v2563_v54, 8  ;;  %v2655_v21 = vand.u32 15, %v175_v39  ;;  %v834_v56 = vshra.s32 %v2627_v2, 24  ;;  %v2659_v61 = vcvt.s32.f32 %v2289_v15 }
  0x1b   :  { %1909 = vrot.lane.b32.xlu1 %v74_v7, %s2387_s23  ;;  %v2661_v62 = vcvt.s32.f32 %v2290_v14  ;;  %v2663_v0 = vand.u32 15, %v689_v11  ;;  %v2665_v20 = vand.u32 15, %v690_v13  ;;  %v445_v39 = vshra.s32 %v2563_v54, 12  ;;  %v2679_v14 = vld [vmem:[%s5056_s1 + $0x48] sm:$0xff] }
  0x1c   :  { %v2682_v11 = vand.u32 15, %v309_v46  ;;  %v2684_v13 = vand.u32 15, %v310_v45  ;;  %v2690_v32 = vand.u32 15, %v834_v56  ;;  %v177_v41 = vshra.s32 %v2627_v2, 4 }
  0x1d   :  { %5180 = vst [vmem:[#allocation17_spill] sm:$0xff] %v2663_v0  ;;  %5181 = vst [vmem:[#allocation18_spill] sm:$0xff] %v2665_v20  ;;  %v691_v15 = vshra.s32 %v2674_v42, 20  ;;  %v692_v46 = vshra.s32 %v2679_v14, 20  ;;  %v2699_v36 = vand.u32 15, %v445_v39  ;;  %v2291_v54 = vshrl.u32 %v2622_v1, 28 }
  0x1e   :  { %1768 = vrot.lane.b32.xlu0 %v76_v8, %s2386_s22  ;;  %5182 = vst [vmem:[#allocation19_spill] sm:$0xff] %v2682_v11  ;;  %5183 = vst [vmem:[#allocation20_spill] sm:$0xff] %v2684_v13  ;;  %v312_v39 = vshra.s32 %v2627_v2, 8  ;;  %v835_v56 = vshra.s32 %v2674_v42, 24  ;;  %vm161_vm0 = vcmask 261120   ;;  %vm296_vm1 = vcmask 523520  }
  0x1f   :  { %2053 = vrot.lane.b32.xlu1 %v74_v7, %s2388_s24  ;;  %v2585_v7 = vand.u32 15, %v440_v51  ;;  %v2613_v51 = vand.u32 15, %v307_v16  ;;  %v2631_v16 = vand.u32 15, %v831_v24  ;;  %v833_v24 = vshra.s32 %v2622_v1, 24  ;;  %5185 = vst [vmem:[#allocation22_spill] sm:$0xff] %v2690_v32  ;;  %5187 = vst [vmem:[#allocation24_spill] sm:$0xff] %v2699_v36 }
  0x20   :  { %v2713_v5 = vand.u32 15, %v691_v15  ;;  %v2715_v34 = vand.u32 15, %v692_v46  ;;  %v2721_v13 = vcvt.s32.f32 %v2291_v54  ;;  %v446_v15 = vshra.s32 %v2622_v1, 12  ;;  %v2733_v32 = vld [vmem:[%s5056_s1 + $0x50] sm:$0xff]  ;;  %v2738_v54 = vld [vmem:[%s5056_s1 + $0x58] sm:$0xff] }
  0x21   :  { %v2688_v63 = vand.u32 15, %v833_v24  ;;  %v2292_v24 = vshrl.u32 %v2627_v2, 28  ;;  %v447_v46 = vshra.s32 %v2627_v2, 12  ;;  %v2741_v33 = vand.u32 15, %v312_v39 }
  0x22   :  { %1912 = vrot.lane.b32.xlu0 %v76_v8, %s2387_s23  ;;  %5190 = vst [vmem:[#allocation27_spill] sm:$0xff] %v2713_v5  ;;  %5191 = vst [vmem:[#allocation28_spill] sm:$0xff] %v2715_v34  ;;  %v694_v39 = vshra.s32 %v2738_v54, 20  ;;  %v2756_v36 = vand.u32 15, %v446_v15  ;;  %v314_v34 = vshra.s32 %v2679_v14, 8  ;;  %v838_v15 = vshra.s32 %v2738_v54, 24 }
  0x23   :  { %2056 = vrot.lane.b32.xlu1 %v76_v8, %s2388_s24  ;;  %v2587_v8 = vand.u32 15, %v441_v52  ;;  %v2615_v52 = vand.u32 15, %v308_v17  ;;  %v444_v17 = vshra.s32 %v2558_v53, 12  ;;  %v176_v53 = vshra.s32 %v2622_v1, 4  ;;  %5184 = vst [vmem:[#allocation21_spill] sm:$0xff] %v2688_v63  ;;  %5192 = vst [vmem:[#allocation29_spill] sm:$0xff] %v2721_v13 }
  0x24   :  { %v2723_v3 = vcvt.s32.f32 %v2292_v24  ;;  %5195 = vst [vmem:[#allocation32_spill] sm:$0xff] %v2741_v33  ;;  %v2294_v13 = vshrl.u32 %v2679_v14, 28  ;;  %v693_v24 = vshra.s32 %v2733_v32, 20  ;;  %5198 = vst [vmem:[#allocation35_spill] sm:$0xff] %v2756_v36  ;;  %v448_v63 = vshra.s32 %v2674_v42, 12  ;;  %v2787_v5 = vld [vmem:[%s5056_s1 + $0x60] sm:$0xff] }
  0x25   :  { %v2697_v45 = vand.u32 15, %v444_v17  ;;  %v2705_v35 = vand.u32 15, %v176_v53  ;;  %v2710_v17 = vand.u32 15, %v177_v41  ;;  %v2747_v53 = vand.u32 15, %v835_v56 }
  0x26   :  { %1255 = vrot.lane.b32.xlu0 %v2479_v12, %s2386_s22  ;;  %5193 = vst [vmem:[#allocation30_spill] sm:$0xff] %v2723_v3  ;;  %v2293_v3 = vshrl.u32 %v2674_v42, 28  ;;  %v313_v41 = vshra.s32 %v2674_v42, 8  ;;  %v2775_v11 = vand.u32 15, %v693_v24  ;;  %vm431_vm2 = vcmask 785920  }
  0x27   :  { %1389 = vrot.lane.b32.xlu1 %v2479_v12, %s2387_s23  ;;  %5186 = vst [vmem:[#allocation23_spill] sm:$0xff] %v2697_v45  ;;  %5188 = vst [vmem:[#allocation25_spill] sm:$0xff] %v2705_v35  ;;  %v2758_v45 = vand.u32 15, %v447_v46  ;;  %vm566_vm3 = vcmask 1048320  }
  0x28   :  { %5189 = vst [vmem:[#allocation26_spill] sm:$0xff] %v2710_v17  ;;  %5196 = vst [vmem:[#allocation33_spill] sm:$0xff] %v2747_v53  ;;  %v837_v17 = vshra.s32 %v2733_v32, 24  ;;  %v2771_v46 = vcvt.s32.f32 %v2293_v3  ;;  %v2781_v33 = vand.u32 15, %v313_v41  ;;  %v2792_v3 = vld [vmem:[%s5056_s1 + $0x68] sm:$0xff]  ;;  %v449_v41 = vshra.s32 %v2679_v14, 12 }
  0x29   :  { %5199 = vst [vmem:[#allocation36_spill] sm:$0xff] %v2758_v45  ;;  %5204 = vst [vmem:[#allocation41_spill] sm:$0xff] %v2775_v11  ;;  %v696_v24 = vshra.s32 %v2792_v3, 20  ;;  %v316_v45 = vshra.s32 %v2738_v54, 8  ;;  %v450_v11 = vshra.s32 %v2733_v32, 12 }
  0x2a   :  { %1274 = vrot.lane.b32.xlu0 %v2501_v25, %s2386_s22  ;;  %5202 = vst [vmem:[#allocation39_spill] sm:$0xff] %v2771_v46  ;;  %5206 = vst [vmem:[#allocation43_spill] sm:$0xff] %v2781_v33  ;;  %v2799_v56 = vand.u32 15, %v837_v17  ;;  %v315_v17 = vshra.s32 %v2733_v32, 8  ;;  %v2296_v46 = vshrl.u32 %v2738_v54, 28 }
  0x2b   :  { %1523 = vrot.lane.b32.xlu1 %v2479_v12, %s2388_s24  ;;  %v836_v12 = vshra.s32 %v2679_v14, 24  ;;  %v2827_v33 = vand.u32 15, %v696_v24  ;;  %v451_v24 = vshra.s32 %v2738_v54, 12 }
  0x2c   :  { %5208 = vst [vmem:[#allocation45_spill] sm:$0xff] %v2799_v56  ;;  %v2834_v53 = vand.u32 15, %v315_v17 }
  0x2d   :  { %v2749_v35 = vand.u32 15, %v836_v12  ;;  %5215 = vst [vmem:[#allocation52_spill] sm:$0xff] %v2827_v33  ;;  %v453_v33 = vshra.s32 %v2792_v3, 12 }
  0x2e   :  { %1408 = vrot.lane.b32.xlu0 %v2501_v25, %s2387_s23  ;;  %5217 = vst [vmem:[#allocation54_spill] sm:$0xff] %v2834_v53 }
  0x2f   :  { %1542 = vrot.lane.b32.xlu1 %v2501_v25, %s2388_s24  ;;  %v311_v25 = vshra.s32 %v2622_v1, 8  ;;  %v179_v1 = vshra.s32 %v2679_v14, 4  ;;  %5197 = vst [vmem:[#allocation34_spill] sm:$0xff] %v2749_v35  ;;  %v2295_v14 = vshrl.u32 %v2733_v32, 28 }
  0x31   :  { %v2726_v6 = vand.u32 15, %v311_v25  ;;  %v178_v25 = vshra.s32 %v2674_v42, 4  ;;  %v2764_v2 = vand.u32 15, %v179_v1  ;;  %v2801_v42 = vand.u32 15, %v838_v15 }
  0x32   :  { %v180_v1 = vshra.s32 %v2733_v32, 4  ;;  %v839_v15 = vshra.s32 %v2787_v5, 24  ;;  %v2832_v35 = vcvt.s32.f32 %v2295_v14  ;;  %v183_v14 = vshra.s32 %v2792_v3, 4  ;;  %v2850_v32 = vld [vmem:[%s5056_s1 + $0x70] sm:$0xff] }
  0x33   :  { %5194 = vst [vmem:[#allocation31_spill] sm:$0xff] %v2726_v6  ;;  %v2762_v12 = vand.u32 15, %v178_v25  ;;  %5201 = vst [vmem:[#allocation38_spill] sm:$0xff] %v2764_v2  ;;  %v2773_v6 = vcvt.s32.f32 %v2294_v13  ;;  %v2777_v25 = vand.u32 15, %v694_v39  ;;  %v2796_v39 = vand.u32 15, %v314_v34 }
  0x34   :  { %5209 = vst [vmem:[#allocation46_spill] sm:$0xff] %v2801_v42  ;;  %v695_v13 = vshra.s32 %v2787_v5, 20  ;;  %v2810_v2 = vand.u32 15, %v448_v63  ;;  %v2821_v36 = vand.u32 15, %v180_v1  ;;  %5216 = vst [vmem:[#allocation53_spill] sm:$0xff] %v2832_v35  ;;  %v2859_v17 = vand.u32 15, %v839_v15 }
  0x35   :  { %5200 = vst [vmem:[#allocation37_spill] sm:$0xff] %v2762_v12  ;;  %5203 = vst [vmem:[#allocation40_spill] sm:$0xff] %v2773_v6  ;;  %v181_v6 = vshra.s32 %v2738_v54, 4  ;;  %v2815_v12 = vand.u32 15, %v449_v41  ;;  %v840_v41 = vshra.s32 %v2792_v3, 24  ;;  %v2864_v1 = vand.u32 15, %v450_v11 }
  0x36   :  { %5205 = vst [vmem:[#allocation42_spill] sm:$0xff] %v2777_v25  ;;  %5207 = vst [vmem:[#allocation44_spill] sm:$0xff] %v2796_v39  ;;  %v2825_v34 = vand.u32 15, %v695_v13  ;;  %v2840_v13 = vand.u32 15, %v316_v45  ;;  %v182_v39 = vshra.s32 %v2787_v5, 4  ;;  %v2855_v45 = vld [vmem:[%s5056_s1 + $0x78] sm:$0xff] }
  0x37   :  { %5210 = vst [vmem:[#allocation47_spill] sm:$0xff] %v2810_v2  ;;  %5211 = vst [vmem:[#allocation48_spill] sm:$0xff] %v2815_v12  ;;  %v2823_v63 = vand.u32 15, %v181_v6  ;;  %v2838_v6 = vcvt.s32.f32 %v2296_v46  ;;  %v2861_v42 = vand.u32 15, %v840_v41  ;;  %v2869_v35 = vand.u32 15, %v451_v24 }
  0x38   :  { %5212 = vst [vmem:[#allocation49_spill] sm:$0xff] %v2821_v36  ;;  %5214 = vst [vmem:[#allocation51_spill] sm:$0xff] %v2825_v34  ;;  %v2298_v36 = vshrl.u32 %v2792_v3, 28  ;;  %v697_v54 = vshra.s32 %v2850_v32, 20  ;;  %v698_v46 = vshra.s32 %v2855_v45, 20  ;;  %v2873_v15 = vand.u32 15, %v182_v39 }
  0x39   :  { %5213 = vst [vmem:[#allocation50_spill] sm:$0xff] %v2823_v63  ;;  %5218 = vst [vmem:[#allocation55_spill] sm:$0xff] %v2838_v6  ;;  %v2297_v63 = vshrl.u32 %v2787_v5, 28  ;;  %v2875_v41 = vand.u32 15, %v183_v14  ;;  %v317_v25 = vshra.s32 %v2787_v5, 8  ;;  %v318_v11 = vshra.s32 %v2792_v3, 8 }
  0x3a   :  { %5219 = vst [vmem:[#allocation56_spill] sm:$0xff] %v2840_v13  ;;  %5220 = vst [vmem:[#allocation57_spill] sm:$0xff] %v2859_v17  ;;  %v841_v6 = vshra.s32 %v2850_v32, 24  ;;  %v842_v24 = vshra.s32 %v2855_v45, 24  ;;  %v2886_v39 = vcvt.s32.f32 %v2298_v36  ;;  %v452_v14 = vshra.s32 %v2787_v5, 12 }
  0x3b   :  { %5221 = vst [vmem:[#allocation58_spill] sm:$0xff] %v2861_v42  ;;  %5222 = vst [vmem:[#allocation59_spill] sm:$0xff] %v2864_v1  ;;  %v2884_v34 = vcvt.s32.f32 %v2297_v63  ;;  %v2890_v2 = vand.u32 15, %v697_v54  ;;  %v2892_v56 = vand.u32 15, %v698_v46  ;;  %v2897_v17 = vand.u32 15, %v317_v25 }
  0x3c   :  { %5223 = vst [vmem:[#allocation60_spill] sm:$0xff] %v2869_v35  ;;  %5224 = vst [vmem:[#allocation61_spill] sm:$0xff] %v2873_v15  ;;  %v2899_v63 = vand.u32 15, %v318_v11  ;;  %v2901_v36 = vand.u32 15, %v841_v6  ;;  %v2903_v13 = vand.u32 15, %v842_v24  ;;  %v184_v5 = vshra.s32 %v2850_v32, 4 }
  0x3d   :  { %5225 = vst [vmem:[#allocation62_spill] sm:$0xff] %v2875_v41  ;;  %5226 = vst [vmem:[#allocation63_spill] sm:$0xff] %v2884_v34  ;;  %v185_v54 = vshra.s32 %v2855_v45, 4  ;;  %v2907_v46 = vand.u32 15, %v452_v14  ;;  %v2299_v3 = vshrl.u32 %v2850_v32, 28  ;;  %v319_v53 = vshra.s32 %v2850_v32, 8 }
  0x3e   :  { %5227 = vst [vmem:[#allocation64_spill] sm:$0xff] %v2886_v39  ;;  %5228 = vst [vmem:[#allocation65_spill] sm:$0xff] %v2890_v2  ;;  %v320_v42 = vshra.s32 %v2855_v45, 8  ;;  %v2914_v6 = vand.u32 15, %v453_v33  ;;  %v2300_v24 = vshrl.u32 %v2855_v45, 28  ;;  %v57_v14 = vld [vmem:[%s5056_s1 + $0x80] sm:$0xff] }
  0x3f   :  { %5229 = vst [vmem:[#allocation66_spill] sm:$0xff] %v2892_v56  ;;  %5230 = vst [vmem:[#allocation67_spill] sm:$0xff] %v2897_v17  ;;  %v58_v15 = vld [vmem:[%s5056_s1 + $0x88] sm:$0xff]  ;;  %v454_v25 = vshra.s32 %v2850_v32, 12  ;;  %v455_v11 = vshra.s32 %v2855_v45, 12  ;;  %v2929_v2 = vand.u32 15, %v184_v5 }
  0x40   :  { %5231 = vst [vmem:[#allocation68_spill] sm:$0xff] %v2899_v63  ;;  %5232 = vst [vmem:[#allocation69_spill] sm:$0xff] %v2901_v36  ;;  %v2931_v12 = vand.u32 15, %v185_v54  ;;  %v2934_v63 = vcvt.s32.f32 %v2299_v3  ;;  %v2936_v17 = vand.u32 15, %v319_v53  ;;  %v2938_v39 = vand.u32 15, %v320_v42  ;;  %v2952_v42 = vld [vmem:[%s5056_s1 + $0x90] sm:$0xff] }
  0x41   :  { %5233 = vst [vmem:[#allocation70_spill] sm:$0xff] %v2903_v13  ;;  %5234 = vst [vmem:[#allocation71_spill] sm:$0xff] %v2907_v46  ;;  %v2941_v34 = vcvt.s32.f32 %v2300_v24  ;;  %v1717_v45 = vshra.s32 %v57_v14, 20  ;;  %v1718_v33 = vshra.s32 %v58_v15, 20  ;;  %v2943_v36 = vand.u32 15, %v454_v25  ;;  %v2957_v25 = vld [vmem:[%s5056_s1 + $0x98] sm:$0xff] }
  0x42   :  { %5235 = vst [vmem:[#allocation72_spill] sm:$0xff] %v2914_v6  ;;  %5236 = vst [vmem:[#allocation73_spill] sm:$0xff] %v2929_v2  ;;  %v2945_v5 = vand.u32 15, %v455_v11  ;;  %v1861_v54 = vshra.s32 %v57_v14, 24  ;;  %v1862_v56 = vshra.s32 %v58_v15, 24  ;;  %v1207_v53 = vshra.s32 %v57_v14, 4 }
  0x43   :  { %5237 = vst [vmem:[#allocation74_spill] sm:$0xff] %v2931_v12  ;;  %5238 = vst [vmem:[#allocation75_spill] sm:$0xff] %v2934_v63  ;;  %v1208_v63 = vshra.s32 %v58_v15, 4  ;;  %v1719_v41 = vshra.s32 %v2952_v42, 20  ;;  %v1720_v3 = vshra.s32 %v2957_v25, 20  ;;  %v2963_v32 = vand.u32 15, %v1717_v45 }
  0x44   :  { %5239 = vst [vmem:[#allocation76_spill] sm:$0xff] %v2936_v17  ;;  %5240 = vst [vmem:[#allocation77_spill] sm:$0xff] %v2938_v39  ;;  %v2965_v12 = vand.u32 15, %v1718_v33  ;;  %v2301_v2 = vshrl.u32 %v57_v14, 28  ;;  %v2969_v13 = vand.u32 15, %v1861_v54  ;;  %v2971_v35 = vand.u32 15, %v1862_v56 }
  0x45   :  { %5241 = vst [vmem:[#allocation78_spill] sm:$0xff] %v2941_v34  ;;  %5242 = vst [vmem:[#allocation79_spill] sm:$0xff] %v2943_v36  ;;  %v2302_v34 = vshrl.u32 %v58_v15, 28  ;;  %v2973_v11 = vand.u32 15, %v1207_v53  ;;  %v2975_v24 = vand.u32 15, %v1208_v63  ;;  %v1341_v39 = vshra.s32 %v57_v14, 8 }
  0x46   :  { %5243 = vst [vmem:[#allocation80_spill] sm:$0xff] %v2945_v5  ;;  %5244 = vst [vmem:[#allocation81_spill] sm:$0xff] %v2952_v42  ;;  %v1342_v17 = vshra.s32 %v58_v15, 8  ;;  %v2977_v45 = vand.u32 15, %v1719_v41  ;;  %v2979_v33 = vand.u32 15, %v1720_v3  ;;  %v1863_v1 = vshra.s32 %v2952_v42, 24 }
  0x47   :  { %5245 = vst [vmem:[#allocation82_spill] sm:$0xff] %v2957_v25  ;;  %5246 = vst [vmem:[#allocation83_spill] sm:$0xff] %v2963_v32  ;;  %v1864_v6 = vshra.s32 %v2957_v25, 24  ;;  %v2985_v56 = vcvt.s32.f32 %v2301_v2  ;;  %v2987_v53 = vcvt.s32.f32 %v2302_v34  ;;  %v2991_v41 = vand.u32 15, %v1341_v39  ;;  %v5353_v32 = vld [vmem:[#allocation46_spill] sm:$0xff] }
  0x48   :  { %5247 = vst [vmem:[#allocation84_spill] sm:$0xff] %v2965_v12  ;;  %5248 = vst [vmem:[#allocation85_spill] sm:$0xff] %v2969_v13  ;;  %v2993_v3 = vand.u32 15, %v1342_v17  ;;  %v2995_v36 = vand.u32 15, %v1863_v1  ;;  %v1475_v0 = vshra.s32 %v57_v14, 12  ;;  %v1476_v46 = vshra.s32 %v58_v15, 12 }
  0x49   :  { %5249 = vst [vmem:[#allocation86_spill] sm:$0xff] %v2971_v35  ;;  %5250 = vst [vmem:[#allocation87_spill] sm:$0xff] %v2973_v11  ;;  %v2997_v20 = vand.u32 15, %v1864_v6  ;;  %v575_v17 = vshra.s32 %v2470_v9, 16  ;;  %v576_v1 = vshra.s32 %v2475_v10, 16  ;;  %v2303_v2 = vshrl.u32 %v2952_v42, 28 }
  0x4a   :  { %5251 = vst [vmem:[#allocation88_spill] sm:$0xff] %v2975_v24  ;;  %5252 = vst [vmem:[#allocation89_spill] sm:$0xff] %v2977_v45  ;;  %v3005_v39 = vand.u32 15, %v1476_v46  ;;  %v2304_v34 = vshrl.u32 %v2957_v25, 28  ;;  %v5269_v10 = vcvt.s32.f32 %v2547_v48  ;;  %v5336_v24 = vld [vmem:[#allocation37_spill] sm:$0xff] }
  0x4b   :  { %5253 = vst [vmem:[#allocation90_spill] sm:$0xff] %v2979_v33  ;;  %5254 = vst [vmem:[#allocation91_spill] sm:$0xff] %v2985_v56  ;;  %v3017_v33 = vand.u32 15, %v575_v17  ;;  %v3019_v45 = vand.u32 15, %v576_v1  ;;  %v5270_v1 = vcvt.s32.f32 %v2602_v28  ;;  %v5351_v12 = vld [vmem:[#allocation45_spill] sm:$0xff] }
  0x4c   :  { %5255 = vst [vmem:[#allocation92_spill] sm:$0xff] %v2987_v53  ;;  %5256 = vst [vmem:[#allocation93_spill] sm:$0xff] %v2991_v41  ;;  %v3003_v53 = vand.u32 15, %v1475_v0 }
  0x4d   :  { %5257 = vst [vmem:[#allocation94_spill] sm:$0xff] %v2993_v3  ;;  %5258 = vst [vmem:[#allocation95_spill] sm:$0xff] %v2995_v36 }
  0x4e   :  { %5259 = vst [vmem:[#allocation96_spill] sm:$0xff] %v2997_v20  ;;  %5260 = vst [vmem:[#allocation97_spill] sm:$0xff] %v3003_v53  ;;  %v5266_v53 = vcvt.s32.f32 %v2496_v22  ;;  %v5271_v22 = vcvt.s32.f32 %v2604_v31 }
  0x4f   :  { %5261 = vst [vmem:[#allocation98_spill] sm:$0xff] %v3005_v39  ;;  %5262 = vst [vmem:[#allocation99_spill] sm:$0xff] %v3017_v33 }
  0x50   :  { %5263 = vst [vmem:[#allocation100_spill] sm:$0xff] %v3019_v45 }
  0x74   :  { %v732_v6 = vpop.permute.xlu0 %731 }
  0x75   :  { %v735_v5 = vpop.permute.xlu1 %734  ;;  %v733_v54 = vrot.slane %v732_v6, 1  ;;  %v3027_v6 = vcvt.s32.f32 %v2303_v2  ;;  %v5267_v2 = vcvt.s32.f32 %v2507_v26 }
  0x76   :  { %v736_v63 = vrot.slane %v735_v5, 1  ;;  %v3029_v5 = vcvt.s32.f32 %v2304_v34 }
  0x77   :  { %v3022_v14 = vrot.slane %v733_v54, %v2433_v4  ;;  %5264 = vst [vmem:[#allocation101_spill] sm:$0xff] %v3027_v6  ;;  %v5273_v6 = vcvt.s32.f32 %v2513_v30  ;;  %v5274_v30 = vcvt.s32.f32 %v2575_v59  ;;  %v5276_v59 = vcvt.s32.f32 %v2631_v16 }
  0x78   :  { %v3025_v15 = vrot.slane %v736_v63, %v2433_v4  ;;  %5265 = vst [vmem:[#allocation102_spill] sm:$0xff] %v3029_v5  ;;  %v876_v0 = vpop.permute.xlu0 %875  ;;  %v5268_v5 = vcvt.s32.f32 %v2545_v47  ;;  %v5279_v16 = vcvt.s32.f32 %v2567_v57 }
  0x79   :  { %v1020_v46 = vpop.permute.xlu1 %1019  ;;  %v877_v39 = vrot.slane %v876_v0, 1  ;;  %v742_v63 = vmul.f32 %v3022_v14, %v5266_v53  ;;  %v743_v34 = vmul.f32 %v3022_v14, %v5267_v2  ;;  %v745_v17 = vmul.f32 %v3022_v14, %v5269_v10 }
  0x7a   :  { %v1021_v54 = vrot.slane %v1020_v46, 1  ;;  %v744_v9 = vmul.f32 %v3022_v14, %v5268_v5  ;;  %v746_v0 = vmul.f32 %v3022_v14, %v5270_v1  ;;  %v747_v53 = vmul.f32 %v3022_v14, %v5271_v22 }
  0x7b   :  { %v3054_v26 = vrot.slane %v877_v39, %v2433_v4  ;;  %v763_v47 = vadd.f32 %v3025_v15, %v742_v63  ;;  %v764_v48 = vadd.f32 %v3025_v15, %v743_v34  ;;  %v3065_v1 = vadd.f32 %v3025_v15, %v745_v17 }
  0x7c   :  { %v3057_v46 = vrot.slane %v1021_v54, %v2433_v4  ;;  %v879_v5 = vpop.permute.xlu0 %878  ;;  %v3062_v28 = vadd.f32 %v3025_v15, %v744_v9  ;;  %v3068_v31 = vadd.f32 %v3025_v15, %v746_v0  ;;  %v3071_v39 = vadd.f32 %v3025_v15, %v747_v53 }
  0x7d   :  { %v1023_v10 = vpop.permute.xlu1 %1022  ;;  %v880_v54 = vrot.slane %v879_v5, 1  ;;  %v779_v22 = vpack.c.bf16 %v764_v48, %v763_v47  ;;  %v5272_v63 = vcvt.s32.f32 %v2511_v29  ;;  %v887_v9 = vmul.f32 %v3054_v26, %v5273_v6 }
  0x7e   :  { %v1024_v2 = vrot.slane %v1023_v10, 1  ;;  %v1030_v17 = vmul.f32 %v3057_v46, %v2549_v49  ;;  %v1031_v0 = vmul.f32 %v3057_v46, %v2551_v50  ;;  %v888_v6 = vmul.f32 %v3054_v26, %v5274_v30 }
  0x7f   :  { %v886_v34 = vmul.f32 %v3054_v26, %v5272_v63  ;;  %v3086_v5 = vrot.slane %v880_v54, %v2433_v4  ;;  %795 = vrot.lane.b32.xlu0 %v779_v22, %s2388_s24  ;;  %v5275_v49 = vcvt.s32.f32 %v2577_v60  ;;  %v1032_v10 = vmul.f32 %v3057_v46, %v2609_v43 }
  0x80   :  { %v3089_v29 = vrot.slane %v1024_v2, %v2433_v4  ;;  %v3098_v50 = vpop.permute.xlu0 %218  ;;  %v1033_v54 = vmul.f32 %v3057_v46, %v2611_v44  ;;  %v890_v22 = vmul.f32 %v3054_v26, %v5276_v59  ;;  %v5277_v43 = vcvt.s32.f32 %v2529_v37 }
  0x81   :  { %v889_v47 = vmul.f32 %v3054_v26, %v5275_v49  ;;  %v3100_v48 = vpop.permute.xlu1 %353  ;;  %v907_v60 = vadd.f32 %v3086_v5, %v886_v34  ;;  %v908_v63 = vadd.f32 %v3086_v5, %v887_v9  ;;  %v5278_v44 = vcvt.s32.f32 %v2531_v38 }
  0x82   :  { %v1051_v30 = vadd.f32 %v3089_v29, %v1030_v17  ;;  %v1052_v49 = vadd.f32 %v3089_v29, %v1031_v0  ;;  %v221_v53 = vmul.f32 %v3098_v50, %v5277_v43  ;;  %v356_v59 = vmul.f32 %v3100_v48, %v5279_v16 }
  0x83   :  { %v222_v2 = vmul.f32 %v3098_v50, %v5278_v44  ;;  %v5280_v34 = vcvt.s32.f32 %v2569_v58  ;;  %v923_v45 = vpack.c.bf16 %v908_v63, %v907_v60  ;;  %v3128_v0 = vadd.f32 %v3086_v5, %v888_v6 }
  0x84   :  { %v1067_v17 = vpack.c.bf16 %v1052_v49, %v1051_v30  ;;  %v3131_v37 = vadd.f32 %v3086_v5, %v889_v47  ;;  %v3133_v43 = vpop.permute.xlu0 %237  ;;  %v3138_v57 = vadd.f32 %v3089_v29, %v1032_v10  ;;  %v3141_v44 = vadd.f32 %v3089_v29, %v1033_v54 }
  0x85   :  { %v357_v9 = vmul.f32 %v3100_v48, %v5280_v34  ;;  %v3135_v38 = vpop.permute.xlu1 %488  ;;  %v5281_v58 = vcvt.s32.f32 %v2596_v19  ;;  %v5282_v6 = vcvt.s32.f32 %v2598_v23  ;;  %939 = vrot.lane.b32.xlu0 %v923_v45, %s2387_s23  ;;  %v240_v47 = vadd.f32 %v3133_v43, %v221_v53 }
  0x86   :  { %v241_v30 = vadd.f32 %v3133_v43, %v222_v2  ;;  %v924_v10 = vpack.c.bf16 %v3131_v37, %v3128_v0  ;;  %v5283_v54 = vcvt.s32.f32 %v2585_v7  ;;  %v5284_v19 = vcvt.s32.f32 %v2587_v8 }
  0x87   :  { %v223_v60 = vmul.f32 %v3098_v50, %v5281_v58  ;;  %v224_v63 = vmul.f32 %v3098_v50, %v5282_v6  ;;  %v5285_v34 = vcvt.s32.f32 %v2613_v51  ;;  %v5286_v0 = vcvt.s32.f32 %v2615_v52 }
  0x88   :  { %v491_v49 = vmul.f32 %v3135_v38, %v5283_v54  ;;  %v492_v16 = vmul.f32 %v3135_v38, %v5284_v19  ;;  %v256_v2 = vpack.c.bf16 %v241_v30, %v240_v47  ;;  %v5287_v37 = vcvt.s32.f32 %v2636_v40  ;;  %v3177_v6 = vpop.permute.xlu0 %372 }
  0x89   :  { %v3163_v45 = vadd.f32 %v3133_v43, %v223_v60  ;;  %v3166_v53 = vadd.f32 %v3133_v43, %v224_v63  ;;  %v358_v7 = vmul.f32 %v3100_v48, %v5285_v34  ;;  %v359_v8 = vmul.f32 %v3100_v48, %v5286_v0  ;;  %v3179_v60 = vpop.permute.xlu1 %507  ;;  %1083 = vrot.lane.b32.xlu0 %v1067_v17, %s2386_s22  ;;  %v5312_v0 = vld [vmem:[#allocation25_spill] sm:$0xff] }
  0x8a   :  { %v891_v58 = vmul.f32 %v3054_v26, %v5287_v37  ;;  %v3184_v47 = vadd.f32 %v3086_v5, %v890_v22  ;;  %v5288_v51 = vcvt.s32.f32 %v2645_v55  ;;  %v5289_v30 = vcvt.s32.f32 %v2647_v27  ;;  %272 = vrot.lane.b32.xlu1 %v256_v2, %s2388_s24 }
  0x8b   :  { %v257_v63 = vpack.c.bf16 %v3166_v53, %v3163_v45  ;;  %v375_v54 = vadd.f32 %v3177_v6, %v356_v59  ;;  %v376_v19 = vadd.f32 %v3177_v6, %v357_v9  ;;  %v510_v45 = vadd.f32 %v3179_v60, %v491_v49 }
  0x8c   :  { %v493_v52 = vmul.f32 %v3135_v38, %v5288_v51  ;;  %v494_v40 = vmul.f32 %v3135_v38, %v5289_v30  ;;  %v5290_v22 = vshra.s32 %v2952_v42, 4  ;;  %v511_v55 = vadd.f32 %v3179_v60, %v492_v16  ;;  %v3225_v37 = vpop.permute.xlu0 %1765  ;;  %v5314_v42 = vld [vmem:[#allocation26_spill] sm:$0xff] }
  0x8d   :  { %v3203_v27 = vadd.f32 %v3177_v6, %v358_v7  ;;  %v3206_v34 = vadd.f32 %v3177_v6, %v359_v8  ;;  %v3209_v17 = vadd.f32 %v3086_v5, %v891_v58  ;;  %v391_v59 = vpack.c.bf16 %v376_v19, %v375_v54  ;;  %v5294_v54 = vld [vmem:[#allocation17_spill] sm:$0xff] }
  0x8e   :  { %v3199_v53 = vand.u32 15, %v5290_v22  ;;  %v3212_v9 = vadd.f32 %v3179_v60, %v493_v52  ;;  %v3215_v49 = vadd.f32 %v3179_v60, %v494_v40  ;;  %v1034_v2 = vmul.f32 %v3057_v46, %v2659_v61  ;;  %v5296_v22 = vld [vmem:[#allocation18_spill] sm:$0xff] }
  0x8f   :  { %v526_v16 = vpack.c.bf16 %v511_v55, %v510_v45  ;;  %v392_v7 = vpack.c.bf16 %v3206_v34, %v3203_v27  ;;  %v1035_v8 = vmul.f32 %v3057_v46, %v2661_v62  ;;  %v5291_v58 = vpack.c.bf16 %v3065_v1, %v3062_v28  ;;  %407 = vrot.lane.b32.xlu1 %v391_v59, %s2387_s23  ;;  %v5298_v34 = vld [vmem:[#allocation19_spill] sm:$0xff] }
  0x90   :  { %v3235_v51 = vadd.f32 %v3089_v29, %v1034_v2  ;;  %v5292_v52 = vcvt.s32.f32 %v2650_v18  ;;  %v5293_v28 = vcvt.s32.f32 %v2655_v21  ;;  %v5295_v19 = vcvt.s32.f32 %v5294_v54  ;;  %v3300_v62 = vpop.permute.xlu0 %1768 }
  0x91   :  { %797 = vrot.lane.b32.xlu0 %v5291_v58, %s2388_s24  ;;  %v3242_v40 = vadd.f32 %v3089_v29, %v1035_v8  ;;  %v5297_v55 = vcvt.s32.f32 %v5296_v22  ;;  %v5299_v59 = vcvt.s32.f32 %v5298_v34  ;;  %v5300_v8 = vld [vmem:[#allocation20_spill] sm:$0xff]  ;;  %v3276_v34 = vpop.permute.xlu1 %1909  ;;  %v5313_v23 = vcvt.s32.f32 %v5312_v0 }
  0x92   :  { %v225_v30 = vmul.f32 %v3098_v50, %v5292_v52  ;;  %v226_v1 = vmul.f32 %v3098_v50, %v5293_v28  ;;  %v748_v45 = vmul.f32 %v3022_v14, %v5295_v19  ;;  %v5301_v58 = vcvt.s32.f32 %v5300_v8  ;;  %v5302_v52 = vld [vmem:[#allocation21_spill] sm:$0xff] }
  0x93   :  { %v749_v27 = vmul.f32 %v3022_v14, %v5297_v55  ;;  %v360_v2 = vmul.f32 %v3100_v48, %v5299_v59  ;;  %v5303_v28 = vcvt.s32.f32 %v5302_v52  ;;  %542 = vrot.lane.b32.xlu1 %v526_v16, %s2386_s22  ;;  %v5308_v52 = vld [vmem:[#allocation24_spill] sm:$0xff] }
  0x94   :  { %v3254_v18 = vadd.f32 %v3133_v43, %v225_v30  ;;  %v361_v21 = vmul.f32 %v3100_v48, %v5301_v58  ;;  %v3268_v22 = vadd.f32 %v3133_v43, %v226_v1  ;;  %v3271_v30 = vadd.f32 %v3025_v15, %v748_v45  ;;  %v5304_v1 = vld [vmem:[#allocation22_spill] sm:$0xff]  ;;  %v3399_v41 = vpop.permute.xlu0 %1912 }
  0x95   :  { %v892_v54 = vmul.f32 %v3054_v26, %v5303_v28  ;;  %v3274_v55 = vadd.f32 %v3025_v15, %v749_v27  ;;  %941 = vrot.lane.b32.xlu0 %v924_v10, %s2387_s23  ;;  %v3281_v59 = vadd.f32 %v3177_v6, %v360_v2  ;;  %v5305_v58 = vcvt.s32.f32 %v5304_v1  ;;  %v5306_v2 = vld [vmem:[#allocation23_spill] sm:$0xff]  ;;  %v5310_v10 = vld [vmem:[#allocation29_spill] sm:$0xff] }
  0x96   :  { %v3284_v8 = vadd.f32 %v3177_v6, %v361_v21  ;;  %v5307_v28 = vcvt.s32.f32 %v5306_v2  ;;  %v5309_v27 = vcvt.s32.f32 %v5308_v52  ;;  %v5311_v2 = vld [vmem:[#allocation30_spill] sm:$0xff]  ;;  %v227_v1 = vmul.f32 %v3098_v50, %v5313_v23 }
  0x97   :  { %v893_v45 = vmul.f32 %v3054_v26, %v5305_v58  ;;  %v3295_v16 = vadd.f32 %v3086_v5, %v892_v54  ;;  %v1036_v54 = vmul.f32 %v3057_v46, %v5310_v10  ;;  %v5316_v52 = vpack.c.bf16 %v3141_v44, %v3138_v57  ;;  %274 = vrot.lane.b32.xlu1 %v257_v63, %s2388_s24  ;;  %v5317_v44 = vld [vmem:[#allocation27_spill] sm:$0xff] }
  0x98   :  { %v495_v21 = vmul.f32 %v3135_v38, %v5307_v28  ;;  %v496_v19 = vmul.f32 %v3135_v38, %v5309_v27  ;;  %v1037_v28 = vmul.f32 %v3057_v46, %v5311_v2  ;;  %v5318_v63 = vcvt.s32.f32 %v5317_v44 }
  0x99   :  { %v3305_v58 = vadd.f32 %v3086_v5, %v893_v45  ;;  %v5315_v45 = vcvt.s32.f32 %v5314_v42  ;;  %1085 = vrot.lane.b32.xlu0 %v5316_v52, %s2386_s22  ;;  %v3334_v0 = vadd.f32 %v3089_v29, %v1036_v54  ;;  %v5319_v54 = vld [vmem:[#allocation28_spill] sm:$0xff]  ;;  %v5321_v42 = vld [vmem:[#allocation31_spill] sm:$0xff] }
  0x9a   :  { %v3313_v61 = vadd.f32 %v3179_v60, %v495_v21  ;;  %v3331_v10 = vadd.f32 %v3179_v60, %v496_v19  ;;  %v3338_v23 = vadd.f32 %v3089_v29, %v1037_v28  ;;  %v3341_v21 = vadd.f32 %v3133_v43, %v227_v1  ;;  %v5323_v1 = vld [vmem:[#allocation32_spill] sm:$0xff] }
  0x9b   :  { %v228_v33 = vmul.f32 %v3098_v50, %v5315_v45  ;;  %v750_v2 = vmul.f32 %v3022_v14, %v5318_v63  ;;  %v5320_v45 = vcvt.s32.f32 %v5319_v54  ;;  %v5322_v28 = vcvt.s32.f32 %v5321_v42  ;;  %v5325_v54 = vld [vmem:[#allocation33_spill] sm:$0xff]  ;;  %v3370_v42 = vpop.permute.xlu1 %2053  ;;  %409 = vrot.lane.b32.xlu1 %v392_v7, %s2387_s23 }
  0x9c   :  { %v5324_v20 = vcvt.s32.f32 %v5323_v1  ;;  %v5326_v36 = vcvt.s32.f32 %v5325_v54  ;;  %v5328_v54 = vld [vmem:[#allocation34_spill] sm:$0xff] }
  0x9d   :  { %v3344_v57 = vadd.f32 %v3133_v43, %v228_v33  ;;  %v751_v52 = vmul.f32 %v3022_v14, %v5320_v45  ;;  %v362_v27 = vmul.f32 %v3100_v48, %v5322_v28  ;;  %v3365_v19 = vadd.f32 %v3025_v15, %v750_v2 }
  0x9e   :  { %v363_v33 = vmul.f32 %v3100_v48, %v5324_v20  ;;  %v894_v45 = vmul.f32 %v3054_v26, %v5326_v36  ;;  %v5327_v28 = vpack.c.bf16 %v3071_v39, %v3068_v31  ;;  %v5329_v63 = vcvt.s32.f32 %v5328_v54  ;;  %v5330_v39 = vld [vmem:[#allocation35_spill] sm:$0xff]  ;;  %v5335_v36 = vld [vmem:[#allocation40_spill] sm:$0xff] }
  0x9f   :  { %v3378_v20 = vadd.f32 %v3025_v15, %v751_v52  ;;  %v3381_v1 = vadd.f32 %v3177_v6, %v362_v27  ;;  %v5331_v7 = vcvt.s32.f32 %v5330_v39  ;;  %v1039_v39 = vmul.f32 %v3057_v46, %v5335_v36 }
  0xa0   :  { %799 = vrot.lane.b32.xlu0 %v5327_v28, %s2388_s24  ;;  %v3384_v2 = vadd.f32 %v3177_v6, %v363_v33  ;;  %v895_v44 = vmul.f32 %v3054_v26, %v5329_v63  ;;  %v3391_v31 = vadd.f32 %v3086_v5, %v894_v45  ;;  %v5332_v28 = vld [vmem:[#allocation36_spill] sm:$0xff]  ;;  %v5334_v63 = vld [vmem:[#allocation39_spill] sm:$0xff]  ;;  %v5337_v33 = vcvt.s32.f32 %v5336_v24 }
  0xa1   :  { %v497_v52 = vmul.f32 %v3135_v38, %v5331_v7  ;;  %v5333_v3 = vcvt.s32.f32 %v5332_v28  ;;  %v1038_v45 = vmul.f32 %v3057_v46, %v5334_v63  ;;  %v5338_v63 = vpack.c.bf16 %v3209_v17, %v3184_v47  ;;  %v5347_v17 = vld [vmem:[#allocation43_spill] sm:$0xff] }
  0xa2   :  { %v3410_v7 = vadd.f32 %v3086_v5, %v895_v44  ;;  %v229_v11 = vmul.f32 %v3098_v50, %v5337_v33  ;;  %v5339_v44 = vpack.c.bf16 %v3215_v49, %v3212_v9  ;;  %v5343_v49 = vld [vmem:[#allocation41_spill] sm:$0xff]  ;;  %v5348_v56 = vcvt.s32.f32 %v5347_v17 }
  0xa3   :  { %v498_v27 = vmul.f32 %v3135_v38, %v5333_v3  ;;  %v3413_v28 = vadd.f32 %v3179_v60, %v497_v52  ;;  %v3430_v36 = vadd.f32 %v3089_v29, %v1038_v45  ;;  %v3433_v52 = vadd.f32 %v3089_v29, %v1039_v39 }
  0xa4   :  { %943 = vrot.lane.b32.xlu0 %v5338_v63, %s2387_s23  ;;  %544 = vrot.lane.b32.xlu1 %v5339_v44, %s2386_s22  ;;  %v3444_v9 = vadd.f32 %v3133_v43, %v229_v11  ;;  %v5344_v45 = vcvt.s32.f32 %v5343_v49  ;;  %v3449_v63 = vpop.permute.xlu1 %2056  ;;  %v364_v11 = vmul.f32 %v3100_v48, %v5348_v56  ;;  %v5352_v44 = vcvt.s32.f32 %v5351_v12 }
  0xa5   :  { %v3416_v3 = vadd.f32 %v3179_v60, %v498_v27  ;;  %5340 = vst [vmem:[#allocation17_spill] sm:$0xff] %v3430_v36  ;;  %v5341_v27 = vld [vmem:[#allocation38_spill] sm:$0xff]  ;;  %v5354_v36 = vcvt.s32.f32 %v5353_v32  ;;  %v5356_v56 = vpack.c.bf16 %v3268_v22, %v3254_v18  ;;  %v5358_v18 = vld [vmem:[#allocation47_spill] sm:$0xff] }
  0xa6   :  { %v5342_v24 = vcvt.s32.f32 %v5341_v27  ;;  %v752_v39 = vmul.f32 %v3022_v14, %v5344_v45  ;;  %v5349_v45 = vld [vmem:[#allocation44_spill] sm:$0xff]  ;;  %v3488_v32 = vadd.f32 %v3177_v6, %v364_v11  ;;  %v5359_v22 = vcvt.s32.f32 %v5358_v18 }
  0xa7   :  { %v5350_v35 = vcvt.s32.f32 %v5349_v45 }
  0xa8   :  { %v230_v33 = vmul.f32 %v3098_v50, %v5342_v24  ;;  %v5345_v24 = vld [vmem:[#allocation42_spill] sm:$0xff]  ;;  %v3463_v49 = vadd.f32 %v3025_v15, %v752_v39  ;;  %276 = vrot.lane.b32.xlu1 %v5356_v56, %s2388_s24  ;;  %v499_v39 = vmul.f32 %v3135_v38, %v5359_v22  ;;  %v5363_v56 = vld [vmem:[#allocation55_spill] sm:$0xff] }
  0xa9   :  { %v5346_v47 = vcvt.s32.f32 %v5345_v24  ;;  %v365_v13 = vmul.f32 %v3100_v48, %v5350_v35  ;;  %v897_v24 = vmul.f32 %v3054_v26, %v5354_v36  ;;  %v5381_v36 = vld [vmem:[#allocation57_spill] sm:$0xff] }
  0xaa   :  { %v3454_v27 = vadd.f32 %v3133_v43, %v230_v33  ;;  %v896_v33 = vmul.f32 %v3054_v26, %v5352_v44  ;;  %v5360_v44 = vld [vmem:[#allocation48_spill] sm:$0xff]  ;;  %v3517_v22 = vadd.f32 %v3179_v60, %v499_v39 }
  0xab   :  { %v753_v54 = vmul.f32 %v3022_v14, %v5346_v47  ;;  %v5355_v47 = vpack.c.bf16 %v3242_v40, %v3235_v51  ;;  %v3492_v17 = vadd.f32 %v3177_v6, %v365_v13  ;;  %v3498_v40 = vadd.f32 %v3086_v5, %v897_v24 }
  0xac   :  { %v3495_v51 = vadd.f32 %v3086_v5, %v896_v33  ;;  %v5361_v11 = vcvt.s32.f32 %v5360_v44  ;;  %v1041_v33 = vmul.f32 %v3057_v46, %v5363_v56  ;;  %5364 = vst [vmem:[#allocation19_spill] sm:$0xff] %v3517_v22  ;;  %v5382_v22 = vcvt.s32.f32 %v5381_v36 }
  0xad   :  { %1087 = vrot.lane.b32.xlu0 %v5355_v47, %s2386_s22  ;;  %v3485_v12 = vadd.f32 %v3025_v15, %v753_v54  ;;  %v5362_v47 = vld [vmem:[#allocation53_spill] sm:$0xff] }
  0xae   :  { %5357 = vst [vmem:[#allocation18_spill] sm:$0xff] %v3495_v51  ;;  %v500_v45 = vmul.f32 %v3135_v38, %v5361_v11  ;;  %v1040_v13 = vmul.f32 %v3057_v46, %v5362_v47  ;;  %v5365_v54 = vld [vmem:[#allocation49_spill] sm:$0xff]  ;;  %v5367_v11 = vpack.c.bf16 %v3274_v55, %v3271_v30  ;;  %v5368_v47 = vpack.c.bf16 %v3284_v8, %v3281_v59  ;;  %v5370_v30 = vld [vmem:[#allocation50_spill] sm:$0xff]  ;;  %v5372_v8 = vld [vmem:[#allocation51_spill] sm:$0xff] }
  0xaf   :  { %v5366_v35 = vcvt.s32.f32 %v5365_v54  ;;  %v3537_v54 = vadd.f32 %v3089_v29, %v1041_v33  ;;  %v5371_v55 = vcvt.s32.f32 %v5370_v30  ;;  %v5376_v30 = vld [vmem:[#allocation54_spill] sm:$0xff] }
  0xb0   :  { %411 = vrot.lane.b32.xlu1 %v5368_v47, %s2387_s23  ;;  %v3531_v56 = vadd.f32 %v3179_v60, %v500_v45  ;;  %v3534_v39 = vadd.f32 %v3089_v29, %v1040_v13  ;;  %v5373_v45 = vcvt.s32.f32 %v5372_v8  ;;  %v5374_v13 = vld [vmem:[#allocation52_spill] sm:$0xff] }
  0xb1   :  { %v231_v44 = vmul.f32 %v3098_v50, %v5366_v35  ;;  %801 = vrot.lane.b32.xlu0 %v5367_v11, %s2388_s24  ;;  %v5369_v35 = vshra.s32 %v2957_v25, 4  ;;  %v232_v11 = vmul.f32 %v3098_v50, %v5371_v55  ;;  %v5375_v24 = vcvt.s32.f32 %v5374_v13 }
  0xb2   :  { %v754_v47 = vmul.f32 %v3022_v14, %v5373_v45  ;;  %v5377_v25 = vcvt.s32.f32 %v5376_v30  ;;  %v5394_v30 = vld [vmem:[#allocation63_spill] sm:$0xff] }
  0xb3   :  { %v3541_v18 = vand.u32 15, %v5369_v35  ;;  %v3547_v59 = vadd.f32 %v3133_v43, %v231_v44  ;;  %v755_v33 = vmul.f32 %v3022_v14, %v5375_v24  ;;  %v5378_v44 = vld [vmem:[#allocation56_spill] sm:$0xff]  ;;  %v3566_v45 = vadd.f32 %v3133_v43, %v232_v11 }
  0xb4   :  { %v366_v55 = vmul.f32 %v3100_v48, %v5377_v25  ;;  %v5379_v51 = vcvt.s32.f32 %v5378_v44  ;;  %v3569_v13 = vadd.f32 %v3025_v15, %v754_v47  ;;  %v898_v35 = vmul.f32 %v3054_v26, %v5382_v22 }
  0xb5   :  { %v3572_v24 = vadd.f32 %v3025_v15, %v755_v33  ;;  %v5383_v25 = vpack.c.bf16 %v3305_v58, %v3295_v16  ;;  %v5387_v33 = vld [vmem:[#allocation58_spill] sm:$0xff]  ;;  %v1042_v58 = vmul.f32 %v3057_v46, %v5394_v30  ;;  %v5395_v16 = vld [vmem:[#allocation64_spill] sm:$0xff]  ;;  %v5401_v30 = vpack.c.bf16 %v3344_v57, %v3341_v21 }
  0xb6   :  { %v367_v8 = vmul.f32 %v3100_v48, %v5379_v51  ;;  %5380 = vst [vmem:[#allocation20_spill] sm:$0xff] %v3569_v13  ;;  %v5384_v51 = vpack.c.bf16 %v3331_v10, %v3313_v61  ;;  %v3586_v11 = vadd.f32 %v3177_v6, %v366_v55  ;;  %v5388_v36 = vcvt.s32.f32 %v5387_v33  ;;  %v5390_v10 = vld [vmem:[#allocation59_spill] sm:$0xff] }
  0xb7   :  { %945 = vrot.lane.b32.xlu0 %v5383_v25, %s2387_s23  ;;  %v3600_v61 = vadd.f32 %v3086_v5, %v898_v35  ;;  %v5391_v55 = vcvt.s32.f32 %v5390_v10  ;;  %v1043_v10 = vmul.f32 %v3057_v46, %v5395_v16  ;;  %v5402_v21 = vrot.slane %v3225_v37, 1 }
  0xb8   :  { %546 = vrot.lane.b32.xlu1 %v5384_v51, %s2386_s22  ;;  %5385 = vst [vmem:[#allocation21_spill] sm:$0xff] %v3586_v11  ;;  %v3589_v47 = vadd.f32 %v3177_v6, %v367_v8  ;;  %v899_v22 = vmul.f32 %v3054_v26, %v5388_v36  ;;  %v5392_v51 = vld [vmem:[#allocation60_spill] sm:$0xff]  ;;  %v5398_v11 = vld [vmem:[#allocation62_spill] sm:$0xff] }
  0xb9   :  { %5389 = vst [vmem:[#allocation23_spill] sm:$0xff] %v3600_v61  ;;  %v501_v44 = vmul.f32 %v3135_v38, %v5391_v55  ;;  %v5393_v33 = vcvt.s32.f32 %v5392_v51  ;;  %v5396_v55 = vld [vmem:[#allocation61_spill] sm:$0xff]  ;;  %v5400_v51 = vpack.c.bf16 %v3338_v23, %v3334_v0  ;;  %v3655_v57 = vrot.slane %v5402_v21, %v2433_v4  ;;  %v5409_v61 = vld [vmem:[#allocation68_spill] sm:$0xff] }
  0xba   :  { %5386 = vst [vmem:[#allocation22_spill] sm:$0xff] %v3589_v47  ;;  %v3608_v25 = vadd.f32 %v3086_v5, %v899_v22  ;;  %v5397_v13 = vcvt.s32.f32 %v5396_v55  ;;  %v5399_v22 = vcvt.s32.f32 %v5398_v11  ;;  %v3777_v11 = vpop.permute.xlu1 %1389 }
  0xbb   :  { %v502_v36 = vmul.f32 %v3135_v38, %v5393_v33  ;;  %v3616_v35 = vadd.f32 %v3179_v60, %v501_v44  ;;  %1089 = vrot.lane.b32.xlu0 %v5400_v51, %s2386_s22  ;;  %v3644_v33 = vadd.f32 %v3089_v29, %v1043_v10  ;;  %v5403_v10 = vld [vmem:[#allocation65_spill] sm:$0xff] }
  0xbc   :  { %v233_v8 = vmul.f32 %v3098_v50, %v5397_v13  ;;  %v234_v47 = vmul.f32 %v3098_v50, %v5399_v22  ;;  %278 = vrot.lane.b32.xlu1 %v5401_v30, %s2388_s24  ;;  %v3640_v13 = vadd.f32 %v3089_v29, %v1042_v58  ;;  %v3660_v58 = vld [vmem:[%s5056_s1 + $0xa0] sm:$0xff]  ;;  %v5404_v55 = vcvt.s32.f32 %v5403_v10  ;;  %v5405_v22 = vld [vmem:[#allocation66_spill] sm:$0xff]  ;;  %v5407_v30 = vld [vmem:[#allocation67_spill] sm:$0xff] }
  0xbd   :  { %v3637_v44 = vadd.f32 %v3179_v60, %v502_v36  ;;  %v5408_v37 = vcvt.s32.f32 %v5407_v30  ;;  %v5410_v36 = vcvt.s32.f32 %v5409_v61 }
  0xbe   :  { %v3647_v0 = vadd.f32 %v3133_v43, %v233_v8  ;;  %v3650_v23 = vadd.f32 %v3133_v43, %v234_v47  ;;  %v756_v8 = vmul.f32 %v3022_v14, %v5404_v55  ;;  %v5406_v47 = vcvt.s32.f32 %v5405_v22 }
  0xbf   :  { %v368_v21 = vmul.f32 %v3100_v48, %v5408_v37  ;;  %v369_v10 = vmul.f32 %v3100_v48, %v5410_v36  ;;  %v5411_v55 = vrot.slane %v3276_v34, 1  ;;  %v1721_v36 = vshra.s32 %v3660_v58, 20 }
  0xc0   :  { %v757_v51 = vmul.f32 %v3022_v14, %v5406_v47  ;;  %v5412_v14 = vpack.c.bf16 %v3378_v20, %v3365_v19  ;;  %v5413_v47 = vpack.c.bf16 %v3384_v2, %v3381_v1  ;;  %v3694_v30 = vadd.f32 %v3025_v15, %v756_v8  ;;  %v5415_v1 = vld [vmem:[#allocation69_spill] sm:$0xff] }
  0xc1   :  { %v3683_v22 = vrot.slane %v5411_v55, %v2433_v4  ;;  %v3700_v34 = vadd.f32 %v3177_v6, %v368_v21  ;;  %v3704_v37 = vadd.f32 %v3177_v6, %v369_v10  ;;  %v5414_v19 = vrot.slane %v3300_v62, 1  ;;  %v5417_v55 = vld [vmem:[#allocation70_spill] sm:$0xff] }
  0xc2   :  { %803 = vrot.lane.b32.xlu0 %v5412_v14, %s2388_s24  ;;  %413 = vrot.lane.b32.xlu1 %v5413_v47, %s2387_s23  ;;  %v3697_v61 = vadd.f32 %v3025_v15, %v757_v51  ;;  %v5416_v2 = vcvt.s32.f32 %v5415_v1  ;;  %v5418_v15 = vcvt.s32.f32 %v5417_v55  ;;  %v3720_v21 = vld [vmem:[%s5056_s1 + $0xa8] sm:$0xff]  ;;  %v5419_v14 = vld [vmem:[#allocation71_spill] sm:$0xff]  ;;  %v5423_v55 = vrot.slane %v3370_v42, 1 }
  0xc3   :  { %v3709_v20 = vrot.slane %v5414_v19, %v2433_v4  ;;  %v5420_v62 = vcvt.s32.f32 %v5419_v14  ;;  %v5421_v19 = vld [vmem:[#allocation72_spill] sm:$0xff]  ;;  %v5425_v42 = vpack.c.bf16 %v3410_v7, %v3391_v31  ;;  %v5429_v7 = vld [vmem:[#allocation78_spill] sm:$0xff]  ;;  %v5434_v31 = vrot.slane %v3449_v63, 1  ;;  %v5439_v63 = vld [vmem:[#allocation17_spill] sm:$0xff] }
  0xc4   :  { %v900_v8 = vmul.f32 %v3054_v26, %v5416_v2  ;;  %v901_v51 = vmul.f32 %v3054_v26, %v5418_v15  ;;  %v5422_v1 = vcvt.s32.f32 %v5421_v19  ;;  %v3733_v26 = vrot.slane %v5423_v55, %v2433_v4  ;;  %v3735_v15 = vpop.permute.xlu0 %1255 }
  0xc5   :  { %v503_v47 = vmul.f32 %v3135_v38, %v5420_v62  ;;  %v5424_v62 = vrot.slane %v3399_v41, 1  ;;  %v1722_v55 = vshra.s32 %v3720_v21, 20 }
  0xc6   :  { %v504_v2 = vmul.f32 %v3135_v38, %v5422_v1  ;;  %v3740_v10 = vadd.f32 %v3086_v5, %v900_v8  ;;  %v3743_v14 = vadd.f32 %v3086_v5, %v901_v51  ;;  %947 = vrot.lane.b32.xlu0 %v5425_v42, %s2387_s23  ;;  %v5426_v1 = vpack.c.bf16 %v3416_v3, %v3413_v28  ;;  %v5428_v51 = vld [vmem:[#allocation75_spill] sm:$0xff]  ;;  %v5430_v42 = vld [vmem:[#allocation73_spill] sm:$0xff] }
  0xc7   :  { %v3748_v19 = vrot.slane %v5424_v62, %v2433_v4  ;;  %v3759_v8 = vadd.f32 %v3179_v60, %v503_v47  ;;  %v1044_v41 = vmul.f32 %v3057_v46, %v5428_v51  ;;  %v1045_v62 = vmul.f32 %v3057_v46, %v5429_v7  ;;  %v5432_v47 = vld [vmem:[#allocation74_spill] sm:$0xff]  ;;  %v5435_v7 = vld [vmem:[#allocation76_spill] sm:$0xff] }
  0xc8   :  { %548 = vrot.lane.b32.xlu1 %v5426_v1, %s2386_s22  ;;  %v3762_v5 = vadd.f32 %v3179_v60, %v504_v2  ;;  %v5431_v28 = vcvt.s32.f32 %v5430_v42  ;;  %v5433_v1 = vcvt.s32.f32 %v5432_v47  ;;  %v3787_v46 = vrot.slane %v5434_v31, %v2433_v4  ;;  %v5456_v4 = vld [vmem:[#allocation91_spill] sm:$0xff] }
  0xc9   :  { %5427 = vst [vmem:[#allocation24_spill] sm:$0xff] %v3759_v8  ;;  %v3782_v16 = vadd.f32 %v3089_v29, %v1044_v41  ;;  %v5436_v42 = vcvt.s32.f32 %v5435_v7  ;;  %v3793_v47 = vadd.f32 %v3089_v29, %v1045_v62  ;;  %v5437_v41 = vld [vmem:[#allocation77_spill] sm:$0xff]  ;;  %v5440_v31 = vpack.c.bf16 %v3433_v52, %v5439_v63  ;;  %v5444_v7 = vld [vmem:[#allocation84_spill] sm:$0xff] }
  0xca   :  { %v235_v3 = vmul.f32 %v3098_v50, %v5431_v28  ;;  %v236_v2 = vmul.f32 %v3098_v50, %v5433_v1  ;;  %v5438_v51 = vcvt.s32.f32 %v5437_v41  ;;  %v5441_v29 = vpack.c.bf16 %v3454_v27, %v3444_v9 }
  0xcb   :  { %v370_v28 = vmul.f32 %v3100_v48, %v5436_v42  ;;  %1091 = vrot.lane.b32.xlu0 %v5440_v31, %s2386_s22  ;;  %v5445_v42 = vcvt.s32.f32 %v5444_v7  ;;  %v3823_v52 = vand.u32 15, %v1721_v36  ;;  %v5449_v36 = vld [vmem:[#allocation80_spill] sm:$0xff] }
  0xcc   :  { %v3796_v50 = vadd.f32 %v3133_v43, %v235_v3  ;;  %v3799_v1 = vadd.f32 %v3133_v43, %v236_v2  ;;  %v371_v8 = vmul.f32 %v3100_v48, %v5438_v51  ;;  %280 = vrot.lane.b32.xlu1 %v5441_v29, %s2388_s24  ;;  %v5442_v3 = vld [vmem:[#allocation83_spill] sm:$0xff]  ;;  %v3821_v51 = vpop.permute.xlu0 %1274 }
  0xcd   :  { %v3813_v62 = vadd.f32 %v3177_v6, %v370_v28  ;;  %v5443_v43 = vcvt.s32.f32 %v5442_v3  ;;  %v1777_v48 = vmul.f32 %v3655_v57, %v5445_v42  ;;  %v5446_v28 = vld [vmem:[#allocation79_spill] sm:$0xff]  ;;  %v5451_v42 = vld [vmem:[#allocation85_spill] sm:$0xff] }
  0xce   :  { %v3830_v27 = vadd.f32 %v3177_v6, %v371_v8  ;;  %v5447_v63 = vcvt.s32.f32 %v5446_v28  ;;  %v5452_v41 = vcvt.s32.f32 %v5451_v42  ;;  %v5454_v28 = vld [vmem:[#allocation86_spill] sm:$0xff] }
  0xcf   :  { %v1776_v2 = vmul.f32 %v3655_v57, %v5443_v43  ;;  %v3839_v3 = vadd.f32 %v3709_v20, %v1777_v48  ;;  %v5450_v43 = vcvt.s32.f32 %v5449_v36  ;;  %v3855_v48 = vpop.permute.xlu1 %1523  ;;  %v2064_v36 = vmul.f32 %v3733_v26, %v5456_v4  ;;  %v5469_v6 = vld [vmem:[#allocation90_spill] sm:$0xff] }
  0xd0   :  { %v505_v31 = vmul.f32 %v3135_v38, %v5447_v63  ;;  %v1920_v9 = vmul.f32 %v3683_v22, %v5452_v41  ;;  %v5458_v41 = vpack.c.bf16 %v3492_v17, %v3488_v32  ;;  %v1738_v4 = vand.u32 15, %v1722_v55  ;;  %v5463_v32 = vld [vmem:[#allocation87_spill] sm:$0xff] }
  0xd1   :  { %v3836_v29 = vadd.f32 %v3709_v20, %v1776_v2  ;;  %v506_v7 = vmul.f32 %v3135_v38, %v5450_v43  ;;  %v5455_v2 = vcvt.s32.f32 %v5454_v28  ;;  %v5457_v38 = vpack.c.bf16 %v3485_v12, %v3463_v49  ;;  %v5461_v49 = vld [vmem:[#allocation92_spill] sm:$0xff] }
  0xd2   :  { %v3850_v8 = vadd.f32 %v3179_v60, %v505_v31  ;;  %415 = vrot.lane.b32.xlu1 %v5458_v41, %s2387_s23  ;;  %v3873_v42 = vadd.f32 %v3748_v19, %v1920_v9  ;;  %v2065_v12 = vmul.f32 %v3733_v26, %v5461_v49  ;;  %v5464_v17 = vcvt.s32.f32 %v5463_v32  ;;  %v5465_v9 = vld [vmem:[#allocation88_spill] sm:$0xff]  ;;  %v5467_v41 = vld [vmem:[#allocation89_spill] sm:$0xff] }
  0xd3   :  { %5448 = vst [vmem:[#allocation29_spill] sm:$0xff] %v3836_v29  ;;  %v1921_v63 = vmul.f32 %v3683_v22, %v5455_v2  ;;  %805 = vrot.lane.b32.xlu0 %v5457_v38, %s2388_s24  ;;  %v3870_v43 = vadd.f32 %v3179_v60, %v506_v7  ;;  %v3881_v2 = vadd.f32 %v3787_v46, %v2064_v36  ;;  %v3888_v7 = vpop.permute.xlu0 %1408  ;;  %v5466_v55 = vcvt.s32.f32 %v5465_v9  ;;  %v5473_v9 = vld [vmem:[#allocation93_spill] sm:$0xff] }
  0xd4   :  { %5453 = vst [vmem:[#allocation30_spill] sm:$0xff] %v3850_v8  ;;  %5459 = vst [vmem:[#allocation25_spill] sm:$0xff] %v3873_v42  ;;  %v1258_v38 = vmul.f32 %v3735_v15, %v5464_v17  ;;  %v5468_v31 = vcvt.s32.f32 %v5467_v41  ;;  %v5470_v36 = vcvt.s32.f32 %v5469_v6  ;;  %v3902_v17 = vadd.f32 %v3787_v46, %v2065_v12  ;;  %v5477_v6 = vld [vmem:[#allocation19_spill] sm:$0xff] }
  0xd5   :  { %v3876_v28 = vadd.f32 %v3748_v19, %v1921_v63  ;;  %5462 = vst [vmem:[#allocation27_spill] sm:$0xff] %v3881_v2  ;;  %v1259_v63 = vmul.f32 %v3735_v15, %v5466_v55  ;;  %v5474_v8 = vcvt.s32.f32 %v5473_v9 }
  0xd6   :  { %v1778_v49 = vmul.f32 %v3655_v57, %v5468_v31  ;;  %v1779_v29 = vmul.f32 %v3655_v57, %v5470_v36  ;;  %5471 = vst [vmem:[#allocation28_spill] sm:$0xff] %v3902_v17  ;;  %v3905_v60 = vadd.f32 %v3821_v51, %v1258_v38  ;;  %v5475_v31 = vld [vmem:[#allocation18_spill] sm:$0xff]  ;;  %v5478_v36 = vpack.c.bf16 %v3531_v56, %v5477_v6  ;;  %v5483_v6 = vld [vmem:[#allocation95_spill] sm:$0xff] }
  0xd7   :  { %5460 = vst [vmem:[#allocation26_spill] sm:$0xff] %v3876_v28  ;;  %v1392_v55 = vmul.f32 %v3777_v11, %v5474_v8  ;;  %v5476_v41 = vpack.c.bf16 %v3498_v40, %v5475_v31  ;;  %v3919_v12 = vadd.f32 %v3821_v51, %v1259_v63  ;;  %v1753_v8 = vcvt.s32.f32 %v3823_v52  ;;  %v3930_v31 = vpop.permute.xlu1 %1542  ;;  %v5485_v40 = vld [vmem:[#allocation96_spill] sm:$0xff] }
  0xd8   :  { %5472 = vst [vmem:[#allocation31_spill] sm:$0xff] %v3905_v60  ;;  %550 = vrot.lane.b32.xlu1 %v5478_v36, %s2386_s22  ;;  %v3922_v38 = vadd.f32 %v3709_v20, %v1778_v49  ;;  %v3925_v9 = vadd.f32 %v3709_v20, %v1779_v29  ;;  %v5484_v49 = vcvt.s32.f32 %v5483_v6  ;;  %v5486_v2 = vcvt.s32.f32 %v5485_v40  ;;  %v5492_v60 = vld [vmem:[#allocation99_spill] sm:$0xff] }
  0xd9   :  { %949 = vrot.lane.b32.xlu0 %v5476_v41, %s2387_s23  ;;  %v5480_v41 = vld [vmem:[#allocation94_spill] sm:$0xff]  ;;  %v3936_v63 = vadd.f32 %v3888_v7, %v1392_v55  ;;  %v5493_v52 = vcvt.s32.f32 %v5492_v60 }
  0xda   :  { %5479 = vst [vmem:[#allocation32_spill] sm:$0xff] %v3922_v38  ;;  %v5481_v32 = vcvt.s32.f32 %v5480_v41  ;;  %v1922_v36 = vmul.f32 %v3683_v22, %v5484_v49  ;;  %v1923_v17 = vmul.f32 %v3683_v22, %v5486_v2  ;;  %v5487_v41 = vld [vmem:[#allocation97_spill] sm:$0xff]  ;;  %v5490_v49 = vld [vmem:[#allocation98_spill] sm:$0xff]  ;;  %v5495_v2 = vpack.c.bf16 %v3537_v54, %v3534_v39 }
  0xdb   :  { %5482 = vst [vmem:[#allocation33_spill] sm:$0xff] %v3936_v63  ;;  %v5488_v42 = vcvt.s32.f32 %v5487_v41  ;;  %v5491_v28 = vcvt.s32.f32 %v5490_v49  ;;  %v5494_v38 = vld [vmem:[#allocation13_spill] sm:$0xff]  ;;  %v5500_v54 = vld [vmem:[#allocation14_spill] sm:$0xff] }
  0xdc   :  { %v1393_v56 = vmul.f32 %v3777_v11, %v5481_v32  ;;  %v3955_v6 = vadd.f32 %v3748_v19, %v1922_v36  ;;  %v630_v40 = vmul.f32 %v5494_v38, %v5493_v52  ;;  %v5501_v49 = vld [vmem:[#allocation101_spill] sm:$0xff] }
  0xdd   :  { %v1526_v32 = vmul.f32 %v3855_v48, %v5488_v42  ;;  %v1527_v29 = vmul.f32 %v3855_v48, %v5491_v28  ;;  %1093 = vrot.lane.b32.xlu0 %v5495_v2, %s2386_s22  ;;  %v5496_v42 = vpack.c.bf16 %v3566_v45, %v3547_v59  ;;  %v5498_v28 = vld [vmem:[#allocation100_spill] sm:$0xff]  ;;  %v2066_v59 = vmul.f32 %v3733_v26, %v5501_v49  ;;  %v5502_v2 = vld [vmem:[#allocation102_spill] sm:$0xff] }
  0xde   :  { %v3952_v55 = vadd.f32 %v3888_v7, %v1393_v56  ;;  %5489 = vst [vmem:[#allocation34_spill] sm:$0xff] %v3955_v6  ;;  %v3972_v56 = vadd.f32 %v3748_v19, %v1923_v17  ;;  %v5499_v60 = vcvt.s32.f32 %v5498_v28  ;;  %v651_v41 = vadd.f32 %v5500_v54, %v630_v40 }
  0xdf   :  { %282 = vrot.lane.b32.xlu1 %v5496_v42, %s2388_s24  ;;  %v3975_v36 = vadd.f32 %v3930_v31, %v1526_v32  ;;  %v1754_v45 = vcvt.s32.f32 %v1738_v4  ;;  %v3986_v17 = vadd.f32 %v3930_v31, %v1527_v29  ;;  %v2067_v42 = vmul.f32 %v3733_v26, %v5502_v2 }
  0xe0   :  { %v631_v52 = vmul.f32 %v5494_v38, %v5499_v60  ;;  %v5503_v28 = vcvt.s32.f32 %v3199_v53  ;;  %v3997_v40 = vadd.f32 %v3787_v46, %v2066_v59  ;;  %v5505_v4 = vcvt.s32.f32 %v3541_v18  ;;  %v5508_v53 = vld [vmem:[#allocation22_spill] sm:$0xff] }
  0xe1   :  { %5497 = vst [vmem:[#allocation35_spill] sm:$0xff] %v3975_v36  ;;  %v1780_v49 = vmul.f32 %v3655_v57, %v1753_v8  ;;  %v4012_v59 = vadd.f32 %v3787_v46, %v2067_v42 }
  0xe2   :  { %v652_v32 = vadd.f32 %v5500_v54, %v631_v52  ;;  %v1260_v60 = vmul.f32 %v3735_v15, %v5503_v28  ;;  %5504 = vst [vmem:[#allocation36_spill] sm:$0xff] %v3997_v40  ;;  %v1261_v29 = vmul.f32 %v3735_v15, %v5505_v4  ;;  %v5506_v52 = vld [vmem:[#allocation20_spill] sm:$0xff]  ;;  %v5509_v28 = vld [vmem:[#allocation21_spill] sm:$0xff]  ;;  %v1865_v40 = vshra.s32 %v3660_v58, 24 }
  0xe3   :  { %v5507_v2 = vpack.c.bf16 %v3572_v24, %v5506_v52  ;;  %v5510_v63 = vpack.c.bf16 %v5508_v53, %v5509_v28  ;;  %v5512_v4 = vld [vmem:[#allocation81_spill] sm:$0xff]  ;;  %v1781_v24 = vmul.f32 %v3655_v57, %v1754_v45  ;;  %v4023_v52 = vadd.f32 %v3709_v20, %v1780_v49  ;;  %v2333_v45 = vld [vmem:[%s5056_s1 + $0x8] sm:$0xff] }
  0xe4   :  { %v667_v39 = vpack.c.bf16 %v652_v32, %v651_v41  ;;  %v4015_v18 = vadd.f32 %v3821_v51, %v1260_v60  ;;  %v1343_v6 = vshra.s32 %v5512_v4, 8  ;;  %v4019_v8 = vadd.f32 %v3821_v51, %v1261_v29  ;;  %v2332_v32 = vld [vmem:[%s5056_s1] sm:$0xff] }
  0xe5   :  { %807 = vrot.lane.b32.xlu0 %v5507_v2, %s2388_s24  ;;  %417 = vrot.lane.b32.xlu1 %v5510_v63, %s2387_s23  ;;  %v5513_v2 = vld [vmem:[#allocation82_spill] sm:$0xff]  ;;  %v77_v42 = vand.u32 15, %v2332_v32  ;;  %v78_v60 = vand.u32 15, %v2333_v45  ;;  %v4040_v28 = vadd.f32 %v3709_v20, %v1781_v24  ;;  %v5516_v32 = vpack.c.bf16 %v3637_v44, %v3616_v35 }
  0xe6   :  { %5511 = vst [vmem:[#allocation39_spill] sm:$0xff] %v4015_v18  ;;  %v1344_v53 = vshra.s32 %v5513_v2, 8  ;;  %675 = vst.msk [vmem:[#allocation3 + $0x8] sm:$0xff] %vm161_vm0, %v667_v39  ;;  %v1359_v41 = vand.u32 15, %v1343_v6  ;;  %v5514_v39 = vld [vmem:[#allocation23_spill] sm:$0xff]  ;;  %v1477_v18 = vshra.s32 %v5512_v4, 12  ;;  %v5519_v4 = vpack.c.bf16 %v3650_v23, %v3647_v0 }
  0xe7   :  { %v5515_v63 = vpack.c.bf16 %v3608_v25, %v5514_v39  ;;  %v93_v36 = vcvt.s32.f32 %v77_v42  ;;  %v94_v29 = vcvt.s32.f32 %v78_v60  ;;  %v1881_v44 = vand.u32 15, %v1865_v40  ;;  %v5520_v40 = vld [vmem:[#allocation10_spill] sm:$0xff]  ;;  %v4080_v0 = vld [vmem:[%s5056_s1 + $0x10] sm:$0xff] }
  0xe8   :  { %v1360_v6 = vand.u32 15, %v1344_v53  ;;  %v1375_v45 = vcvt.s32.f32 %v1359_v41  ;;  %v1866_v53 = vshra.s32 %v3720_v21, 24  ;;  %v1478_v60 = vshra.s32 %v5513_v2, 12 }
  0xe9   :  { %951 = vrot.lane.b32.xlu0 %v5515_v63, %s2387_s23  ;;  %552 = vrot.lane.b32.xlu1 %v5516_v32, %s2386_s22  ;;  %v5517_v63 = vld [vmem:[#allocation9_spill] sm:$0xff]  ;;  %v1493_v32 = vand.u32 15, %v1477_v18  ;;  %v577_v23 = vshra.s32 %v4080_v0, 16 }
  0xea   :  { %v1376_v49 = vcvt.s32.f32 %v1360_v6  ;;  %v1394_v25 = vmul.f32 %v3777_v11, %v1375_v45  ;;  %v115_v39 = vmul.f32 %v5517_v63, %v93_v36  ;;  %v116_v35 = vmul.f32 %v5517_v63, %v94_v29 }
  0xeb   :  { %v1882_v42 = vand.u32 15, %v1866_v53  ;;  %v5518_v6 = vpack.c.bf16 %v3644_v33, %v3640_v13  ;;  %v1897_v45 = vcvt.s32.f32 %v1881_v44  ;;  %v1494_v53 = vand.u32 15, %v1478_v60 }
  0xec   :  { %v1395_v41 = vmul.f32 %v3777_v11, %v1376_v49  ;;  %v4069_v36 = vadd.f32 %v3888_v7, %v1394_v25  ;;  %v137_v29 = vadd.f32 %v5520_v40, %v115_v39  ;;  %v138_v49 = vadd.f32 %v5520_v40, %v116_v35  ;;  %v4086_v25 = vld [vmem:[%s5056_s1 + $0x18] sm:$0xff] }
  0xed   :  { %1095 = vrot.lane.b32.xlu0 %v5518_v6, %s2386_s22  ;;  %284 = vrot.lane.b32.xlu1 %v5519_v4, %s2388_s24  ;;  %v1898_v2 = vcvt.s32.f32 %v1882_v42  ;;  %v1509_v13 = vcvt.s32.f32 %v1493_v32  ;;  %v1924_v6 = vmul.f32 %v3683_v22, %v1897_v45  ;;  %v578_v39 = vshra.s32 %v4086_v25, 16 }
  0xee   :  { %v4074_v18 = vadd.f32 %v3888_v7, %v1395_v41  ;;  %v153_v33 = vpack.c.bf16 %v138_v49, %v137_v29  ;;  %v1510_v41 = vcvt.s32.f32 %v1494_v53  ;;  %v5521_v60 = vpack.c.bf16 %v3697_v61, %v3694_v30 }
  0xef   :  { %v1925_v44 = vmul.f32 %v3683_v22, %v1898_v2  ;;  %v1528_v42 = vmul.f32 %v3855_v48, %v1509_v13  ;;  %v5522_v32 = vpack.c.bf16 %v3704_v37, %v3700_v34  ;;  %v4103_v4 = vadd.f32 %v3748_v19, %v1924_v6  ;;  %v4118_v6 = vld [vmem:[%s5056_s1 + $0xb0] sm:$0xff] }
  0xf0   :  { %162 = vst.msk [vmem:[#allocation3] sm:$0xff] %vm161_vm0, %v153_v33  ;;  %v593_v29 = vand.u32 15, %v577_v23  ;;  %v594_v49 = vand.u32 15, %v578_v39  ;;  %v2305_v45 = vshrl.u32 %v3660_v58, 28  ;;  %v1529_v30 = vmul.f32 %v3855_v48, %v1510_v41 }
  0xf1   :  { %809 = vrot.lane.b32.xlu0 %v5521_v60, %s2388_s24  ;;  %419 = vrot.lane.b32.xlu1 %v5522_v32, %s2387_s23  ;;  %v4107_v2 = vadd.f32 %v3748_v19, %v1925_v44  ;;  %v4111_v61 = vadd.f32 %v3930_v31, %v1528_v42  ;;  %v2306_v34 = vshrl.u32 %v3720_v21, 28  ;;  %v1211_v33 = vshra.s32 %v3660_v58, 4  ;;  %v5524_v60 = vld [vmem:[#allocation24_spill] sm:$0xff] }
  0xf2   :  { %v609_v37 = vcvt.s32.f32 %v593_v29  ;;  %v610_v53 = vcvt.s32.f32 %v594_v49  ;;  %v2041_v13 = vcvt.s32.f32 %v2305_v45  ;;  %v4123_v39 = vadd.f32 %v3930_v31, %v1529_v30 }
  0xf3   :  { %v2042_v44 = vcvt.s32.f32 %v2306_v34  ;;  %v1212_v41 = vshra.s32 %v3720_v21, 4  ;;  %v5523_v42 = vpack.c.bf16 %v3743_v14, %v3740_v10  ;;  %v5525_v32 = vpack.c.bf16 %v3762_v5, %v5524_v60  ;;  %v4140_v34 = vld [vmem:[%s5056_s1 + $0xb8] sm:$0xff] }
  0xf4   :  { %v632_v29 = vmul.f32 %v5494_v38, %v609_v37  ;;  %v633_v49 = vmul.f32 %v5494_v38, %v610_v53  ;;  %v2068_v45 = vmul.f32 %v3733_v26, %v2041_v13  ;;  %v1227_v30 = vand.u32 15, %v1211_v33 }
  0xf5   :  { %953 = vrot.lane.b32.xlu0 %v5523_v42, %s2387_s23  ;;  %554 = vrot.lane.b32.xlu1 %v5525_v32, %s2386_s22  ;;  %v2069_v14 = vmul.f32 %v3733_v26, %v2042_v44  ;;  %v1228_v42 = vand.u32 15, %v1212_v41  ;;  %v1723_v5 = vshra.s32 %v4118_v6, 20  ;;  %v1724_v23 = vshra.s32 %v4140_v34, 20 }
  0xf6   :  { %v653_v37 = vadd.f32 %v5500_v54, %v632_v29  ;;  %v654_v53 = vadd.f32 %v5500_v54, %v633_v49  ;;  %v4149_v13 = vadd.f32 %v3787_v46, %v2068_v45  ;;  %v1243_v33 = vcvt.s32.f32 %v1227_v30 }
  0xf7   :  { %v4152_v60 = vadd.f32 %v3787_v46, %v2069_v14  ;;  %v1244_v32 = vcvt.s32.f32 %v1228_v42  ;;  %v1739_v10 = vand.u32 15, %v1723_v5  ;;  %v5526_v44 = vpack.c.bf16 %v3793_v47, %v3782_v16 }
  0xf8   :  { %v5527_v41 = vpack.c.bf16 %v3799_v1, %v3796_v50  ;;  %v668_v29 = vpack.c.bf16 %v654_v53, %v653_v37  ;;  %v1262_v49 = vmul.f32 %v3735_v15, %v1243_v33  ;;  %v1345_v45 = vshra.s32 %v3660_v58, 8 }
  0xf9   :  { %1097 = vrot.lane.b32.xlu0 %v5526_v44, %s2386_s22  ;;  %v1346_v30 = vshra.s32 %v3720_v21, 8  ;;  %v1263_v42 = vmul.f32 %v3735_v15, %v1244_v32  ;;  %v1740_v5 = vand.u32 15, %v1724_v23  ;;  %v1755_v16 = vcvt.s32.f32 %v1739_v10  ;;  %v5529_v10 = vld [vmem:[#allocation29_spill] sm:$0xff] }
  0xfa   :  { %286 = vrot.lane.b32.xlu1 %v5527_v41, %s2388_s24  ;;  %676 = vst.msk [vmem:[#allocation3 + $0x18] sm:$0xff] %vm161_vm0, %v668_v29  ;;  %v4171_v47 = vadd.f32 %v3821_v51, %v1262_v49  ;;  %v1361_v50 = vand.u32 15, %v1345_v45  ;;  %v79_v37 = vand.u32 15, %v4080_v0  ;;  %v80_v41 = vand.u32 15, %v4086_v25 }
  0xfb   :  { %v1362_v1 = vand.u32 15, %v1346_v30  ;;  %v4175_v53 = vadd.f32 %v3821_v51, %v1263_v42  ;;  %v1756_v33 = vcvt.s32.f32 %v1740_v5  ;;  %v1782_v44 = vmul.f32 %v3655_v57, %v1755_v16 }
  0xfc   :  { %v5528_v23 = vpack.c.bf16 %v3830_v27, %v3813_v62  ;;  %v5530_v32 = vpack.c.bf16 %v3839_v3, %v5529_v10  ;;  %v1377_v29 = vcvt.s32.f32 %v1361_v50  ;;  %v95_v49 = vcvt.s32.f32 %v79_v37  ;;  %v5534_v10 = vld [vmem:[#allocation25_spill] sm:$0xff] }
  0xfd   :  { %v1378_v0 = vcvt.s32.f32 %v1362_v1  ;;  %v1867_v45 = vshra.s32 %v4118_v6, 24  ;;  %v1783_v25 = vmul.f32 %v3655_v57, %v1756_v33  ;;  %v4192_v42 = vadd.f32 %v3709_v20, %v1782_v44  ;;  %v5531_v44 = vld [vmem:[#allocation30_spill] sm:$0xff] }
  0xfe   :  { %421 = vrot.lane.b32.xlu1 %v5528_v23, %s2387_s23  ;;  %1829 = vrot.lane.b32.xlu0 %v5530_v32, %s2388_s24  ;;  %v96_v62 = vcvt.s32.f32 %v80_v41  ;;  %v1396_v27 = vmul.f32 %v3777_v11, %v1377_v29  ;;  %v117_v3 = vmul.f32 %v5517_v63, %v95_v49  ;;  %v1868_v16 = vshra.s32 %v4140_v34, 24  ;;  %v5533_v23 = vld [vmem:[#allocation26_spill] sm:$0xff] }
  0xff   :  { %v1397_v5 = vmul.f32 %v3777_v11, %v1378_v0  ;;  %v4199_v50 = vadd.f32 %v3709_v20, %v1783_v25  ;;  %v1883_v37 = vand.u32 15, %v1867_v45  ;;  %v1479_v33 = vshra.s32 %v3660_v58, 12 }
 0x100   :  { %v118_v1 = vmul.f32 %v5517_v63, %v96_v62  ;;  %v5532_v41 = vpack.c.bf16 %v3870_v43, %v5531_v44  ;;  %v5535_v32 = vpack.c.bf16 %v5533_v23, %v5534_v10  ;;  %v4212_v29 = vadd.f32 %v3888_v7, %v1396_v27  ;;  %v5537_v10 = vld [vmem:[#allocation27_spill] sm:$0xff] }
 0x101   :  { %v4215_v0 = vadd.f32 %v3888_v7, %v1397_v5  ;;  %v139_v49 = vadd.f32 %v5520_v40, %v117_v3  ;;  %v1884_v45 = vand.u32 15, %v1868_v16  ;;  %v1899_v25 = vcvt.s32.f32 %v1883_v37  ;;  %v4227_v5 = vld [vmem:[%s5056_s1 + $0x20] sm:$0xff] }
 0x102   :  { %556 = vrot.lane.b32.xlu1 %v5532_v41, %s2386_s22  ;;  %1973 = vrot.lane.b32.xlu0 %v5535_v32, %s2387_s23  ;;  %v140_v43 = vadd.f32 %v5520_v40, %v118_v1  ;;  %v1480_v62 = vshra.s32 %v3720_v21, 12  ;;  %v1495_v41 = vand.u32 15, %v1479_v33  ;;  %v579_v3 = vshra.s32 %v4227_v5, 16  ;;  %v4234_v21 = vld [vmem:[%s5056_s1 + $0x28] sm:$0xff]  ;;  %v5536_v33 = vld [vmem:[#allocation28_spill] sm:$0xff] }
 0x103   :  { %v1900_v27 = vcvt.s32.f32 %v1884_v45  ;;  %v1926_v23 = vmul.f32 %v3683_v22, %v1899_v25  ;;  %v580_v37 = vshra.s32 %v4234_v21, 16  ;;  %v5538_v32 = vpack.c.bf16 %v5536_v33, %v5537_v10  ;;  %v5539_v45 = vld [vmem:[#allocation31_spill] sm:$0xff] }
 0x104   :  { %v154_v16 = vpack.c.bf16 %v140_v43, %v139_v49  ;;  %v1496_v1 = vand.u32 15, %v1480_v62  ;;  %v5540_v44 = vpack.c.bf16 %v3919_v12, %v5539_v45  ;;  %v1511_v43 = vcvt.s32.f32 %v1495_v41  ;;  %v5543_v45 = vld [vmem:[#allocation33_spill] sm:$0xff] }
 0x105   :  { %v1927_v49 = vmul.f32 %v3683_v22, %v1900_v27  ;;  %v595_v25 = vand.u32 15, %v579_v3  ;;  %v2307_v62 = vshrl.u32 %v4118_v6, 28  ;;  %v4249_v58 = vadd.f32 %v3748_v19, %v1926_v23  ;;  %v4261_v23 = vld [vmem:[%s5056_s1 + $0xc0] sm:$0xff] }
 0x106   :  { %2117 = vrot.lane.b32.xlu0 %v5538_v32, %s2386_s22  ;;  %1309 = vrot.lane.b32.xlu1 %v5540_v44, %s2388_s24  ;;  %163 = vst.msk [vmem:[#allocation3 + $0x10] sm:$0xff] %vm161_vm0, %v154_v16  ;;  %v1512_v30 = vcvt.s32.f32 %v1496_v1  ;;  %v596_v14 = vand.u32 15, %v580_v37  ;;  %v2308_v33 = vshrl.u32 %v4140_v34, 28  ;;  %v1530_v12 = vmul.f32 %v3855_v48, %v1511_v43  ;;  %v5541_v1 = vld [vmem:[#allocation32_spill] sm:$0xff] }
 0x107   :  { %v4253_v10 = vadd.f32 %v3748_v19, %v1927_v49  ;;  %v611_v44 = vcvt.s32.f32 %v595_v25  ;;  %v2043_v27 = vcvt.s32.f32 %v2307_v62  ;;  %v1213_v16 = vshra.s32 %v4118_v6, 4 }
 0x108   :  { %v1531_v41 = vmul.f32 %v3855_v48, %v1512_v30  ;;  %v612_v3 = vcvt.s32.f32 %v596_v14  ;;  %v2044_v32 = vcvt.s32.f32 %v2308_v33  ;;  %v5542_v37 = vpack.c.bf16 %v3925_v9, %v5541_v1  ;;  %v4287_v1 = vld [vmem:[%s5056_s1 + $0xc8] sm:$0xff] }
 0x109   :  { %v5544_v49 = vpack.c.bf16 %v3952_v55, %v5543_v45  ;;  %v4274_v30 = vadd.f32 %v3930_v31, %v1530_v12  ;;  %v634_v43 = vmul.f32 %v5494_v38, %v611_v44  ;;  %v1214_v25 = vshra.s32 %v4140_v34, 4 }
 0x10a   :  { %1831 = vrot.lane.b32.xlu0 %v5542_v37, %s2388_s24  ;;  %v4279_v62 = vadd.f32 %v3930_v31, %v1531_v41  ;;  %v635_v9 = vmul.f32 %v5494_v38, %v612_v3  ;;  %v2070_v33 = vmul.f32 %v3733_v26, %v2043_v27  ;;  %v2071_v55 = vmul.f32 %v3733_v26, %v2044_v32 }
 0x10b   :  { %1443 = vrot.lane.b32.xlu1 %v5544_v49, %s2387_s23  ;;  %v655_v12 = vadd.f32 %v5500_v54, %v634_v43  ;;  %v1229_v37 = vand.u32 15, %v1213_v16  ;;  %v1230_v44 = vand.u32 15, %v1214_v25  ;;  %v1725_v45 = vshra.s32 %v4261_v23, 20  ;;  %v5545_v49 = vld [vmem:[#allocation34_spill] sm:$0xff]  ;;  %v5547_v16 = vld [vmem:[#allocation35_spill] sm:$0xff]  ;;  %v796_v25 = vpop.permute.xlu0 %795 }
 0x10c   :  { %v656_v3 = vadd.f32 %v5500_v54, %v635_v9  ;;  %v4295_v27 = vadd.f32 %v3787_v46, %v2070_v33  ;;  %v4298_v32 = vadd.f32 %v3787_v46, %v2071_v55  ;;  %v5546_v14 = vpack.c.bf16 %v3972_v56, %v5545_v49  ;;  %819 = vst.msk [vmem:[#allocation3 + $0x8] sm:$0xff] %vm296_vm1, %v796_v25 }
 0x10d   :  { %v5548_v43 = vpack.c.bf16 %v3986_v17, %v5547_v16  ;;  %v1245_v41 = vcvt.s32.f32 %v1229_v37  ;;  %v1246_v9 = vcvt.s32.f32 %v1230_v44  ;;  %v1726_v33 = vshra.s32 %v4287_v1, 20 }
 0x10e   :  { %1975 = vrot.lane.b32.xlu0 %v5546_v14, %s2387_s23  ;;  %v1741_v35 = vand.u32 15, %v1725_v45  ;;  %v669_v55 = vpack.c.bf16 %v656_v3, %v655_v12  ;;  %v1347_v56 = vshra.s32 %v4118_v6, 8  ;;  %v1348_v14 = vshra.s32 %v4140_v34, 8  ;;  %v5549_v3 = vld [vmem:[#allocation36_spill] sm:$0xff] }
 0x10f   :  { %1577 = vrot.lane.b32.xlu1 %v5548_v43, %s2386_s22  ;;  %v1264_v17 = vmul.f32 %v3735_v15, %v1245_v41  ;;  %v1265_v49 = vmul.f32 %v3735_v15, %v1246_v9  ;;  %v1742_v16 = vand.u32 15, %v1726_v33  ;;  %v81_v43 = vand.u32 15, %v4227_v5  ;;  %v5551_v41 = vld [vmem:[#allocation39_spill] sm:$0xff] }
 0x110   :  { %v1757_v37 = vcvt.s32.f32 %v1741_v35  ;;  %677 = vst.msk [vmem:[#allocation3 + $0x28] sm:$0xff] %vm161_vm0, %v669_v55  ;;  %v1363_v44 = vand.u32 15, %v1347_v56  ;;  %v1364_v45 = vand.u32 15, %v1348_v14  ;;  %v82_v12 = vand.u32 15, %v4234_v21 }
 0x111   :  { %v5550_v25 = vpack.c.bf16 %v4012_v59, %v5549_v3  ;;  %v5552_v24 = vpack.c.bf16 %v4019_v8, %v5551_v41  ;;  %v4328_v35 = vadd.f32 %v3821_v51, %v1264_v17  ;;  %v4331_v9 = vadd.f32 %v3821_v51, %v1265_v49  ;;  %v940_v59 = vpop.permute.xlu0 %939 }
 0x112   :  { %v1758_v33 = vcvt.s32.f32 %v1742_v16  ;;  %v1784_v5 = vmul.f32 %v3655_v57, %v1757_v37  ;;  %v1379_v21 = vcvt.s32.f32 %v1363_v44  ;;  %v1380_v55 = vcvt.s32.f32 %v1364_v45  ;;  %963 = vst.msk [vmem:[#allocation3 + $0x8] sm:$0xff] %vm431_vm2, %v940_v59 }
 0x113   :  { %2119 = vrot.lane.b32.xlu0 %v5550_v25, %s2386_s22  ;;  %1311 = vrot.lane.b32.xlu1 %v5552_v24, %s2388_s24  ;;  %v97_v56 = vcvt.s32.f32 %v81_v43  ;;  %v98_v14 = vcvt.s32.f32 %v82_v12  ;;  %v1296_v3 = vpack.c.bf16 %v4331_v9, %v4328_v35  ;;  %v1869_v17 = vshra.s32 %v4261_v23, 24 }
 0x114   :  { %v1785_v8 = vmul.f32 %v3655_v57, %v1758_v33  ;;  %v4338_v24 = vadd.f32 %v3709_v20, %v1784_v5  ;;  %v1398_v49 = vmul.f32 %v3777_v11, %v1379_v21  ;;  %v1399_v16 = vmul.f32 %v3777_v11, %v1380_v55 }
 0x115   :  { %v119_v37 = vmul.f32 %v5517_v63, %v97_v56  ;;  %v120_v44 = vmul.f32 %v5517_v63, %v98_v14  ;;  %v5553_v45 = vpack.c.bf16 %v4040_v28, %v4023_v52  ;;  %v5554_v43 = vpack.c.bf16 %v4074_v18, %v4069_v36  ;;  %v273_v36 = vpop.permute.xlu1 %272  ;;  %v1084_v18 = vpop.permute.xlu0 %1083 }
 0x116   :  { %v4355_v12 = vadd.f32 %v3709_v20, %v1785_v8  ;;  %v1870_v25 = vshra.s32 %v4287_v1, 24  ;;  %v1885_v41 = vand.u32 15, %v1869_v17  ;;  %v1481_v33 = vshra.s32 %v4118_v6, 12  ;;  %297 = vst.msk [vmem:[#allocation3] sm:$0xff] %vm296_vm1, %v273_v36 }
 0x117   :  { %1833 = vrot.lane.b32.xlu0 %v5553_v45, %s2388_s24  ;;  %1445 = vrot.lane.b32.xlu1 %v5554_v43, %s2387_s23  ;;  %v4360_v5 = vadd.f32 %v3888_v7, %v1398_v49  ;;  %v4363_v21 = vadd.f32 %v3888_v7, %v1399_v16  ;;  %v141_v52 = vadd.f32 %v5520_v40, %v119_v37  ;;  %v1482_v59 = vshra.s32 %v4140_v34, 12  ;;  %v4377_v49 = vld [vmem:[%s5056_s1 + $0x30] sm:$0xff] }
 0x118   :  { %v142_v28 = vadd.f32 %v5520_v40, %v120_v44  ;;  %v1817_v55 = vpack.c.bf16 %v4355_v12, %v4338_v24  ;;  %v1886_v56 = vand.u32 15, %v1870_v25  ;;  %v1901_v14 = vcvt.s32.f32 %v1885_v41  ;;  %1107 = vst.msk [vmem:[#allocation3 + $0x8] sm:$0xff] %vm566_vm3, %v1084_v18  ;;  %v4392_v25 = vld [vmem:[%s5056_s1 + $0x38] sm:$0xff] }
 0x119   :  { %v1430_v6 = vpack.c.bf16 %v4363_v21, %v4360_v5  ;;  %v1497_v17 = vand.u32 15, %v1481_v33  ;;  %v581_v16 = vshra.s32 %v4377_v49, 16  ;;  %v5555_v34 = vpack.c.bf16 %v4107_v2, %v4103_v4 }
 0x11a   :  { %v155_v8 = vpack.c.bf16 %v142_v28, %v141_v52  ;;  %v5556_v37 = vpack.c.bf16 %v4123_v39, %v4111_v61  ;;  %v1902_v44 = vcvt.s32.f32 %v1886_v56  ;;  %v1928_v45 = vmul.f32 %v3683_v22, %v1901_v14  ;;  %v408_v39 = vpop.permute.xlu1 %407  ;;  %v798_v52 = vpop.permute.xlu0 %797 }
 0x11b   :  { %1977 = vrot.lane.b32.xlu0 %v5555_v34, %s2387_s23  ;;  %v1498_v43 = vand.u32 15, %v1482_v59  ;;  %v582_v41 = vshra.s32 %v4392_v25, 16  ;;  %v1513_v4 = vcvt.s32.f32 %v1497_v17  ;;  %v597_v2 = vand.u32 15, %v581_v16  ;;  %432 = vst.msk [vmem:[#allocation3] sm:$0xff] %vm431_vm2, %v408_v39 }
 0x11c   :  { %1579 = vrot.lane.b32.xlu1 %v5556_v37, %s2386_s22  ;;  %164 = vst.msk [vmem:[#allocation3 + $0x20] sm:$0xff] %vm161_vm0, %v155_v8  ;;  %v2309_v33 = vshrl.u32 %v4261_v23, 28  ;;  %v2310_v61 = vshrl.u32 %v4287_v1, 28  ;;  %v1929_v28 = vmul.f32 %v3683_v22, %v1902_v44  ;;  %v4400_v36 = vadd.f32 %v3748_v19, %v1928_v45 }
 0x11d   :  { %v1514_v18 = vcvt.s32.f32 %v1498_v43  ;;  %v598_v56 = vand.u32 15, %v582_v41  ;;  %820 = vst.msk [vmem:[#allocation3 + $0x18] sm:$0xff] %vm296_vm1, %v798_v52  ;;  %v1532_v14 = vmul.f32 %v3855_v48, %v1513_v4  ;;  %v613_v59 = vcvt.s32.f32 %v597_v2 }
 0x11e   :  { %v2045_v8 = vcvt.s32.f32 %v2309_v33  ;;  %v2046_v17 = vcvt.s32.f32 %v2310_v61  ;;  %v5557_v16 = vpack.c.bf16 %v4152_v60, %v4149_v13  ;;  %v5558_v34 = vpack.c.bf16 %v4175_v53, %v4171_v47  ;;  %v4427_v47 = vld [vmem:[%s5056_s1 + $0xd0] sm:$0xff]  ;;  %v543_v53 = vpop.permute.xlu1 %542  ;;  %v942_v2 = vpop.permute.xlu0 %941 }
 0x11f   :  { %v4414_v37 = vadd.f32 %v3748_v19, %v1929_v28  ;;  %v1533_v44 = vmul.f32 %v3855_v48, %v1514_v18  ;;  %v614_v45 = vcvt.s32.f32 %v598_v56  ;;  %v1215_v43 = vshra.s32 %v4261_v23, 4  ;;  %v2156_v33 = vld [vmem:[#allocation3 + $0x8] sm:$0xff]  ;;  %v4439_v18 = vld [vmem:[%s5056_s1 + $0xd8] sm:$0xff]  ;;  %567 = vst.msk [vmem:[#allocation3] sm:$0xff] %vm566_vm3, %v543_v53 }
 0x120   :  { %2121 = vrot.lane.b32.xlu0 %v5557_v16, %s2386_s22  ;;  %1313 = vrot.lane.b32.xlu1 %v5558_v34, %s2388_s24  ;;  %v4419_v41 = vadd.f32 %v3930_v31, %v1532_v14  ;;  %v636_v4 = vmul.f32 %v5494_v38, %v613_v59  ;;  %v2072_v13 = vmul.f32 %v3733_v26, %v2045_v8  ;;  %v1216_v28 = vshra.s32 %v4287_v1, 4 }
 0x121   :  { %v2073_v60 = vmul.f32 %v3733_v26, %v2046_v17  ;;  %v1961_v61 = vpack.c.bf16 %v4414_v37, %v4400_v36  ;;  %v4432_v39 = vadd.f32 %v3930_v31, %v1533_v44  ;;  %v637_v52 = vmul.f32 %v5494_v38, %v614_v45  ;;  %964 = vst.msk [vmem:[#allocation3 + $0x18] sm:$0xff] %vm431_vm2, %v942_v2 }
 0x122   :  { %2197 = vmatprep.subr.bf16.mxu0 %v2156_v33  ;;  %v657_v56 = vadd.f32 %v5500_v54, %v636_v4  ;;  %v4445_v14 = vadd.f32 %v3787_v46, %v2072_v13  ;;  %v1231_v8 = vand.u32 15, %v1215_v43  ;;  %v5559_v17 = vpack.c.bf16 %v4199_v50, %v4192_v42  ;;  %v1086_v53 = vpop.permute.xlu0 %1085 }
 0x123   :  { %v4448_v59 = vadd.f32 %v3787_v46, %v2073_v60  ;;  %v5560_v16 = vpack.c.bf16 %v4215_v0, %v4212_v29  ;;  %v1564_v34 = vpack.c.bf16 %v4432_v39, %v4419_v41  ;;  %v658_v44 = vadd.f32 %v5500_v54, %v637_v52  ;;  %v275_v60 = vpop.permute.xlu1 %274  ;;  %1108 = vst.msk [vmem:[#allocation3 + $0x18] sm:$0xff] %vm566_vm3, %v1086_v53  ;;  %v4577_v41 = vld [vmem:[%s5056_s1 + $0xe0] sm:$0xff] }
 0x124   :  { %1835 = vrot.lane.b32.xlu0 %v5559_v17, %s2388_s24  ;;  %v1232_v45 = vand.u32 15, %v1216_v28  ;;  %v1727_v4 = vshra.s32 %v4427_v47, 20  ;;  %v1247_v13 = vcvt.s32.f32 %v1231_v8  ;;  %v1728_v42 = vshra.s32 %v4439_v18, 20  ;;  %298 = vst.msk [vmem:[#allocation3 + $0x10] sm:$0xff] %vm296_vm1, %v275_v60 }
 0x125   :  { %1447 = vrot.lane.b32.xlu1 %v5560_v16, %s2387_s23  ;;  %v2105_v43 = vpack.c.bf16 %v4448_v59, %v4445_v14  ;;  %v1349_v50 = vshra.s32 %v4261_v23, 8  ;;  %v670_v29 = vpack.c.bf16 %v658_v44, %v657_v56  ;;  %v1350_v33 = vshra.s32 %v4287_v1, 8 }
 0x126   :  { %v1248_v0 = vcvt.s32.f32 %v1232_v45  ;;  %v1743_v2 = vand.u32 15, %v1727_v4  ;;  %v1266_v52 = vmul.f32 %v3735_v15, %v1247_v13  ;;  %v1744_v28 = vand.u32 15, %v1728_v42  ;;  %v800_v60 = vpop.permute.xlu0 %799  ;;  %v2155_v53 = vld [vmem:[#allocation3] sm:$0xff] }
 0x127   :  { %v1365_v17 = vand.u32 15, %v1349_v50  ;;  %v83_v8 = vand.u32 15, %v4377_v49  ;;  %v5561_v16 = vpack.c.bf16 %v4253_v10, %v4249_v58  ;;  %v5562_v56 = vpack.c.bf16 %v4279_v62, %v4274_v30  ;;  %678 = vst.msk [vmem:[#allocation3 + $0x38] sm:$0xff] %vm161_vm0, %v670_v29  ;;  %v410_v10 = vpop.permute.xlu1 %409  ;;  %2198 = vmatpush1.bf16.msra.mxu0 %v2155_v53  ;;  %v4531_v53 = vld [vmem:[%s5056_s1 + $0x40] sm:$0xff] }
 0x128   :  { %v1267_v44 = vmul.f32 %v3735_v15, %v1248_v0  ;;  %v1759_v45 = vcvt.s32.f32 %v1743_v2  ;;  %v1366_v4 = vand.u32 15, %v1350_v33  ;;  %v84_v13 = vand.u32 15, %v4392_v25  ;;  %433 = vst.msk [vmem:[#allocation3 + $0x10] sm:$0xff] %vm431_vm2, %v410_v10 }
 0x129   :  { %1979 = vrot.lane.b32.xlu0 %v5561_v16, %s2387_s23  ;;  %1581 = vrot.lane.b32.xlu1 %v5562_v56, %s2386_s22  ;;  %v4483_v49 = vadd.f32 %v3821_v51, %v1266_v52  ;;  %v1760_v42 = vcvt.s32.f32 %v1744_v28  ;;  %v1381_v50 = vcvt.s32.f32 %v1365_v17  ;;  %v99_v58 = vcvt.s32.f32 %v83_v8  ;;  %821 = vst.msk [vmem:[#allocation3 + $0x28] sm:$0xff] %vm296_vm1, %v800_v60 }
 0x12a   :  { %v4486_v30 = vadd.f32 %v3821_v51, %v1267_v44  ;;  %v1786_v62 = vmul.f32 %v3655_v57, %v1759_v45  ;;  %v1382_v29 = vcvt.s32.f32 %v1366_v4  ;;  %v100_v0 = vcvt.s32.f32 %v84_v13  ;;  %v2158_v45 = vld [vmem:[#allocation3 + $0x18] sm:$0xff] }
 0x12b   :  { %v1787_v25 = vmul.f32 %v3655_v57, %v1760_v42  ;;  %v1400_v2 = vmul.f32 %v3777_v11, %v1381_v50  ;;  %v121_v33 = vmul.f32 %v5517_v63, %v99_v58  ;;  %v1871_v52 = vshra.s32 %v4427_v47, 24  ;;  %v545_v9 = vpop.permute.xlu1 %544  ;;  %2199 = vmatprep.subr.bf16.mxu0 %v2158_v45 }
 0x12c   :  { %v5563_v28 = vpack.c.bf16 %v4298_v32, %v4295_v27  ;;  %v1297_v17 = vpack.c.bf16 %v4486_v30, %v4483_v49  ;;  %v4506_v8 = vadd.f32 %v3709_v20, %v1786_v62  ;;  %v1401_v16 = vmul.f32 %v3777_v11, %v1382_v29  ;;  %568 = vst.msk [vmem:[#allocation3 + $0x10] sm:$0xff] %vm566_vm3, %v545_v9 }
 0x12d   :  { %1315 = vrot.lane.b32.xlu1 %v1296_v3, %s2388_s24  ;;  %v1872_v56 = vshra.s32 %v4439_v18, 24  ;;  %v4511_v44 = vadd.f32 %v3709_v20, %v1787_v25  ;;  %v4514_v27 = vadd.f32 %v3888_v7, %v1400_v2  ;;  %v122_v32 = vmul.f32 %v5517_v63, %v100_v0  ;;  %v944_v3 = vpop.permute.xlu0 %943 }
 0x12e   :  { %2123 = vrot.lane.b32.xlu0 %v5563_v28, %s2386_s22  ;;  %v143_v35 = vadd.f32 %v5520_v40, %v121_v33  ;;  %v4519_v4 = vadd.f32 %v3888_v7, %v1401_v16  ;;  %v1887_v13 = vand.u32 15, %v1871_v52  ;;  %v1483_v50 = vshra.s32 %v4261_v23, 12  ;;  %965 = vst.msk [vmem:[#allocation3 + $0x28] sm:$0xff] %vm431_vm2, %v944_v3  ;;  %v4547_v33 = vld [vmem:[%s5056_s1 + $0x48] sm:$0xff] }
 0x12f   :  { %v1888_v42 = vand.u32 15, %v1872_v56  ;;  %v1818_v58 = vpack.c.bf16 %v4511_v44, %v4506_v8  ;;  %v144_v10 = vadd.f32 %v5520_v40, %v122_v32  ;;  %v1484_v60 = vshra.s32 %v4287_v1, 12 }
 0x130   :  { %v583_v62 = vshra.s32 %v4531_v53, 16  ;;  %v1431_v23 = vpack.c.bf16 %v4519_v4, %v4514_v27  ;;  %v1903_v1 = vcvt.s32.f32 %v1887_v13  ;;  %v1499_v0 = vand.u32 15, %v1483_v50 }
 0x131   :  { %1449 = vrot.lane.b32.xlu1 %v1430_v6, %s2387_s23  ;;  %v1904_v29 = vcvt.s32.f32 %v1888_v42  ;;  %v156_v25 = vpack.c.bf16 %v144_v10, %v143_v35  ;;  %v1500_v2 = vand.u32 15, %v1484_v60  ;;  %v584_v24 = vshra.s32 %v4547_v33, 16  ;;  %v1088_v52 = vpop.permute.xlu0 %1087 }
 0x132   :  { %1837 = vrot.lane.b32.xlu0 %v1817_v55, %s2388_s24  ;;  %v599_v12 = vand.u32 15, %v583_v62  ;;  %v277_v55 = vpop.permute.xlu1 %276  ;;  %v1930_v5 = vmul.f32 %v3683_v22, %v1903_v1  ;;  %v1515_v6 = vcvt.s32.f32 %v1499_v0  ;;  %v2311_v28 = vshrl.u32 %v4427_v47, 28  ;;  %1109 = vst.msk [vmem:[#allocation3 + $0x28] sm:$0xff] %vm566_vm3, %v1088_v52 }
 0x133   :  { %v1931_v21 = vmul.f32 %v3683_v22, %v1904_v29  ;;  %299 = vst.msk [vmem:[#allocation3 + $0x20] sm:$0xff] %vm296_vm1, %v277_v55  ;;  %v1516_v16 = vcvt.s32.f32 %v1500_v2  ;;  %v600_v56 = vand.u32 15, %v584_v24  ;;  %v2312_v35 = vshrl.u32 %v4439_v18, 28  ;;  %v4587_v29 = vld [vmem:[%s5056_s1 + $0xe8] sm:$0xff] }
 0x134   :  { %165 = vst.msk [vmem:[#allocation3 + $0x30] sm:$0xff] %vm161_vm0, %v156_v25  ;;  %v615_v32 = vcvt.s32.f32 %v599_v12  ;;  %v4566_v9 = vadd.f32 %v3748_v19, %v1930_v5  ;;  %v1534_v45 = vmul.f32 %v3855_v48, %v1515_v6  ;;  %v2047_v13 = vcvt.s32.f32 %v2311_v28 }
 0x135   :  { %1583 = vrot.lane.b32.xlu1 %v1564_v34, %s2386_s22  ;;  %v4569_v3 = vadd.f32 %v3748_v19, %v1931_v21  ;;  %v1535_v42 = vmul.f32 %v3855_v48, %v1516_v16  ;;  %v616_v50 = vcvt.s32.f32 %v600_v56  ;;  %v2048_v37 = vcvt.s32.f32 %v2312_v35  ;;  %v802_v39 = vpop.permute.xlu0 %801  ;;  %v2157_v34 = vld [vmem:[#allocation3 + $0x10] sm:$0xff] }
 0x136   :  { %1981 = vrot.lane.b32.xlu0 %v1961_v61, %s2387_s23  ;;  %v638_v36 = vmul.f32 %v5494_v38, %v615_v32  ;;  %v412_v61 = vpop.permute.xlu1 %411  ;;  %v1553_v60 = vadd.f32 %v3930_v31, %v1534_v45  ;;  %v2074_v62 = vmul.f32 %v3733_v26, %v2047_v13  ;;  %v1217_v1 = vshra.s32 %v4427_v47, 4  ;;  %822 = vst.msk [vmem:[#allocation3 + $0x38] sm:$0xff] %vm296_vm1, %v802_v39 }
 0x137   :  { %v1962_v10 = vpack.c.bf16 %v4569_v3, %v4566_v9  ;;  %434 = vst.msk [vmem:[#allocation3 + $0x20] sm:$0xff] %vm431_vm2, %v412_v61  ;;  %2200 = vmatpush1.bf16.msra.mxu0 %v2157_v34  ;;  %v1554_v0 = vadd.f32 %v3930_v31, %v1535_v42  ;;  %v639_v25 = vmul.f32 %v5494_v38, %v616_v50  ;;  %v1218_v55 = vshra.s32 %v4439_v18, 4 }
 0x138   :  { %v659_v2 = vadd.f32 %v5500_v54, %v638_v36  ;;  %v2075_v24 = vmul.f32 %v3733_v26, %v2048_v37  ;;  %v4604_v12 = vadd.f32 %v3787_v46, %v2074_v62  ;;  %v1233_v52 = vand.u32 15, %v1217_v1 }
 0x139   :  { %1317 = vrot.lane.b32.xlu1 %v1297_v17, %s2388_s24  ;;  %v1729_v5 = vshra.s32 %v4577_v41, 20  ;;  %v1565_v21 = vpack.c.bf16 %v1554_v0, %v1553_v60  ;;  %v660_v6 = vadd.f32 %v5500_v54, %v639_v25  ;;  %v1730_v14 = vshra.s32 %v4587_v29, 20  ;;  %v2160_v49 = vld [vmem:[#allocation3 + $0x28] sm:$0xff] }
 0x13a   :  { %2125 = vrot.lane.b32.xlu0 %v2105_v43, %s2386_s22  ;;  %v4610_v28 = vadd.f32 %v3787_v46, %v2075_v24  ;;  %v547_v59 = vpop.permute.xlu1 %546  ;;  %v946_v43 = vpop.permute.xlu0 %945  ;;  %v1234_v30 = vand.u32 15, %v1218_v55  ;;  %v1249_v17 = vcvt.s32.f32 %v1233_v52  ;;  %v1351_v56 = vshra.s32 %v4427_v47, 8  ;;  %2201 = vmatprep.subr.bf16.mxu0 %v2160_v49 }
 0x13b   :  { %v1745_v16 = vand.u32 15, %v1729_v5  ;;  %569 = vst.msk [vmem:[#allocation3 + $0x20] sm:$0xff] %vm566_vm3, %v547_v59  ;;  %v671_v32 = vpack.c.bf16 %v660_v6, %v659_v2  ;;  %v1746_v9 = vand.u32 15, %v1730_v14  ;;  %v1352_v3 = vshra.s32 %v4439_v18, 8 }
 0x13c   :  { %966 = vst.msk [vmem:[#allocation3 + $0x38] sm:$0xff] %vm431_vm2, %v946_v43  ;;  %v2106_v35 = vpack.c.bf16 %v4610_v28, %v4604_v12  ;;  %v1250_v45 = vcvt.s32.f32 %v1234_v30  ;;  %v1268_v13 = vmul.f32 %v3735_v15, %v1249_v17  ;;  %v1367_v50 = vand.u32 15, %v1351_v56 }
 0x13d   :  { %1451 = vrot.lane.b32.xlu1 %v1431_v23, %s2387_s23  ;;  %v1761_v42 = vcvt.s32.f32 %v1745_v16  ;;  %679 = vst.msk [vmem:[#allocation3 + $0x48] sm:$0xff] %vm161_vm0, %v671_v32  ;;  %v1762_v36 = vcvt.s32.f32 %v1746_v9  ;;  %v1368_v37 = vand.u32 15, %v1352_v3  ;;  %v85_v61 = vand.u32 15, %v4531_v53 }
 0x13e   :  { %1839 = vrot.lane.b32.xlu0 %v1818_v58, %s2388_s24  ;;  %v86_v39 = vand.u32 15, %v4547_v33  ;;  %v279_v8 = vpop.permute.xlu1 %278  ;;  %v1090_v44 = vpop.permute.xlu0 %1089  ;;  %v1269_v58 = vmul.f32 %v3735_v15, %v1250_v45  ;;  %v1287_v27 = vadd.f32 %v3821_v51, %v1268_v13  ;;  %v1383_v23 = vcvt.s32.f32 %v1367_v50  ;;  %v4661_v45 = vld [vmem:[%s5056_s1 + $0x50] sm:$0xff] }
 0x13f   :  { %v1788_v4 = vmul.f32 %v3655_v57, %v1761_v42  ;;  %300 = vst.msk [vmem:[#allocation3 + $0x30] sm:$0xff] %vm296_vm1, %v279_v8  ;;  %v1789_v34 = vmul.f32 %v3655_v57, %v1762_v36  ;;  %v1384_v60 = vcvt.s32.f32 %v1368_v37  ;;  %v101_v62 = vcvt.s32.f32 %v85_v61 }
 0x140   :  { %1110 = vst.msk [vmem:[#allocation3 + $0x38] sm:$0xff] %vm566_vm3, %v1090_v44  ;;  %v102_v53 = vcvt.s32.f32 %v86_v39  ;;  %v1288_v33 = vadd.f32 %v3821_v51, %v1269_v58  ;;  %v1402_v0 = vmul.f32 %v3777_v11, %v1383_v23  ;;  %v1873_v25 = vshra.s32 %v4577_v41, 24 }
 0x141   :  { %1585 = vrot.lane.b32.xlu1 %v1565_v21, %s2386_s22  ;;  %v1809_v1 = vadd.f32 %v3709_v20, %v1788_v4  ;;  %v1810_v2 = vadd.f32 %v3709_v20, %v1789_v34  ;;  %v1403_v24 = vmul.f32 %v3777_v11, %v1384_v60  ;;  %v123_v12 = vmul.f32 %v5517_v63, %v101_v62 }
 0x142   :  { %1983 = vrot.lane.b32.xlu0 %v1962_v10, %s2387_s23  ;;  %v124_v55 = vmul.f32 %v5517_v63, %v102_v53  ;;  %v414_v52 = vpop.permute.xlu1 %413  ;;  %v804_v10 = vpop.permute.xlu0 %803  ;;  %v2159_v5 = vld [vmem:[#allocation3 + $0x20] sm:$0xff]  ;;  %v1298_v21 = vpack.c.bf16 %v1288_v33, %v1287_v27  ;;  %v1421_v6 = vadd.f32 %v3888_v7, %v1402_v0  ;;  %v1874_v28 = vshra.s32 %v4587_v29, 24 }
 0x143   :  { %v1889_v14 = vand.u32 15, %v1873_v25  ;;  %435 = vst.msk [vmem:[#allocation3 + $0x30] sm:$0xff] %vm431_vm2, %v414_v52  ;;  %2202 = vmatpush1.bf16.msra.mxu0 %v2159_v5  ;;  %v1819_v59 = vpack.c.bf16 %v1810_v2, %v1809_v1  ;;  %v1422_v43 = vadd.f32 %v3888_v7, %v1403_v24  ;;  %v145_v49 = vadd.f32 %v5520_v40, %v123_v12 }
 0x144   :  { %823 = vst.msk [vmem:[#allocation3 + $0x48] sm:$0xff] %vm296_vm1, %v804_v10  ;;  %v146_v30 = vadd.f32 %v5520_v40, %v124_v55  ;;  %v1890_v17 = vand.u32 15, %v1874_v28  ;;  %v1485_v56 = vshra.s32 %v4427_v47, 12  ;;  %v1486_v32 = vshra.s32 %v4439_v18, 12 }
 0x145   :  { %1319 = vrot.lane.b32.xlu1 %v1298_v21, %s2388_s24  ;;  %v1905_v16 = vcvt.s32.f32 %v1889_v14  ;;  %v1432_v9 = vpack.c.bf16 %v1422_v43, %v1421_v6  ;;  %v585_v13 = vshra.s32 %v4661_v45, 16  ;;  %v2313_v58 = vshrl.u32 %v4577_v41, 28  ;;  %v4693_v6 = vld [vmem:[%s5056_s1 + $0xf0] sm:$0xff] }
 0x146   :  { %2127 = vrot.lane.b32.xlu0 %v2106_v35, %s2386_s22  ;;  %v157_v3 = vpack.c.bf16 %v146_v30, %v145_v49  ;;  %v4667_v35 = vld [vmem:[%s5056_s1 + $0x58] sm:$0xff]  ;;  %v549_v50 = vpop.permute.xlu1 %548  ;;  %v948_v47 = vpop.permute.xlu0 %947  ;;  %v1906_v18 = vcvt.s32.f32 %v1890_v17  ;;  %v1501_v61 = vand.u32 15, %v1485_v56  ;;  %v1502_v39 = vand.u32 15, %v1486_v32 }
 0x147   :  { %v586_v42 = vshra.s32 %v4667_v35, 16  ;;  %v2162_v36 = vld [vmem:[#allocation3 + $0x38] sm:$0xff]  ;;  %v1932_v37 = vmul.f32 %v3683_v22, %v1905_v16  ;;  %570 = vst.msk [vmem:[#allocation3 + $0x30] sm:$0xff] %vm566_vm3, %v549_v50  ;;  %v601_v8 = vand.u32 15, %v585_v13  ;;  %v2314_v27 = vshrl.u32 %v4587_v29, 28 }
 0x148   :  { %967 = vst.msk [vmem:[#allocation3 + $0x48] sm:$0xff] %vm431_vm2, %v948_v47  ;;  %2203 = vmatprep.subr.bf16.mxu0 %v2162_v36  ;;  %v1933_v4 = vmul.f32 %v3683_v22, %v1906_v18  ;;  %v1517_v34 = vcvt.s32.f32 %v1501_v61  ;;  %v1518_v60 = vcvt.s32.f32 %v1502_v39  ;;  %v2049_v33 = vcvt.s32.f32 %v2313_v58  ;;  %v4701_v49 = vld [vmem:[%s5056_s1 + $0xf8] sm:$0xff] }
 0x149   :  { %166 = vst.msk [vmem:[#allocation3 + $0x40] sm:$0xff] %vm161_vm0, %v157_v3  ;;  %v602_v44 = vand.u32 15, %v586_v42  ;;  %1453 = vrot.lane.b32.xlu1 %v1432_v9, %s2387_s23  ;;  %v1953_v23 = vadd.f32 %v3748_v19, %v1932_v37  ;;  %v617_v62 = vcvt.s32.f32 %v601_v8  ;;  %v2050_v1 = vcvt.s32.f32 %v2314_v27 }
 0x14a   :  { %1841 = vrot.lane.b32.xlu0 %v1819_v59, %s2388_s24  ;;  %v281_v0 = vpop.permute.xlu1 %280  ;;  %v1092_v25 = vpop.permute.xlu0 %1091  ;;  %v1954_v2 = vadd.f32 %v3748_v19, %v1933_v4  ;;  %v1536_v24 = vmul.f32 %v3855_v48, %v1517_v34  ;;  %v1537_v12 = vmul.f32 %v3855_v48, %v1518_v60  ;;  %v1219_v55 = vshra.s32 %v4577_v41, 4 }
 0x14b   :  { %v618_v53 = vcvt.s32.f32 %v602_v44  ;;  %301 = vst.msk [vmem:[#allocation3 + $0x40] sm:$0xff] %vm296_vm1, %v281_v0  ;;  %v640_v52 = vmul.f32 %v5494_v38, %v617_v62  ;;  %v2076_v5 = vmul.f32 %v3733_v26, %v2049_v33  ;;  %v2077_v21 = vmul.f32 %v3733_v26, %v2050_v1 }
 0x14c   :  { %1111 = vst.msk [vmem:[#allocation3 + $0x48] sm:$0xff] %vm566_vm3, %v1092_v25  ;;  %v1963_v28 = vpack.c.bf16 %v1954_v2, %v1953_v23  ;;  %v1555_v14 = vadd.f32 %v3930_v31, %v1536_v24  ;;  %v1556_v59 = vadd.f32 %v3930_v31, %v1537_v12  ;;  %v1220_v43 = vshra.s32 %v4587_v29, 4 }
 0x14d   :  { %v641_v10 = vmul.f32 %v5494_v38, %v618_v53  ;;  %v661_v30 = vadd.f32 %v5500_v54, %v640_v52  ;;  %v2097_v16 = vadd.f32 %v3787_v46, %v2076_v5  ;;  %v2098_v56 = vadd.f32 %v3787_v46, %v2077_v21 }
 0x14e   :  { %1985 = vrot.lane.b32.xlu0 %v1963_v28, %s2387_s23  ;;  %v1566_v32 = vpack.c.bf16 %v1556_v59, %v1555_v14  ;;  %v416_v9 = vpop.permute.xlu1 %415  ;;  %v806_v3 = vpop.permute.xlu0 %805  ;;  %v2161_v13 = vld [vmem:[#allocation3 + $0x30] sm:$0xff]  ;;  %v1235_v42 = vand.u32 15, %v1219_v55  ;;  %v1236_v50 = vand.u32 15, %v1220_v43  ;;  %v1731_v47 = vshra.s32 %v4693_v6, 20 }
 0x14f   :  { %v662_v17 = vadd.f32 %v5500_v54, %v641_v10  ;;  %436 = vst.msk [vmem:[#allocation3 + $0x40] sm:$0xff] %vm431_vm2, %v416_v9  ;;  %2204 = vmatpush1.bf16.msra.mxu0 %v2161_v13  ;;  %v2107_v18 = vpack.c.bf16 %v2098_v56, %v2097_v16  ;;  %v1732_v37 = vshra.s32 %v4701_v49, 20  ;;  %v1353_v61 = vshra.s32 %v4577_v41, 8 }
 0x150   :  { %1587 = vrot.lane.b32.xlu1 %v1566_v32, %s2386_s22  ;;  %v1251_v39 = vcvt.s32.f32 %v1235_v42  ;;  %v1252_v8 = vcvt.s32.f32 %v1236_v50  ;;  %v1747_v44 = vand.u32 15, %v1731_v47  ;;  %v1354_v58 = vshra.s32 %v4587_v29, 8 }
 0x151   :  { %v672_v36 = vpack.c.bf16 %v662_v17, %v661_v30  ;;  %v1748_v27 = vand.u32 15, %v1732_v37  ;;  %v1369_v4 = vand.u32 15, %v1353_v61  ;;  %v87_v23 = vand.u32 15, %v4661_v45  ;;  %v4746_v37 = vld [vmem:[%s5056_s1 + $0x60] sm:$0xff] }
 0x152   :  { %v88_v34 = vand.u32 15, %v4667_v35  ;;  %2129 = vrot.lane.b32.xlu0 %v2107_v18, %s2386_s22  ;;  %v1270_v60 = vmul.f32 %v3735_v15, %v1251_v39  ;;  %v1271_v62 = vmul.f32 %v3735_v15, %v1252_v8  ;;  %v551_v53 = vpop.permute.xlu1 %550  ;;  %v950_v33 = vpop.permute.xlu0 %949  ;;  %v1763_v0 = vcvt.s32.f32 %v1747_v44 }
 0x153   :  { %680 = vst.msk [vmem:[#allocation3 + $0x58] sm:$0xff] %vm161_vm0, %v672_v36  ;;  %v2164_v1 = vld [vmem:[#allocation3 + $0x48] sm:$0xff]  ;;  %v1370_v25 = vand.u32 15, %v1354_v58  ;;  %v1764_v45 = vcvt.s32.f32 %v1748_v27  ;;  %v1385_v35 = vcvt.s32.f32 %v1369_v4  ;;  %v103_v2 = vcvt.s32.f32 %v87_v23 }
 0x154   :  { %824 = vst.msk [vmem:[#allocation3 + $0x58] sm:$0xff] %vm296_vm1, %v806_v3  ;;  %2205 = vmatprep.subr.bf16.mxu0 %v2164_v1  ;;  %v104_v24 = vcvt.s32.f32 %v88_v34  ;;  %v1289_v12 = vadd.f32 %v3821_v51, %v1270_v60  ;;  %v1290_v55 = vadd.f32 %v3821_v51, %v1271_v62  ;;  %v1790_v52 = vmul.f32 %v3655_v57, %v1763_v0  ;;  %v4756_v34 = vld [vmem:[%s5056_s1 + $0x68] sm:$0xff] }
 0x155   :  { %571 = vst.msk [vmem:[#allocation3 + $0x40] sm:$0xff] %vm566_vm3, %v551_v53  ;;  %v1386_v10 = vcvt.s32.f32 %v1370_v25  ;;  %v1791_v5 = vmul.f32 %v3655_v57, %v1764_v45  ;;  %v1404_v21 = vmul.f32 %v3777_v11, %v1385_v35  ;;  %v125_v28 = vmul.f32 %v5517_v63, %v103_v2 }
 0x156   :  { %968 = vst.msk [vmem:[#allocation3 + $0x58] sm:$0xff] %vm431_vm2, %v950_v33  ;;  %v126_v14 = vmul.f32 %v5517_v63, %v104_v24  ;;  %v1299_v59 = vpack.c.bf16 %v1290_v55, %v1289_v12  ;;  %v1811_v43 = vadd.f32 %v3709_v20, %v1790_v52  ;;  %v283_v17 = vpop.permute.xlu1 %282  ;;  %v1094_v16 = vpop.permute.xlu0 %1093  ;;  %v1875_v56 = vshra.s32 %v4693_v6, 24 }
 0x157   :  { %v1405_v30 = vmul.f32 %v3777_v11, %v1386_v10  ;;  %v1812_v32 = vadd.f32 %v3709_v20, %v1791_v5  ;;  %v1423_v9 = vadd.f32 %v3888_v7, %v1404_v21  ;;  %v147_v57 = vadd.f32 %v5520_v40, %v125_v28  ;;  %1112 = vst.msk [vmem:[#allocation3 + $0x58] sm:$0xff] %vm566_vm3, %v1094_v16 }
 0x158   :  { %v148_v3 = vadd.f32 %v5520_v40, %v126_v14  ;;  %1321 = vrot.lane.b32.xlu1 %v1299_v59, %s2388_s24  ;;  %v1876_v42 = vshra.s32 %v4701_v49, 24  ;;  %v1891_v50 = vand.u32 15, %v1875_v56  ;;  %v1487_v47 = vshra.s32 %v4577_v41, 12 }
 0x159   :  { %v1424_v13 = vadd.f32 %v3888_v7, %v1405_v30  ;;  %v1820_v36 = vpack.c.bf16 %v1812_v32, %v1811_v43  ;;  %v1488_v20 = vshra.s32 %v4587_v29, 12  ;;  %v587_v61 = vshra.s32 %v4746_v37, 16 }
 0x15a   :  { %v158_v18 = vpack.c.bf16 %v148_v3, %v147_v57  ;;  %v1892_v8 = vand.u32 15, %v1876_v42  ;;  %v1907_v44 = vcvt.s32.f32 %v1891_v50  ;;  %v1503_v58 = vand.u32 15, %v1487_v47  ;;  %v418_v27 = vpop.permute.xlu1 %417  ;;  %v4749_v4 = vpop.permute.xlu0 %807 }
 0x15b   :  { %v1433_v39 = vpack.c.bf16 %v1424_v13, %v1423_v9  ;;  %1843 = vrot.lane.b32.xlu0 %v1820_v36, %s2388_s24  ;;  %v1504_v41 = vand.u32 15, %v1488_v20  ;;  %v588_v60 = vshra.s32 %v4756_v34, 16  ;;  %v603_v62 = vand.u32 15, %v587_v61 }
 0x15c   :  { %v2163_v23 = vld [vmem:[#allocation3 + $0x40] sm:$0xff]  ;;  %167 = vst.msk [vmem:[#allocation3 + $0x50] sm:$0xff] %vm161_vm0, %v158_v18  ;;  %v2315_v53 = vshrl.u32 %v4693_v6, 28  ;;  %v1908_v33 = vcvt.s32.f32 %v1892_v8  ;;  %v1934_v1 = vmul.f32 %v3683_v22, %v1907_v44  ;;  %v1519_v0 = vcvt.s32.f32 %v1503_v58 }
 0x15d   :  { %2206 = vmatpush1.bf16.msra.mxu0 %v2163_v23  ;;  %1455 = vrot.lane.b32.xlu1 %v1433_v39, %s2387_s23  ;;  %302 = vst.msk [vmem:[#allocation3 + $0x50] sm:$0xff] %vm296_vm1, %v283_v17  ;;  %v2316_v25 = vshrl.u32 %v4701_v49, 28  ;;  %v1520_v45 = vcvt.s32.f32 %v1504_v41  ;;  %v604_v35 = vand.u32 15, %v588_v60  ;;  %v619_v2 = vcvt.s32.f32 %v603_v62 }
 0x15e   :  { %437 = vst.msk [vmem:[#allocation3 + $0x50] sm:$0xff] %vm431_vm2, %v418_v27  ;;  %v2051_v24 = vcvt.s32.f32 %v2315_v53  ;;  %v1935_v12 = vmul.f32 %v3683_v22, %v1908_v33  ;;  %v1955_v55 = vadd.f32 %v3748_v19, %v1934_v1  ;;  %v1538_v52 = vmul.f32 %v3855_v48, %v1519_v0  ;;  %v553_v5 = vpop.permute.xlu1 %552  ;;  %v952_v21 = vpop.permute.xlu0 %951  ;;  %v2166_v28 = vld [vmem:[#allocation3 + $0x58] sm:$0xff] }
 0x15f   :  { %v2052_v10 = vcvt.s32.f32 %v2316_v25  ;;  %v1539_v14 = vmul.f32 %v3855_v48, %v1520_v45  ;;  %v620_v59 = vcvt.s32.f32 %v604_v35  ;;  %v642_v43 = vmul.f32 %v5494_v38, %v619_v2  ;;  %572 = vst.msk [vmem:[#allocation3 + $0x50] sm:$0xff] %vm566_vm3, %v553_v5  ;;  %2207 = vmatprep.subr.bf16.mxu0 %v2166_v28 }
 0x160   :  { %v2078_v30 = vmul.f32 %v3733_v26, %v2051_v24  ;;  %v1956_v22 = vadd.f32 %v3748_v19, %v1935_v12  ;;  %v1557_v17 = vadd.f32 %v3930_v31, %v1538_v52  ;;  %v1221_v56 = vshra.s32 %v4693_v6, 4 }
 0x161   :  { %v2079_v16 = vmul.f32 %v3733_v26, %v2052_v10  ;;  %v1558_v32 = vadd.f32 %v3930_v31, %v1539_v14  ;;  %v643_v9 = vmul.f32 %v5494_v38, %v620_v59  ;;  %v663_v57 = vadd.f32 %v5500_v54, %v642_v43  ;;  %v2346_v59 = vld [vmem:[%s5056_s1 + $0x70] sm:$0xff] }
 0x162   :  { %v2099_v3 = vadd.f32 %v3787_v46, %v2078_v30  ;;  %v1964_v13 = vpack.c.bf16 %v1956_v22, %v1955_v55  ;;  %v1222_v50 = vshra.s32 %v4701_v49, 4  ;;  %v1237_v19 = vand.u32 15, %v1221_v56  ;;  %v4782_v47 = vpop.permute.xlu1 %284  ;;  %v1096_v36 = vpop.permute.xlu0 %1095 }
 0x163   :  { %v2100_v42 = vadd.f32 %v3787_v46, %v2079_v16  ;;  %v1567_v26 = vpack.c.bf16 %v1558_v32, %v1557_v17  ;;  %v664_v18 = vadd.f32 %v5500_v54, %v643_v9  ;;  %v1355_v20 = vshra.s32 %v4693_v6, 8  ;;  %v2347_v32 = vld [vmem:[%s5056_s1 + $0x78] sm:$0xff] }
 0x164   :  { %v1356_v61 = vshra.s32 %v4701_v49, 8  ;;  %1987 = vrot.lane.b32.xlu0 %v1964_v13, %s2387_s23  ;;  %v1238_v8 = vand.u32 15, %v1222_v50  ;;  %v1253_v44 = vcvt.s32.f32 %v1237_v19  ;;  %v89_v46 = vand.u32 15, %v4746_v37 }
 0x165   :  { %v2108_v39 = vpack.c.bf16 %v2100_v42, %v2099_v3  ;;  %1589 = vrot.lane.b32.xlu1 %v1567_v26, %s2386_s22  ;;  %v673_v58 = vpack.c.bf16 %v664_v18, %v663_v57  ;;  %v1371_v27 = vand.u32 15, %v1355_v20  ;;  %v90_v41 = vand.u32 15, %v4756_v34 }
 0x166   :  { %v1372_v23 = vand.u32 15, %v1356_v61  ;;  %v1254_v60 = vcvt.s32.f32 %v1238_v8  ;;  %v1272_v62 = vmul.f32 %v3735_v15, %v1253_v44  ;;  %v105_v53 = vcvt.s32.f32 %v89_v46  ;;  %v420_v1 = vpop.permute.xlu1 %419  ;;  %v4793_v0 = vpop.permute.xlu0 %809  ;;  %v2165_v25 = vld [vmem:[#allocation3 + $0x50] sm:$0xff]  ;;  %v2349_v44 = vld [vmem:[%s5056_s1 + $0x88] sm:$0xff] }
 0x167   :  { %v1489_v33 = vshra.s32 %v4693_v6, 12  ;;  %681 = vst.msk [vmem:[#allocation3 + $0x68] sm:$0xff] %vm161_vm0, %v673_v58  ;;  %v1387_v37 = vcvt.s32.f32 %v1371_v27  ;;  %v106_v35 = vcvt.s32.f32 %v90_v41  ;;  %v1490_v2 = vshra.s32 %v4701_v49, 12  ;;  %2208 = vmatpush1.bf16.msra.mxu0 %v2165_v25 }
 0x168   :  { %v1388_v45 = vcvt.s32.f32 %v1372_v23  ;;  %825 = vst.msk [vmem:[#allocation3 + $0x68] sm:$0xff] %vm296_vm1, %v4749_v4  ;;  %2131 = vrot.lane.b32.xlu0 %v2108_v39, %s2386_s22  ;;  %v1273_v34 = vmul.f32 %v3735_v15, %v1254_v60  ;;  %v1291_v24 = vadd.f32 %v3821_v51, %v1272_v62  ;;  %v127_v12 = vmul.f32 %v5517_v63, %v105_v53 }
 0x169   :  { %v1505_v55 = vand.u32 15, %v1489_v33  ;;  %969 = vst.msk [vmem:[#allocation3 + $0x68] sm:$0xff] %vm431_vm2, %v952_v21  ;;  %v1406_v52 = vmul.f32 %v3777_v11, %v1387_v37  ;;  %v128_v5 = vmul.f32 %v5517_v63, %v106_v35  ;;  %v1506_v28 = vand.u32 15, %v1490_v2 }
 0x16a   :  { %v1407_v10 = vmul.f32 %v3777_v11, %v1388_v45  ;;  %v1292_v4 = vadd.f32 %v3821_v51, %v1273_v34  ;;  %v149_v14 = vadd.f32 %v5520_v40, %v127_v12  ;;  %1113 = vst.msk [vmem:[#allocation3 + $0x68] sm:$0xff] %vm566_vm3, %v1096_v36  ;;  %v589_v43 = vshra.s32 %v2346_v59, 16  ;;  %v555_v21 = vpop.permute.xlu1 %554  ;;  %v4813_v30 = vpop.permute.xlu0 %953 }
 0x16b   :  { %v1521_v15 = vcvt.s32.f32 %v1505_v55  ;;  %v1425_v11 = vadd.f32 %v3888_v7, %v1406_v52  ;;  %v150_v17 = vadd.f32 %v5520_v40, %v128_v5  ;;  %v1522_v51 = vcvt.s32.f32 %v1506_v28  ;;  %v5564_v28 = vld [vmem:[#allocation15_spill] sm:$0xff] }
 0x16c   :  { %v1426_v22 = vadd.f32 %v3888_v7, %v1407_v10  ;;  %v1300_v16 = vpack.c.bf16 %v1292_v4, %v1291_v24  ;;  %v590_v9 = vshra.s32 %v2347_v32, 16  ;;  %v605_v57 = vand.u32 15, %v589_v43  ;;  %v2351_v43 = vld [vmem:[%s5056_s1 + $0x98] sm:$0xff] }
 0x16d   :  { %v1540_v56 = vmul.f32 %v3855_v48, %v1521_v15  ;;  %v159_v13 = vpack.c.bf16 %v150_v17, %v149_v14  ;;  %v1541_v42 = vmul.f32 %v3855_v48, %v1522_v51  ;;  %v91_v50 = vand.u32 15, %v2346_v59  ;;  %v2348_v48 = vld [vmem:[%s5056_s1 + $0x80] sm:$0xff]  ;;  %v5565_v15 = vld [vmem:[#allocation11_spill] sm:$0xff] }
 0x16e   :  { %v1434_v3 = vpack.c.bf16 %v1426_v22, %v1425_v11  ;;  %1323 = vrot.lane.b32.xlu1 %v1300_v16, %s2388_s24  ;;  %v606_v19 = vand.u32 15, %v590_v9  ;;  %v621_v36 = vcvt.s32.f32 %v605_v57  ;;  %v92_v26 = vand.u32 15, %v2347_v32  ;;  %v4825_v18 = vpop.permute.xlu1 %286  ;;  %v4827_v20 = vpop.permute.xlu0 %1097  ;;  %v5566_v16 = vld [vmem:[#allocation16_spill] sm:$0xff] }
 0x16f   :  { %v1559_v7 = vadd.f32 %v3930_v31, %v1540_v56  ;;  %168 = vst.msk [vmem:[#allocation3 + $0x60] sm:$0xff] %vm161_vm0, %v159_v13  ;;  %v1560_v61 = vadd.f32 %v3930_v31, %v1541_v42  ;;  %v107_v39 = vcvt.s32.f32 %v91_v50  ;;  %v1609_v8 = vshra.s32 %v2348_v48, 16  ;;  %v5567_v9 = vld [vmem:[#allocation12_spill] sm:$0xff] }
 0x170   :  { %v1610_v46 = vshra.s32 %v2349_v44, 16  ;;  %303 = vst.msk [vmem:[#allocation3 + $0x60] sm:$0xff] %vm296_vm1, %v4782_v47  ;;  %v622_v58 = vcvt.s32.f32 %v606_v19  ;;  %v644_v27 = vmul.f32 %v5494_v38, %v621_v36  ;;  %v108_v23 = vcvt.s32.f32 %v92_v26 }
 0x171   :  { %v1115_v41 = vand.u32 15, %v2348_v48  ;;  %v1568_v31 = vpack.c.bf16 %v1560_v61, %v1559_v7  ;;  %438 = vst.msk [vmem:[#allocation3 + $0x60] sm:$0xff] %vm431_vm2, %v420_v1  ;;  %v2168_v60 = vld [vmem:[#allocation3 + $0x68] sm:$0xff]  ;;  %v129_v62 = vmul.f32 %v5517_v63, %v107_v39  ;;  %v1625_v53 = vand.u32 15, %v1609_v8  ;;  %v2352_v61 = vld [vmem:[%s5056_s1 + $0xa0] sm:$0xff] }
 0x172   :  { %v1626_v33 = vand.u32 15, %v1610_v46  ;;  %1457 = vrot.lane.b32.xlu1 %v1434_v3, %s2387_s23  ;;  %v645_v25 = vmul.f32 %v5494_v38, %v622_v58  ;;  %v665_v37 = vadd.f32 %v5500_v54, %v644_v27  ;;  %573 = vst.msk [vmem:[#allocation3 + $0x60] sm:$0xff] %vm566_vm3, %v555_v21  ;;  %2209 = vmatprep.subr.bf16.mxu0 %v2168_v60  ;;  %v422_v45 = vpop.permute.xlu1 %421  ;;  %v1830_v35 = vpop.permute.xlu0 %1829  ;;  %v1116_v2 = vand.u32 15, %v2349_v44  ;;  %v2331_v1 = vld [vmem:[%s5055_s0 + $0x4] ss:$8 sps:$4 sm:$0xff]   ;;  %s2389_s23 = smov [#allocation4]  }
 0x173   :  { %v130_v47 = vmul.f32 %v5517_v63, %v108_v23  ;;  %v151_v34 = vadd.f32 %v5520_v40, %v129_v62  ;;  %v1641_v24 = vcvt.s32.f32 %v1625_v53  ;;  %v1131_v55 = vcvt.s32.f32 %v1115_v41  ;;  %v2350_v63 = vld [vmem:[%s5056_s1 + $0x90] sm:$0xff]  ;;  %2229 = vmatprep.mubr.bf16.mxu0 %v2331_v1  ;;  %v2353_v48 = vld [vmem:[%s5056_s1 + $0xa8] sm:$0xff] }
 0x174   :  { %v1642_v12 = vcvt.s32.f32 %v1626_v33  ;;  %v666_v38 = vadd.f32 %v5500_v54, %v645_v25  ;;  %v1132_v10 = vcvt.s32.f32 %v1116_v2  ;;  %v1611_v5 = vshra.s32 %v2350_v63, 16 }
 0x175   :  { %v152_v52 = vadd.f32 %v5520_v40, %v130_v47  ;;  %v1664_v4 = vmul.f32 %v5564_v28, %v1641_v24  ;;  %v1153_v59 = vmul.f32 %v5565_v15, %v1131_v55  ;;  %v1612_v54 = vshra.s32 %v2351_v43, 16  ;;  %v2354_v24 = vld [vmem:[%s5056_s1 + $0xb0] sm:$0xff] }
 0x176   :  { %v1665_v14 = vmul.f32 %v5564_v28, %v1642_v12  ;;  %1591 = vrot.lane.b32.xlu1 %v1568_v31, %s2386_s22  ;;  %v674_v40 = vpack.c.bf16 %v666_v38, %v665_v37  ;;  %v557_v11 = vpop.permute.xlu1 %556  ;;  %v1974_v22 = vpop.permute.xlu0 %1973  ;;  %v1154_v17 = vmul.f32 %v5565_v15, %v1132_v10  ;;  %v1627_v51 = vand.u32 15, %v1611_v5 }
 0x177   :  { %v160_v21 = vpack.c.bf16 %v152_v52, %v151_v34  ;;  %v1685_v56 = vadd.f32 %v5566_v16, %v1664_v4  ;;  %v1175_v57 = vadd.f32 %v5567_v9, %v1153_v59  ;;  %v1628_v3 = vand.u32 15, %v1612_v54  ;;  %v2355_v4 = vld [vmem:[%s5056_s1 + $0xb8] sm:$0xff] }
 0x178   :  { %v1686_v32 = vadd.f32 %v5566_v16, %v1665_v14  ;;  %682 = vst.msk [vmem:[#allocation3 + $0x78] sm:$0xff] %vm161_vm0, %v674_v40  ;;  %v1176_v13 = vadd.f32 %v5567_v9, %v1154_v17  ;;  %v1643_v42 = vcvt.s32.f32 %v1627_v51  ;;  %v1117_v50 = vand.u32 15, %v2350_v63 }
 0x179   :  { %169 = vst.msk [vmem:[#allocation3 + $0x70] sm:$0xff] %vm161_vm0, %v160_v21  ;;  %v1118_v7 = vand.u32 15, %v2351_v43  ;;  %v2167_v36 = vld [vmem:[#allocation3 + $0x60] sm:$0xff]  ;;  %v1644_v26 = vcvt.s32.f32 %v1628_v3  ;;  %v1613_v39 = vshra.s32 %v2352_v61, 16  ;;  %v1614_v8 = vshra.s32 %v2353_v48, 16 }
 0x17a   :  { %826 = vst.msk [vmem:[#allocation3 + $0x78] sm:$0xff] %vm296_vm1, %v4793_v0  ;;  %304 = vst.msk [vmem:[#allocation3 + $0x70] sm:$0xff] %vm296_vm1, %v4825_v18  ;;  %v1701_v19 = vpack.c.bf16 %v1686_v32, %v1685_v56  ;;  %2210 = vmatpush1.bf16.msra.mxu0 %v2167_v36  ;;  %v1191_v0 = vpack.c.bf16 %v1176_v13, %v1175_v57  ;;  %v1310_v18 = vpop.permute.xlu1 %1309  ;;  %v2118_v44 = vpop.permute.xlu0 %2117  ;;  %v1666_v46 = vmul.f32 %v5564_v28, %v1643_v42 }
 0x17b   :  { %970 = vst.msk [vmem:[#allocation3 + $0x78] sm:$0xff] %vm431_vm2, %v4813_v30  ;;  %439 = vst.msk [vmem:[#allocation3 + $0x70] sm:$0xff] %vm431_vm2, %v422_v45  ;;  %v1133_v58 = vcvt.s32.f32 %v1117_v50  ;;  %v1134_v27 = vcvt.s32.f32 %v1118_v7  ;;  %v1667_v23 = vmul.f32 %v5564_v28, %v1644_v26  ;;  %v1629_v30 = vand.u32 15, %v1613_v39  ;;  %v2356_v50 = vld [vmem:[%s5056_s1 + $0xc0] sm:$0xff] }
 0x17c   :  { %1114 = vst.msk [vmem:[#allocation3 + $0x78] sm:$0xff] %vm566_vm3, %v4827_v20  ;;  %574 = vst.msk [vmem:[#allocation3 + $0x70] sm:$0xff] %vm566_vm3, %v557_v11  ;;  %v1630_v41 = vand.u32 15, %v1614_v8  ;;  %v1119_v31 = vand.u32 15, %v2352_v61  ;;  %v1687_v60 = vadd.f32 %v5566_v16, %v1666_v46  ;;  %v1120_v20 = vand.u32 15, %v2353_v48 }
 0x17d   :  { %1709 = vst.msk [vmem:[#allocation3 + $0x88] sm:$0xff] %vm161_vm0, %v1701_v19  ;;  %1199 = vst.msk [vmem:[#allocation3 + $0x80] sm:$0xff] %vm161_vm0, %v1191_v0  ;;  %v1155_v62 = vmul.f32 %v5565_v15, %v1133_v58  ;;  %v1156_v53 = vmul.f32 %v5565_v15, %v1134_v27  ;;  %v1688_v33 = vadd.f32 %v5566_v16, %v1667_v23  ;;  %v1645_v25 = vcvt.s32.f32 %v1629_v30  ;;  %v2357_v19 = vld [vmem:[%s5056_s1 + $0xc8] sm:$0xff] }
 0x17e   :  { %1853 = vst.msk [vmem:[#allocation3 + $0x88] sm:$0xff] %vm296_vm1, %v1830_v35  ;;  %1333 = vst.msk [vmem:[#allocation3 + $0x80] sm:$0xff] %vm296_vm1, %v1310_v18  ;;  %v1646_v37 = vcvt.s32.f32 %v1630_v41  ;;  %v1135_v47 = vcvt.s32.f32 %v1119_v31  ;;  %v1444_v45 = vpop.permute.xlu1 %1443  ;;  %v1832_v35 = vpop.permute.xlu0 %1831  ;;  %v1136_v34 = vcvt.s32.f32 %v1120_v20  ;;  %v1615_v12 = vshra.s32 %v2354_v24, 16 }
 0x17f   :  { %1997 = vst.msk [vmem:[#allocation3 + $0x88] sm:$0xff] %vm431_vm2, %v1974_v22  ;;  %v1177_v2 = vadd.f32 %v5567_v9, %v1155_v62  ;;  %v1178_v1 = vadd.f32 %v5567_v9, %v1156_v53  ;;  %1467 = vst.msk [vmem:[#allocation3 + $0x80] sm:$0xff] %vm431_vm2, %v1444_v45  ;;  %v1702_v55 = vpack.c.bf16 %v1688_v33, %v1687_v60  ;;  %v1616_v14 = vshra.s32 %v2355_v4, 16 }
 0x180   :  { %2141 = vst.msk [vmem:[#allocation3 + $0x88] sm:$0xff] %vm566_vm3, %v2118_v44  ;;  %v1668_v38 = vmul.f32 %v5564_v28, %v1645_v25  ;;  %v1669_v52 = vmul.f32 %v5564_v28, %v1646_v37  ;;  %v1157_v10 = vmul.f32 %v5565_v15, %v1135_v47  ;;  %v1158_v5 = vmul.f32 %v5565_v15, %v1136_v34  ;;  %v2358_v47 = vld [vmem:[%s5056_s1 + $0xd0] sm:$0xff]  ;;  %v2359_v34 = vld [vmem:[%s5056_s1 + $0xd8] sm:$0xff] }
 0x181   :  { %v1192_v63 = vpack.c.bf16 %v1178_v1, %v1177_v2  ;;  %v1631_v59 = vand.u32 15, %v1615_v12  ;;  %1710 = vst.msk [vmem:[#allocation3 + $0x98] sm:$0xff] %vm161_vm0, %v1702_v55  ;;  %v1121_v21 = vand.u32 15, %v2354_v24  ;;  %v1632_v32 = vand.u32 15, %v1616_v14 }
 0x182   :  { %v1689_v43 = vadd.f32 %v5566_v16, %v1668_v38  ;;  %v1690_v54 = vadd.f32 %v5566_v16, %v1669_v52  ;;  %v1179_v40 = vadd.f32 %v5567_v9, %v1157_v10  ;;  %1854 = vst.msk [vmem:[#allocation3 + $0x98] sm:$0xff] %vm296_vm1, %v1832_v35  ;;  %v1578_v17 = vpop.permute.xlu1 %1577  ;;  %v1976_v51 = vpop.permute.xlu0 %1975  ;;  %v1180_v56 = vadd.f32 %v5567_v9, %v1158_v5 }
 0x183   :  { %v2170_v11 = vld [vmem:[#allocation3 + $0x78] sm:$0xff]  ;;  %v2169_v22 = vld [vmem:[#allocation3 + $0x70] sm:$0xff]  ;;  %1200 = vst.msk [vmem:[#allocation3 + $0x90] sm:$0xff] %vm161_vm0, %v1192_v63  ;;  %v1647_v57 = vcvt.s32.f32 %v1631_v59  ;;  %v1122_v3 = vand.u32 15, %v2355_v4  ;;  %v1137_v42 = vcvt.s32.f32 %v1121_v21  ;;  %v1617_v7 = vshra.s32 %v2356_v50, 16 }
 0x184   :  { %2211 = vmatprep.subr.bf16.mxu0 %v2170_v11  ;;  %1601 = vst.msk [vmem:[#allocation3 + $0x80] sm:$0xff] %vm566_vm3, %v1578_v17  ;;  %v1703_v13 = vpack.c.bf16 %v1690_v54, %v1689_v43  ;;  %v1618_v36 = vshra.s32 %v2357_v19, 16  ;;  %v1193_v26 = vpack.c.bf16 %v1180_v56, %v1179_v40  ;;  %v1648_v61 = vcvt.s32.f32 %v1632_v32 }
 0x185   :  { %1998 = vst.msk [vmem:[#allocation3 + $0x98] sm:$0xff] %vm431_vm2, %v1976_v51  ;;  %2212 = vmatpush1.bf16.msra.mxu0 %v2169_v22  ;;  %v1670_v39 = vmul.f32 %v5564_v28, %v1647_v57  ;;  %v1138_v48 = vcvt.s32.f32 %v1122_v3  ;;  %v1159_v0 = vmul.f32 %v5565_v15, %v1137_v42  ;;  %v1633_v18 = vand.u32 15, %v1617_v7  ;;  %v2360_v51 = vld [vmem:[%s5056_s1 + $0xe0] sm:$0xff] }
 0x186   :  { %1711 = vst.msk [vmem:[#allocation3 + $0xa8] sm:$0xff] %vm161_vm0, %v1703_v13  ;;  %v1634_v44 = vand.u32 15, %v1618_v36  ;;  %v1123_v46 = vand.u32 15, %v2356_v50  ;;  %v1312_v58 = vpop.permute.xlu1 %1311  ;;  %v2120_v27 = vpop.permute.xlu0 %2119  ;;  %1201 = vst.msk [vmem:[#allocation3 + $0xa0] sm:$0xff] %vm161_vm0, %v1193_v26  ;;  %v1671_v23 = vmul.f32 %v5564_v28, %v1648_v61  ;;  %v1124_v31 = vand.u32 15, %v2357_v19 }
 0x187   :  { %v2172_v8 = vld [vmem:[#allocation3 + $0x88] sm:$0xff]  ;;  %v1691_v30 = vadd.f32 %v5566_v16, %v1670_v39  ;;  %v1160_v41 = vmul.f32 %v5565_v15, %v1138_v48  ;;  %1334 = vst.msk [vmem:[#allocation3 + $0x90] sm:$0xff] %vm296_vm1, %v1312_v58  ;;  %v1181_v60 = vadd.f32 %v5567_v9, %v1159_v0  ;;  %v1649_v62 = vcvt.s32.f32 %v1633_v18 }
 0x188   :  { %2213 = vmatprep.subr.bf16.mxu0 %v2172_v8  ;;  %2142 = vst.msk [vmem:[#allocation3 + $0x98] sm:$0xff] %vm566_vm3, %v2120_v27  ;;  %v1650_v53 = vcvt.s32.f32 %v1634_v44  ;;  %v1139_v20 = vcvt.s32.f32 %v1123_v46  ;;  %v1692_v33 = vadd.f32 %v5566_v16, %v1671_v23  ;;  %v1140_v37 = vcvt.s32.f32 %v1124_v31  ;;  %v2361_v0 = vld [vmem:[%s5056_s1 + $0xe8] sm:$0xff] }
 0x189   :  { %v1182_v25 = vadd.f32 %v5567_v9, %v1160_v41  ;;  %v1619_v45 = vshra.s32 %v2358_v47, 16  ;;  %v1672_v35 = vmul.f32 %v5564_v28, %v1649_v62  ;;  %v1620_v24 = vshra.s32 %v2359_v34, 16 }
 0x18a   :  { %v1673_v2 = vmul.f32 %v5564_v28, %v1650_v53  ;;  %v1161_v1 = vmul.f32 %v5565_v15, %v1139_v20  ;;  %v1446_v12 = vpop.permute.xlu1 %1445  ;;  %v1834_v55 = vpop.permute.xlu0 %1833  ;;  %v1704_v52 = vpack.c.bf16 %v1692_v33, %v1691_v30  ;;  %v1162_v63 = vmul.f32 %v5565_v15, %v1140_v37 }
 0x18b   :  { %v2171_v38 = vld [vmem:[#allocation3 + $0x80] sm:$0xff]  ;;  %v1194_v10 = vpack.c.bf16 %v1182_v25, %v1181_v60  ;;  %v1635_v5 = vand.u32 15, %v1619_v45  ;;  %1468 = vst.msk [vmem:[#allocation3 + $0x90] sm:$0xff] %vm431_vm2, %v1446_v12  ;;  %v1693_v4 = vadd.f32 %v5566_v16, %v1672_v35  ;;  %v1636_v43 = vand.u32 15, %v1620_v24 }
 0x18c   :  { %1855 = vst.msk [vmem:[#allocation3 + $0xa8] sm:$0xff] %vm296_vm1, %v1834_v55  ;;  %2214 = vmatpush1.bf16.msra.mxu0 %v2171_v38  ;;  %v1694_v14 = vadd.f32 %v5566_v16, %v1673_v2  ;;  %v1183_v59 = vadd.f32 %v5567_v9, %v1161_v1  ;;  %v1184_v54 = vadd.f32 %v5567_v9, %v1162_v63  ;;  %v1125_v21 = vand.u32 15, %v2358_v47 }
 0x18d   :  { %1712 = vst.msk [vmem:[#allocation3 + $0xb8] sm:$0xff] %vm161_vm0, %v1704_v52  ;;  %1202 = vst.msk [vmem:[#allocation3 + $0xb0] sm:$0xff] %vm161_vm0, %v1194_v10  ;;  %v1651_v40 = vcvt.s32.f32 %v1635_v5  ;;  %v1126_v11 = vand.u32 15, %v2359_v34  ;;  %v1652_v17 = vcvt.s32.f32 %v1636_v43  ;;  %v1621_v56 = vshra.s32 %v2360_v51, 16 }
 0x18e   :  { %v1705_v22 = vpack.c.bf16 %v1694_v14, %v1693_v4  ;;  %v1622_v32 = vshra.s32 %v4587_v29, 16  ;;  %v1580_v57 = vpop.permute.xlu1 %1579  ;;  %v1978_v3 = vpop.permute.xlu0 %1977  ;;  %v1195_v42 = vpack.c.bf16 %v1184_v54, %v1183_v59  ;;  %v1141_v7 = vcvt.s32.f32 %v1125_v21 }
 0x18f   :  { %v2174_v13 = vld [vmem:[#allocation3 + $0x98] sm:$0xff]  ;;  %v1674_v50 = vmul.f32 %v5564_v28, %v1651_v40  ;;  %v1142_v19 = vcvt.s32.f32 %v1126_v11  ;;  %1602 = vst.msk [vmem:[#allocation3 + $0x90] sm:$0xff] %vm566_vm3, %v1580_v57  ;;  %v1675_v36 = vmul.f32 %v5564_v28, %v1652_v17  ;;  %v1637_v26 = vand.u32 15, %v1621_v56 }
 0x190   :  { %1999 = vst.msk [vmem:[#allocation3 + $0xa8] sm:$0xff] %vm431_vm2, %v1978_v3  ;;  %2215 = vmatprep.subr.bf16.mxu0 %v2174_v13  ;;  %v1638_v61 = vand.u32 15, %v1622_v32  ;;  %v1127_v29 = vand.u32 15, %v2360_v51  ;;  %v1163_v48 = vmul.f32 %v5565_v15, %v1141_v7  ;;  %v1128_v18 = vand.u32 15, %v2361_v0 }
 0x191   :  { %1713 = vst.msk [vmem:[#allocation3 + $0xc8] sm:$0xff] %vm161_vm0, %v1705_v22  ;;  %1203 = vst.msk [vmem:[#allocation3 + $0xc0] sm:$0xff] %vm161_vm0, %v1195_v42  ;;  %v1695_v39 = vadd.f32 %v5566_v16, %v1674_v50  ;;  %v1164_v8 = vmul.f32 %v5565_v15, %v1142_v19  ;;  %v1696_v44 = vadd.f32 %v5566_v16, %v1675_v36  ;;  %v1653_v46 = vcvt.s32.f32 %v1637_v26 }
 0x192   :  { %v1654_v58 = vcvt.s32.f32 %v1638_v61  ;;  %v1143_v27 = vcvt.s32.f32 %v1127_v29  ;;  %v1314_v23 = vpop.permute.xlu1 %1313  ;;  %v2122_v30 = vpop.permute.xlu0 %2121  ;;  %v1185_v41 = vadd.f32 %v5567_v9, %v1163_v48  ;;  %v1144_v60 = vcvt.s32.f32 %v1128_v18 }
 0x193   :  { %v1186_v31 = vadd.f32 %v5567_v9, %v1164_v8  ;;  %v1623_v62 = vshra.s32 %v4693_v6, 16  ;;  %1335 = vst.msk [vmem:[#allocation3 + $0xa0] sm:$0xff] %vm296_vm1, %v1314_v23  ;;  %v1706_v53 = vpack.c.bf16 %v1696_v44, %v1695_v39  ;;  %v1676_v20 = vmul.f32 %v5564_v28, %v1653_v46 }
 0x194   :  { %2143 = vst.msk [vmem:[#allocation3 + $0xa8] sm:$0xff] %vm566_vm3, %v2122_v30  ;;  %v1677_v33 = vmul.f32 %v5564_v28, %v1654_v58  ;;  %v1165_v25 = vmul.f32 %v5565_v15, %v1143_v27  ;;  %v1166_v47 = vmul.f32 %v5565_v15, %v1144_v60  ;;  %v1624_v45 = vshra.s32 %v4701_v49, 16 }
 0x195   :  { %v1196_v37 = vpack.c.bf16 %v1186_v31, %v1185_v41  ;;  %v1639_v35 = vand.u32 15, %v1623_v62  ;;  %1714 = vst.msk [vmem:[#allocation3 + $0xd8] sm:$0xff] %vm161_vm0, %v1706_v53  ;;  %v1697_v2 = vadd.f32 %v5566_v16, %v1676_v20  ;;  %v1129_v24 = vand.u32 15, %v4693_v6 }
 0x196   :  { %v1698_v1 = vadd.f32 %v5566_v16, %v1677_v33  ;;  %v1187_v34 = vadd.f32 %v5567_v9, %v1165_v25  ;;  %v1836_v55 = vpop.permute.xlu0 %1835  ;;  %v2173_v38 = vld [vmem:[#allocation3 + $0x90] sm:$0xff]  ;;  %v1188_v52 = vadd.f32 %v5567_v9, %v1166_v47  ;;  %v1640_v10 = vand.u32 15, %v1624_v45 }
 0x197   :  { %v1448_v12 = vpop.permute.xlu1 %1447  ;;  %1204 = vst.msk [vmem:[#allocation3 + $0xd0] sm:$0xff] %vm161_vm0, %v1196_v37  ;;  %v1655_v63 = vcvt.s32.f32 %v1639_v35  ;;  %v1130_v5 = vand.u32 15, %v4701_v49  ;;  %2216 = vmatpush1.bf16.msra.mxu0 %v2173_v38  ;;  %v1145_v14 = vcvt.s32.f32 %v1129_v24  ;;  %v5568_v38 = vld [vmem:[#allocation7_spill] sm:$0xff] }
 0x198   :  { %1469 = vst.msk [vmem:[#allocation3 + $0xa0] sm:$0xff] %vm431_vm2, %v1448_v12  ;;  %v1707_v4 = vpack.c.bf16 %v1698_v1, %v1697_v2  ;;  %v1197_v59 = vpack.c.bf16 %v1188_v52, %v1187_v34  ;;  %v1656_v6 = vcvt.s32.f32 %v1640_v10  ;;  %v2329_v12 = vld [vmem:[%s5055_s0] ss:$8 sps:$4 sm:$0xff]   ;;  %v33_v52 = vsub.s32 1, %v5568_v38  ;;  %v5569_v10 = vld [vmem:[#allocation8_spill] sm:$0xff]  ;;  %s2274_s0 = sshll.u32 %s2389_s23, 4  ;;  %s2275_s0 = int_to_ptr.vmem [resolvable:$true] %s2274_s0 }
 0x199   :  { %1856 = vst.msk [vmem:[#allocation3 + $0xb8] sm:$0xff] %vm296_vm1, %v1836_v55  ;;  %v1678_v43 = vmul.f32 %v5564_v28, %v1655_v63  ;;  %v1146_v54 = vcvt.s32.f32 %v1130_v5  ;;  %v1167_v40 = vmul.f32 %v5565_v15, %v1145_v14  ;;  %v25_v55 = vld [vmem:[%s5059_s4] sm:$0x3]  ;;  %s2362_s4 = scalar_lea.vmem %s2275_s0, 256  ;;  %p2367_p1 = scmp.lt.s32.totalorder %s2275_s0, %s2275_s0 }
 0x19a   :  { %1715 = vst.msk [vmem:[#allocation3 + $0xe8] sm:$0xff] %vm161_vm0, %v1707_v4  ;;  %1205 = vst.msk [vmem:[#allocation3 + $0xe0] sm:$0xff] %vm161_vm0, %v1197_v59  ;;  %v1679_v49 = vmul.f32 %v5564_v28, %v1656_v6  ;;  %v30_v63 = vrot.slane %v25_v55, %v5569_v10  ;;  %v34_v5 = vrot.slane %v25_v55, %v33_v52  ;;  %p2363_p0 = scmp.ne.s32.totalorder %s2275_s0, %s2362_s4  ;;  %p2368_p2 = scmp.lt.s32.totalorder %s2362_s4, %s2362_s4 }
 0x19b   :  { %v1582_v21 = vpop.permute.xlu1 %1581  ;;  %v1980_v11 = vpop.permute.xlu0 %1979  ;;  %v2176_v22 = vld [vmem:[#allocation3 + $0xa8] sm:$0xff]  ;;  %v1699_v17 = vadd.f32 %v5566_v16, %v1678_v43  ;;  %v1168_v51 = vmul.f32 %v5565_v15, %v1146_v54  ;;  %v1189_v56 = vadd.f32 %v5567_v9, %v1167_v40 }
 0x19c   :  { %1603 = vst.msk [vmem:[#allocation3 + $0xa0] sm:$0xff] %vm566_vm3, %v1582_v21  ;;  %2217 = vmatprep.subr.bf16.mxu0 %v2176_v22  ;;  %v1700_v32 = vadd.f32 %v5566_v16, %v1679_v49  ;;  %p2369_p3 = por %p2368_p2, %p2367_p1 }
 0x19d   :  { %2000 = vst.msk [vmem:[#allocation3 + $0xb8] sm:$0xff] %vm431_vm2, %v1980_v11  ;;  %v1190_v57 = vadd.f32 %v5567_v9, %v1168_v51 }
 0x19e   :  { %v1708_v42 = vpack.c.bf16 %v1700_v32, %v1699_v17  ;;  %p2370_p4 = pnand %p2369_p3, %p2363_p0 }
 0x19f   :  { %v1316_v3 = vpop.permute.xlu1 %1315  ;;  %v1198_v50 = vpack.c.bf16 %v1190_v57, %v1189_v56 }
 0x1a0   :  { %v2124_v13 = vpop.permute.xlu0 %2123  ;;  %1336 = vst.msk [vmem:[#allocation3 + $0xb0] sm:$0xff] %vm296_vm1, %v1316_v3 }
 0x1a1   :  { %2144 = vst.msk [vmem:[#allocation3 + $0xb8] sm:$0xff] %vm566_vm3, %v2124_v13 }
 0x1a2   :  { %1716 = vst.msk [vmem:[#allocation3 + $0xf8] sm:$0xff] %vm161_vm0, %v1708_v42  ;;  %1206 = vst.msk [vmem:[#allocation3 + $0xf0] sm:$0xff] %vm161_vm0, %v1198_v50 }
 0x1a3   :  { %v1450_v28 = vpop.permute.xlu1 %1449  ;;  %v2175_v7 = vld [vmem:[#allocation3 + $0xa0] sm:$0xff] }
 0x1a4   :  { %v1838_v15 = vpop.permute.xlu0 %1837  ;;  %1470 = vst.msk [vmem:[#allocation3 + $0xb0] sm:$0xff] %vm431_vm2, %v1450_v28  ;;  %2218 = vmatpush1.bf16.msra.mxu0 %v2175_v7 }
 0x1a5   :  { %1857 = vst.msk [vmem:[#allocation3 + $0xc8] sm:$0xff] %vm296_vm1, %v1838_v15 }
 0x1a7   :  { %v1584_v16 = vpop.permute.xlu1 %1583 }
 0x1a8   :  { %v1982_v9 = vpop.permute.xlu0 %1981  ;;  %v2178_v19 = vld [vmem:[#allocation3 + $0xb8] sm:$0xff]  ;;  %1604 = vst.msk [vmem:[#allocation3 + $0xb0] sm:$0xff] %vm566_vm3, %v1584_v16 }
 0x1a9   :  { %2001 = vst.msk [vmem:[#allocation3 + $0xc8] sm:$0xff] %vm431_vm2, %v1982_v9  ;;  %2219 = vmatprep.subr.bf16.mxu0 %v2178_v19 }
 0x1ab   :  { %v1318_v36 = vpop.permute.xlu1 %1317 }
 0x1ac   :  { %v2126_v26 = vpop.permute.xlu0 %2125  ;;  %1337 = vst.msk [vmem:[#allocation3 + $0xc0] sm:$0xff] %vm296_vm1, %v1318_v36 }
 0x1ad   :  { %2145 = vst.msk [vmem:[#allocation3 + $0xc8] sm:$0xff] %vm566_vm3, %v2126_v26 }
 0x1af   :  { %v1452_v61 = vpop.permute.xlu1 %1451  ;;  %v2177_v39 = vld [vmem:[#allocation3 + $0xb0] sm:$0xff] }
 0x1b0   :  { %v1840_v29 = vpop.permute.xlu0 %1839  ;;  %1471 = vst.msk [vmem:[#allocation3 + $0xc0] sm:$0xff] %vm431_vm2, %v1452_v61  ;;  %2220 = vmatpush1.bf16.msra.mxu0 %v2177_v39 }
 0x1b1   :  { %1858 = vst.msk [vmem:[#allocation3 + $0xd8] sm:$0xff] %vm296_vm1, %v1840_v29 }
 0x1b3   :  { %v1586_v48 = vpop.permute.xlu1 %1585 }
 0x1b4   :  { %v1984_v8 = vpop.permute.xlu0 %1983  ;;  %v2180_v0 = vld [vmem:[#allocation3 + $0xc8] sm:$0xff]  ;;  %1605 = vst.msk [vmem:[#allocation3 + $0xc0] sm:$0xff] %vm566_vm3, %v1586_v48 }
 0x1b5   :  { %2002 = vst.msk [vmem:[#allocation3 + $0xd8] sm:$0xff] %vm431_vm2, %v1984_v8  ;;  %2221 = vmatprep.subr.bf16.mxu0 %v2180_v0 }
 0x1b7   :  { %v1320_v18 = vpop.permute.xlu1 %1319 }
 0x1b8   :  { %v2128_v44 = vpop.permute.xlu0 %2127  ;;  %1338 = vst.msk [vmem:[#allocation3 + $0xd0] sm:$0xff] %vm296_vm1, %v1320_v18 }
 0x1b9   :  { %2146 = vst.msk [vmem:[#allocation3 + $0xd8] sm:$0xff] %vm566_vm3, %v2128_v44 }
 0x1bb   :  { %v1454_v46 = vpop.permute.xlu1 %1453  ;;  %v2179_v27 = vld [vmem:[#allocation3 + $0xc0] sm:$0xff] }
 0x1bc   :  { %v1842_v58 = vpop.permute.xlu0 %1841  ;;  %1472 = vst.msk [vmem:[#allocation3 + $0xd0] sm:$0xff] %vm431_vm2, %v1454_v46  ;;  %2222 = vmatpush1.bf16.msra.mxu0 %v2179_v27 }
 0x1bd   :  { %1859 = vst.msk [vmem:[#allocation3 + $0xe8] sm:$0xff] %vm296_vm1, %v1842_v58 }
 0x1c0   :  { %v2182_v23 = vld [vmem:[#allocation3 + $0xd8] sm:$0xff]  ;;  %v1986_v30 = vpop.permute.xlu0 %1985 }
 0x1c1   :  { %2223 = vmatprep.subr.bf16.mxu0 %v2182_v23  ;;  %2003 = vst.msk [vmem:[#allocation3 + $0xe8] sm:$0xff] %vm431_vm2, %v1986_v30 }
 0x1c2   :  { %v1588_v41 = vpop.permute.xlu1 %1587 }
 0x1c3   :  { %1606 = vst.msk [vmem:[#allocation3 + $0xd0] sm:$0xff] %vm566_vm3, %v1588_v41 }
 0x1c4   :  { %v2130_v31 = vpop.permute.xlu0 %2129 }
 0x1c5   :  { %2147 = vst.msk [vmem:[#allocation3 + $0xe8] sm:$0xff] %vm566_vm3, %v2130_v31 }
 0x1ca   :  { %v1322_v60 = vpop.permute.xlu1 %1321  ;;  %v2181_v62 = vld [vmem:[#allocation3 + $0xd0] sm:$0xff] }
 0x1cb   :  { %1339 = vst.msk [vmem:[#allocation3 + $0xe0] sm:$0xff] %vm296_vm1, %v1322_v60  ;;  %2224 = vmatpush1.bf16.msra.mxu0 %v2181_v62 }
 0x1cc   :  { %v2184_v53 = vld [vmem:[#allocation3 + $0xe8] sm:$0xff] }
 0x1cd   :  { %v1844_v20 = vpop.permute.xlu0 %1843  ;;  %2225 = vmatprep.subr.bf16.mxu0 %v2184_v53 }
 0x1ce   :  { %1860 = vst.msk [vmem:[#allocation3 + $0xf8] sm:$0xff] %vm296_vm1, %v1844_v20 }
 0x1cf   :  { %v1456_v33 = vpop.permute.xlu1 %1455 }
 0x1d0   :  { %1473 = vst.msk [vmem:[#allocation3 + $0xe0] sm:$0xff] %vm431_vm2, %v1456_v33 }
 0x1d6   :  { %v1988_v25 = vpop.permute.xlu0 %1987 }
 0x1d7   :  { %v1590_v37 = vpop.permute.xlu1 %1589  ;;  %2004 = vst.msk [vmem:[#allocation3 + $0xf8] sm:$0xff] %vm431_vm2, %v1988_v25 }
 0x1d8   :  { %1607 = vst.msk [vmem:[#allocation3 + $0xe0] sm:$0xff] %vm566_vm3, %v1590_v37 }
 0x1da   :  { %v2132_v47 = vpop.permute.xlu0 %2131 }
 0x1db   :  { %2148 = vst.msk [vmem:[#allocation3 + $0xf8] sm:$0xff] %vm566_vm3, %v2132_v47 }
 0x1df   :  { %v2183_v45 = vld [vmem:[#allocation3 + $0xe0] sm:$0xff] }
 0x1e0   :  { %v1324_v35 = vpop.permute.xlu1 %1323  ;;  %2226 = vmatpush1.bf16.msra.mxu0 %v2183_v45 }
 0x1e1   :  { %1340 = vst.msk [vmem:[#allocation3 + $0xf0] sm:$0xff] %vm296_vm1, %v1324_v35 }
 0x1e2   :  { %v2186_v2 = vld [vmem:[#allocation3 + $0xf8] sm:$0xff] }
 0x1e3   :  { %2227 = vmatprep.subr.bf16.mxu0 %v2186_v2 }
 0x1e4   :  { %v1458_v1 = vpop.permute.xlu1 %1457 }
 0x1e5   :  { %1474 = vst.msk [vmem:[#allocation3 + $0xf0] sm:$0xff] %vm431_vm2, %v1458_v1 }
 0x1e8   :  { %v1592_v34 = vpop.permute.xlu1 %1591 }
 0x1e9   :  { %1608 = vst.msk [vmem:[#allocation3 + $0xf0] sm:$0xff] %vm566_vm3, %v1592_v34 }
 0x1f0   :  { %v2185_v24 = vld [vmem:[#allocation3 + $0xf0] sm:$0xff] }
 0x1f1   :  { %2228 = vmatpush1.bf16.msra.mxu0 %v2185_v24 }
 0x1f4   :  { %2230 = vmatmul.mubr.bf16.vlgmr.msra.gmra.mrb[0].mxu0 %v2329_v12 }
 0x2c7   :  { %v2231_v4 = vpop.f32.mrb[0].mxu0 }
 0x2c8   :  { %v2240_v14 = vadd.f32 %v2231_v4, %v30_v63  ;;  %v2233_v59 = vpop.f32.mrb[1].mxu0 }
 0x2c9   :  { %v2241_v6 = vadd.f32 %v2233_v59, %v34_v5  ;;  %v2235_v43 = vpop.f32.mrb[2].mxu0 }
 0x2ca   :  { %v2242_v54 = vadd.f32 %v2235_v43, %v30_v63  ;;  %v2237_v40 = vpop.f32.mrb[3].mxu0 }
 0x2cb   :  { %v2321_v21 = vpack.c.bf16 %v2241_v6, %v2240_v14  ;;  %v2243_v11 = vadd.f32 %v2237_v40, %v34_v5 }
 0x2cd   :  { %2267 = vst [vmem:[#allocation4] sm:$0xff] %v2321_v21  ;;  %v2322_v22 = vpack.c.bf16 %v2243_v11, %v2242_v54 }
 0x2cf   :  { %2268 = vst [vmem:[#allocation4 + $0x8] sm:$0xff] %v2322_v22 }
 0x2d0   :  { %2373 = shalt.err (!%p2370_p4)
}
 0x2d1   :  { %s2374_s9 = scalar_lea.hbm %s5060_s5, 256 }
 0x2d2   :  { %p2375_p5 = scmp.ne.s32.totalorder %s5060_s5, %s2374_s9  ;;  %p2378_p6 = scmp.lt.u32.totalorder %s2374_s9, %s5060_s5 }
 0x2d4   :  { %p2380_p7 = pnand %p2378_p6, %p2375_p5 }
 0x2d6   :  { %2383 = shalt.err (!%p2380_p7)
}
 0x2d7   :  { %s2390_s13 = smov 128   ;;  %s2391_s14 = smov 8  }
 0x2d8   :  { %2280 = dma.vmem_to_hbm [thread:$0]  %s2275_s0, 256, %s5060_s5, [#allocation5], %s2390_s13, %s2390_s13, %s2391_s14  }
 0x2d9   :  { %2384 = dma.done.wait [#allocation5], 256  }
 0x2da   :  { %2385 = vsyncadd [#allocation5], 4294967040 }
 0x2db   :  { %2284 = vsyncpa [#allocation5], 1 }

</bundles_post_ra>
